<compile_context>
chip_gen: v5e
topology: v5e:2x2
jax: 0.10.0
libtpu: 0.0.40
codegen_flags: <defaults>
</compile_context>

<pallas_src>
import jax
import jax.numpy as jnp
import numpy as np
from jax.experimental import pallas as pl
from jax.experimental.pallas import tpu as pltpu


def _make_fused_kernel(N, H, W, Cin, Cout, eps):
    HW = H * W
    inv_cnt = 1.0 / float(N * HW)

    def kernel(x_ref, w_ref, gamma_ref, beta_ref, o_ref):
        # x_ref:     (N, H+4, W+4, Cin)  zero-padded NHWC input (all in VMEM)
        # w_ref:     (Cout, 9*Cin)       weights, K ordered as (kh, kw, cin)
        # gamma_ref: (Cout, 1)
        # beta_ref:  (Cout, 1)
        # o_ref:     (N, Cout, H*W)      flattened NCHW output (lane-dense)
        w = w_ref[...]                                    # (Cout, 9*Cin)

        conv = []
        tot = jnp.zeros((Cout, 1), jnp.float32)
        for n in range(N):                                # N small -> unrolled
            xn = x_ref[n]                                 # (H+4, W+4, Cin)
            # im2col: 9 dilated taps, each (H*W, Cin); output (h, w) reads
            # padded input (h + 2*kh, w + 2*kw).
            taps = [
                xn[2 * kh:2 * kh + H, 2 * kw:2 * kw + W, :].reshape(HW, Cin)
                for kh in range(3) for kw in range(3)
            ]
            col_t = jnp.concatenate(taps, axis=1)         # (H*W, 9*Cin)
            # acc = W @ col_t^T  -> (Cout, H*W), channels-first, single K=36
            # contraction on the MXU (rhs fed transposed, q@k^T style).
            acc = jax.lax.dot_general(
                w, col_t, (((1,), (1,)), ((), ())),
                preferred_element_type=jnp.float32)       # (Cout, H*W)
            conv.append(acc)
            tot = tot + jnp.sum(acc, axis=1, keepdims=True)

        # Training-mode BatchNorm2d statistics over (N, H, W), per channel.
        mean = tot * inv_cnt                              # (Cout, 1)
        centered = [c - mean for c in conv]
        var = jnp.zeros((Cout, 1), jnp.float32)
        for d in centered:
            var = var + jnp.sum(d * d, axis=1, keepdims=True)
        var = var * inv_cnt                               # biased variance

        scale = gamma_ref[...] * jax.lax.rsqrt(var + eps) # (Cout, 1)
        beta = beta_ref[...]                              # (Cout, 1)

        for n in range(N):
            o_ref[n] = jnp.maximum(centered[n] * scale + beta, 0.0)

    return kernel


def dilated_conv_bn_relu(x_nchw, w_oihw, bias, gamma, beta, eps=1e-5):
    """Forward pass of DilatedConv. Input/output are NCHW (PyTorch convention).

    `bias` is accepted for API parity with nn.Conv2d but is NOT used: under
    training-mode BatchNorm a per-channel bias shifts the batch mean only
    (variance unchanged), so it cancels exactly in the normalized output.
    """
    del bias  # cancels exactly under batch-stats BatchNorm
    N, Cin, H, W = x_nchw.shape
    Cout = w_oihw.shape[0]

    # NCHW -> NHWC + zero pad spatial dims by 2 (padding=2).  Tiny (few KB);
    # kept in the wrapper for simplicity — halo handling stays in-kernel math.
    x = jnp.transpose(x_nchw, (0, 2, 3, 1)).astype(jnp.float32)
    x_pad = jnp.pad(x, ((0, 0), (2, 2), (2, 2), (0, 0)))

    # (Cout, Cin, 3, 3) -> (Cout, kh, kw, Cin) -> (Cout, 9*Cin); matches the
    # im2col column order (kh*3 + kw)*Cin + cin.
    w2d = jnp.transpose(w_oihw, (0, 2, 3, 1)).reshape(Cout, 9 * Cin)
    w2d = w2d.astype(jnp.float32)
    g = gamma.reshape(Cout, 1).astype(jnp.float32)
    b = beta.reshape(Cout, 1).astype(jnp.float32)

    kernel = _make_fused_kernel(N, H, W, Cin, Cout, float(eps))

    out_flat = pl.pallas_call(
        kernel,
        out_shape=jax.ShapeDtypeStruct((N, Cout, H * W), jnp.float32),
        grid=(1,),
        in_specs=[
            pl.BlockSpec((N, H + 4, W + 4, Cin), lambda i: (0, 0, 0, 0)),
            pl.BlockSpec((Cout, 9 * Cin), lambda i: (0, 0)),
            pl.BlockSpec((Cout, 1), lambda i: (0, 0)),
            pl.BlockSpec((Cout, 1), lambda i: (0, 0)),
        ],
        out_specs=pl.BlockSpec((N, Cout, H * W), lambda i: (0, 0, 0)),
        compiler_params=pltpu.CompilerParams(
            dimension_semantics=("arbitrary",)),
    )(x_pad, w2d, g, b)

    # (N, Cout, H*W) -> (N, Cout, H, W): pure row-major metadata reshape.
    return out_flat.reshape(N, Cout, H, W)


if __name__ == "__main__":
    key = jax.random.PRNGKey(0)
    k1, k2, k3, k4, k5 = jax.random.split(key, 5)

    N, Cin, Cout, H, W = 2, 4, 8, 16, 16
    x = jax.random.normal(k1, (N, Cin, H, W), jnp.float32)
    w = jax.random.normal(k2, (Cout, Cin, 3, 3), jnp.float32) * 0.1
    bias = jax.random.normal(k3, (Cout,), jnp.float32) * 0.1
    gamma = 1.0 + jax.random.normal(k4, (Cout,), jnp.float32) * 0.1
    beta = jax.random.normal(k5, (Cout,), jnp.float32) * 0.1

    out = dilated_conv_bn_relu(x, w, bias, gamma, beta)
    out = jax.block_until_ready(out)

    # Pure-JAX reference (includes the conv bias, which cancels under BN).
    x_nhwc = jnp.transpose(x, (0, 2, 3, 1))
    w_hwio = jnp.transpose(w, (2, 3, 1, 0))
    conv = jax.lax.conv_general_dilated(
        x_nhwc, w_hwio, window_strides=(1, 1), padding=[(2, 2), (2, 2)],
        rhs_dilation=(2, 2), dimension_numbers=("NHWC", "HWIO", "NHWC"))
    conv = conv + bias
    mean = jnp.mean(conv, axis=(0, 1, 2))
    var = jnp.mean((conv - mean) ** 2, axis=(0, 1, 2))
    ref = jnp.maximum((conv - mean) / jnp.sqrt(var + 1e-5) * gamma + beta, 0.0)
    ref = jnp.transpose(ref, (0, 3, 1, 2))

    assert np.allclose(np.asarray(out), np.asarray(ref), atol=1e-3, rtol=1e-3), \
        "Pallas output does not match reference"
    print("KERNEL_OK")
</pallas_src>

<mosaic_0001>
module attributes {stable_mosaic.version = 11 : i64} {
  func.func @kernel(%arg0: i32, %arg1: memref<2x20x20x4xf32, #tpu.memory_space<vmem>>, %arg2: memref<8x36xf32, #tpu.memory_space<vmem>>, %arg3: memref<8x1xf32, #tpu.memory_space<vmem>>, %arg4: memref<8x1xf32, #tpu.memory_space<vmem>>, %arg5: memref<2x8x256xf32, #tpu.memory_space<vmem>>) attributes {dimension_semantics = [#tpu.dimension_semantics<arbitrary>], iteration_bounds = array<i64: 1>, scalar_prefetch = 0 : i64, scratch_operands = 0 : i64, tpu.core_type = #tpu.core_type<tc>, window_params = [{pipeline_mode = #tpu.pipeline_mode<synchronous>, transform_indices = @transform_0, window_bounds = array<i64: 2, 20, 20, 4>}, {pipeline_mode = #tpu.pipeline_mode<synchronous>, transform_indices = @transform_1, window_bounds = array<i64: 8, 36>}, {pipeline_mode = #tpu.pipeline_mode<synchronous>, transform_indices = @transform_2, window_bounds = array<i64: 8, 1>}, {pipeline_mode = #tpu.pipeline_mode<synchronous>, transform_indices = @transform_3, window_bounds = array<i64: 8, 1>}, {pipeline_mode = #tpu.pipeline_mode<synchronous>, transform_indices = @transform_4, window_bounds = array<i64: 2, 8, 256>}]} {
    %c0 = arith.constant 0 : index
    %c0_0 = arith.constant 0 : index
    %0 = vector.load %arg2[%c0, %c0_0] : memref<8x36xf32, #tpu.memory_space<vmem>>, vector<8x36xf32>
    %cst = arith.constant 0.000000e+00 : f32
    %1 = vector.broadcast %cst : f32 to vector<8x1xf32>
    %c0_1 = arith.constant 0 : index
    %c0_2 = arith.constant 0 : index
    %c0_3 = arith.constant 0 : index
    %c0_4 = arith.constant 0 : index
    %2 = vector.load %arg1[%c0_1, %c0_2, %c0_3, %c0_4] : memref<2x20x20x4xf32, #tpu.memory_space<vmem>>, vector<1x20x20x4xf32>
    %3 = vector.shape_cast %2 : vector<1x20x20x4xf32> to vector<20x20x4xf32>
    %4 = vector.extract_strided_slice %3 {offsets = [0, 0, 0], sizes = [16, 16, 4], strides = [1, 1, 1]} : vector<20x20x4xf32> to vector<16x16x4xf32>
    %5 = vector.shape_cast %4 : vector<16x16x4xf32> to vector<256x4xf32>
    %6 = vector.extract_strided_slice %3 {offsets = [0, 2, 0], sizes = [16, 16, 4], strides = [1, 1, 1]} : vector<20x20x4xf32> to vector<16x16x4xf32>
    %7 = vector.shape_cast %6 : vector<16x16x4xf32> to vector<256x4xf32>
    %8 = vector.extract_strided_slice %3 {offsets = [0, 4, 0], sizes = [16, 16, 4], strides = [1, 1, 1]} : vector<20x20x4xf32> to vector<16x16x4xf32>
    %9 = vector.shape_cast %8 : vector<16x16x4xf32> to vector<256x4xf32>
    %10 = vector.extract_strided_slice %3 {offsets = [2, 0, 0], sizes = [16, 16, 4], strides = [1, 1, 1]} : vector<20x20x4xf32> to vector<16x16x4xf32>
    %11 = vector.shape_cast %10 : vector<16x16x4xf32> to vector<256x4xf32>
    %12 = vector.extract_strided_slice %3 {offsets = [2, 2, 0], sizes = [16, 16, 4], strides = [1, 1, 1]} : vector<20x20x4xf32> to vector<16x16x4xf32>
    %13 = vector.shape_cast %12 : vector<16x16x4xf32> to vector<256x4xf32>
    %14 = vector.extract_strided_slice %3 {offsets = [2, 4, 0], sizes = [16, 16, 4], strides = [1, 1, 1]} : vector<20x20x4xf32> to vector<16x16x4xf32>
    %15 = vector.shape_cast %14 : vector<16x16x4xf32> to vector<256x4xf32>
    %16 = vector.extract_strided_slice %3 {offsets = [4, 0, 0], sizes = [16, 16, 4], strides = [1, 1, 1]} : vector<20x20x4xf32> to vector<16x16x4xf32>
    %17 = vector.shape_cast %16 : vector<16x16x4xf32> to vector<256x4xf32>
    %18 = vector.extract_strided_slice %3 {offsets = [4, 2, 0], sizes = [16, 16, 4], strides = [1, 1, 1]} : vector<20x20x4xf32> to vector<16x16x4xf32>
    %19 = vector.shape_cast %18 : vector<16x16x4xf32> to vector<256x4xf32>
    %20 = vector.extract_strided_slice %3 {offsets = [4, 4, 0], sizes = [16, 16, 4], strides = [1, 1, 1]} : vector<20x20x4xf32> to vector<16x16x4xf32>
    %21 = vector.shape_cast %20 : vector<16x16x4xf32> to vector<256x4xf32>
    %22 = tpu.concatenate %5, %7, %9, %11, %13, %15, %17, %19, %21 in 1 : vector<256x4xf32>, vector<256x4xf32>, vector<256x4xf32>, vector<256x4xf32>, vector<256x4xf32>, vector<256x4xf32>, vector<256x4xf32>, vector<256x4xf32>, vector<256x4xf32> -> vector<256x36xf32>
    %cst_5 = arith.constant dense<0.000000e+00> : vector<8x256xf32>
    %23 = tpu.matmul %0, %22, %cst_5 {dimension_numbers = #tpu.dot_dimension_numbers<[1], [1], [0], [0], [0, 0, 1, 0], [], []>} : vector<8x36xf32>, vector<256x36xf32>, vector<8x256xf32> -> vector<8x256xf32>
    %cst_6 = arith.constant dense<0.000000e+00> : vector<8xf32>
    %24 = vector.multi_reduction <add>, %23, %cst_6 [1] : vector<8x256xf32> to vector<8xf32>
    %25 = vector.shape_cast %24 : vector<8xf32> to vector<8x1xf32>
    %26 = arith.addf %1, %25 : vector<8x1xf32>
    %c1 = arith.constant 1 : index
    %c0_7 = arith.constant 0 : index
    %c0_8 = arith.constant 0 : index
    %c0_9 = arith.constant 0 : index
    %27 = vector.load %arg1[%c1, %c0_7, %c0_8, %c0_9] : memref<2x20x20x4xf32, #tpu.memory_space<vmem>>, vector<1x20x20x4xf32>
    %28 = vector.shape_cast %27 : vector<1x20x20x4xf32> to vector<20x20x4xf32>
    %29 = vector.extract_strided_slice %28 {offsets = [0, 0, 0], sizes = [16, 16, 4], strides = [1, 1, 1]} : vector<20x20x4xf32> to vector<16x16x4xf32>
    %30 = vector.shape_cast %29 : vector<16x16x4xf32> to vector<256x4xf32>
    %31 = vector.extract_strided_slice %28 {offsets = [0, 2, 0], sizes = [16, 16, 4], strides = [1, 1, 1]} : vector<20x20x4xf32> to vector<16x16x4xf32>
    %32 = vector.shape_cast %31 : vector<16x16x4xf32> to vector<256x4xf32>
    %33 = vector.extract_strided_slice %28 {offsets = [0, 4, 0], sizes = [16, 16, 4], strides = [1, 1, 1]} : vector<20x20x4xf32> to vector<16x16x4xf32>
    %34 = vector.shape_cast %33 : vector<16x16x4xf32> to vector<256x4xf32>
    %35 = vector.extract_strided_slice %28 {offsets = [2, 0, 0], sizes = [16, 16, 4], strides = [1, 1, 1]} : vector<20x20x4xf32> to vector<16x16x4xf32>
    %36 = vector.shape_cast %35 : vector<16x16x4xf32> to vector<256x4xf32>
    %37 = vector.extract_strided_slice %28 {offsets = [2, 2, 0], sizes = [16, 16, 4], strides = [1, 1, 1]} : vector<20x20x4xf32> to vector<16x16x4xf32>
    %38 = vector.shape_cast %37 : vector<16x16x4xf32> to vector<256x4xf32>
    %39 = vector.extract_strided_slice %28 {offsets = [2, 4, 0], sizes = [16, 16, 4], strides = [1, 1, 1]} : vector<20x20x4xf32> to vector<16x16x4xf32>
    %40 = vector.shape_cast %39 : vector<16x16x4xf32> to vector<256x4xf32>
    %41 = vector.extract_strided_slice %28 {offsets = [4, 0, 0], sizes = [16, 16, 4], strides = [1, 1, 1]} : vector<20x20x4xf32> to vector<16x16x4xf32>
    %42 = vector.shape_cast %41 : vector<16x16x4xf32> to vector<256x4xf32>
    %43 = vector.extract_strided_slice %28 {offsets = [4, 2, 0], sizes = [16, 16, 4], strides = [1, 1, 1]} : vector<20x20x4xf32> to vector<16x16x4xf32>
    %44 = vector.shape_cast %43 : vector<16x16x4xf32> to vector<256x4xf32>
    %45 = vector.extract_strided_slice %28 {offsets = [4, 4, 0], sizes = [16, 16, 4], strides = [1, 1, 1]} : vector<20x20x4xf32> to vector<16x16x4xf32>
    %46 = vector.shape_cast %45 : vector<16x16x4xf32> to vector<256x4xf32>
    %47 = tpu.concatenate %30, %32, %34, %36, %38, %40, %42, %44, %46 in 1 : vector<256x4xf32>, vector<256x4xf32>, vector<256x4xf32>, vector<256x4xf32>, vector<256x4xf32>, vector<256x4xf32>, vector<256x4xf32>, vector<256x4xf32>, vector<256x4xf32> -> vector<256x36xf32>
    %cst_10 = arith.constant dense<0.000000e+00> : vector<8x256xf32>
    %48 = tpu.matmul %0, %47, %cst_10 {dimension_numbers = #tpu.dot_dimension_numbers<[1], [1], [0], [0], [0, 0, 1, 0], [], []>} : vector<8x36xf32>, vector<256x36xf32>, vector<8x256xf32> -> vector<8x256xf32>
    %cst_11 = arith.constant dense<0.000000e+00> : vector<8xf32>
    %49 = vector.multi_reduction <add>, %48, %cst_11 [1] : vector<8x256xf32> to vector<8xf32>
    %50 = vector.shape_cast %49 : vector<8xf32> to vector<8x1xf32>
    %51 = arith.addf %26, %50 : vector<8x1xf32>
    %cst_12 = arith.constant 0.001953125 : f32
    %52 = vector.broadcast %cst_12 : f32 to vector<8x1xf32>
    %53 = arith.mulf %51, %52 : vector<8x1xf32>
    %54 = vector.broadcast %53 : vector<8x1xf32> to vector<8x256xf32>
    %55 = arith.subf %23, %54 : vector<8x256xf32>
    %56 = vector.broadcast %53 : vector<8x1xf32> to vector<8x256xf32>
    %57 = arith.subf %48, %56 : vector<8x256xf32>
    %cst_13 = arith.constant 0.000000e+00 : f32
    %58 = vector.broadcast %cst_13 : f32 to vector<8x1xf32>
    %59 = arith.mulf %55, %55 : vector<8x256xf32>
    %cst_14 = arith.constant dense<0.000000e+00> : vector<8xf32>
    %60 = vector.multi_reduction <add>, %59, %cst_14 [1] : vector<8x256xf32> to vector<8xf32>
    %61 = vector.shape_cast %60 : vector<8xf32> to vector<8x1xf32>
    %62 = arith.addf %58, %61 : vector<8x1xf32>
    %63 = arith.mulf %57, %57 : vector<8x256xf32>
    %cst_15 = arith.constant dense<0.000000e+00> : vector<8xf32>
    %64 = vector.multi_reduction <add>, %63, %cst_15 [1] : vector<8x256xf32> to vector<8xf32>
    %65 = vector.shape_cast %64 : vector<8xf32> to vector<8x1xf32>
    %66 = arith.addf %62, %65 : vector<8x1xf32>
    %cst_16 = arith.constant 0.001953125 : f32
    %67 = vector.broadcast %cst_16 : f32 to vector<8x1xf32>
    %68 = arith.mulf %66, %67 : vector<8x1xf32>
    %c0_17 = arith.constant 0 : index
    %c0_18 = arith.constant 0 : index
    %69 = vector.load %arg3[%c0_17, %c0_18] : memref<8x1xf32, #tpu.memory_space<vmem>>, vector<8x1xf32>
    %cst_19 = arith.constant 9.99999974E-6 : f32
    %70 = vector.broadcast %cst_19 : f32 to vector<8x1xf32>
    %71 = arith.addf %68, %70 : vector<8x1xf32>
    %72 = math.rsqrt %71 : vector<8x1xf32>
    %73 = arith.mulf %69, %72 : vector<8x1xf32>
    %c0_20 = arith.constant 0 : index
    %c0_21 = arith.constant 0 : index
    %74 = vector.load %arg4[%c0_20, %c0_21] : memref<8x1xf32, #tpu.memory_space<vmem>>, vector<8x1xf32>
    %75 = vector.broadcast %73 : vector<8x1xf32> to vector<8x256xf32>
    %76 = arith.mulf %55, %75 : vector<8x256xf32>
    %77 = vector.broadcast %74 : vector<8x1xf32> to vector<8x256xf32>
    %78 = arith.addf %76, %77 : vector<8x256xf32>
    %cst_22 = arith.constant 0.000000e+00 : f32
    %79 = vector.broadcast %cst_22 : f32 to vector<8x256xf32>
    %80 = arith.maximumf %78, %79 : vector<8x256xf32>
    %c0_23 = arith.constant 0 : index
    %c0_24 = arith.constant 0 : index
    %c0_25 = arith.constant 0 : index
    %81 = vector.load %arg5[%c0_23, %c0_24, %c0_25] : memref<2x8x256xf32, #tpu.memory_space<vmem>>, vector<1x8x256xf32>
    %82 = vector.shape_cast %81 : vector<1x8x256xf32> to vector<8x256xf32>
    %83 = vector.shape_cast %80 : vector<8x256xf32> to vector<1x8x256xf32>
    tpu.vector_store %arg5[%c0_23, %c0_24, %c0_25], %83 {strides = array<i32>} : memref<2x8x256xf32, #tpu.memory_space<vmem>>, vector<1x8x256xf32>,
    %84 = vector.broadcast %73 : vector<8x1xf32> to vector<8x256xf32>
    %85 = arith.mulf %57, %84 : vector<8x256xf32>
    %86 = vector.broadcast %74 : vector<8x1xf32> to vector<8x256xf32>
    %87 = arith.addf %85, %86 : vector<8x256xf32>
    %cst_26 = arith.constant 0.000000e+00 : f32
    %88 = vector.broadcast %cst_26 : f32 to vector<8x256xf32>
    %89 = arith.maximumf %87, %88 : vector<8x256xf32>
    %c1_27 = arith.constant 1 : index
    %c0_28 = arith.constant 0 : index
    %c0_29 = arith.constant 0 : index
    %90 = vector.load %arg5[%c1_27, %c0_28, %c0_29] : memref<2x8x256xf32, #tpu.memory_space<vmem>>, vector<1x8x256xf32>
    %91 = vector.shape_cast %90 : vector<1x8x256xf32> to vector<8x256xf32>
    %92 = vector.shape_cast %89 : vector<8x256xf32> to vector<1x8x256xf32>
    tpu.vector_store %arg5[%c1_27, %c0_28, %c0_29], %92 {strides = array<i32>} : memref<2x8x256xf32, #tpu.memory_space<vmem>>, vector<1x8x256xf32>,
    return
  }
  func.func @transform_0(%arg0: i32) -> (i32, i32, i32, i32) {
    %c0_i32 = arith.constant 0 : i32
    %c0_i32_0 = arith.constant 0 : i32
    %c0_i32_1 = arith.constant 0 : i32
    %c0_i32_2 = arith.constant 0 : i32
    %c0_i32_3 = arith.constant 0 : i32
    return %c0_i32, %c0_i32_0, %c0_i32_1, %c0_i32_2 : i32, i32, i32, i32
  }
  func.func @transform_1(%arg0: i32) -> (i32, i32) {
    %c0_i32 = arith.constant 0 : i32
    %c0_i32_0 = arith.constant 0 : i32
    %c0_i32_1 = arith.constant 0 : i32
    return %c0_i32, %c0_i32_0 : i32, i32
  }
  func.func @transform_2(%arg0: i32) -> (i32, i32) {
    %c0_i32 = arith.constant 0 : i32
    %c0_i32_0 = arith.constant 0 : i32
    %c0_i32_1 = arith.constant 0 : i32
    return %c0_i32, %c0_i32_0 : i32, i32
  }
  func.func @transform_3(%arg0: i32) -> (i32, i32) {
    %c0_i32 = arith.constant 0 : i32
    %c0_i32_0 = arith.constant 0 : i32
    %c0_i32_1 = arith.constant 0 : i32
    return %c0_i32, %c0_i32_0 : i32, i32
  }
  func.func @transform_4(%arg0: i32) -> (i32, i32, i32) {
    %c0_i32 = arith.constant 0 : i32
    %c0_i32_0 = arith.constant 0 : i32
    %c0_i32_1 = arith.constant 0 : i32
    %c0_i32_2 = arith.constant 0 : i32
    return %c0_i32, %c0_i32_0, %c0_i32_1 : i32, i32, i32
  }
}

</mosaic_0001>

<bundles_post_ra>
// kernel: tpu_custom_call.1
= control target key start
LH: loop header
LB: loop body
LE: loop exit
PB: predicated region body
PF: predicated region fallthrough
CT: control target
= control target key end

     0   :  { %vm127_vm0 = vcmask 1045504   ;;  %s3326_s7 = smov 4   ;;  %s7807_s0 = inlined_call_operand.vmem [shape: f32[2,20,20,4], index: 0, kind: input, shape index: {}]   ;;  %s7808_s1 = inlined_call_operand.vmem [shape: f32[8,36], index: 1, kind: input, shape index: {}]   ;;  %s7809_s2 = inlined_call_operand.vmem [shape: f32[8,1], index: 2, kind: input, shape index: {}]   ;;  %s7810_s3 = inlined_call_operand.vmem [shape: f32[8,1], index: 3, kind: input, shape index: {}]   ;;  %s7811_s4 = inlined_call_operand.hbm [shape: f32[2,8,256], index: 4, kind: output, shape index: {}]  }
   0x1   :  { %v3365_v0 = vld [vmem:[%s7807_s0 + $0x30] sm:$0xff]  ;;  %v3370_v1 = vld [vmem:[%s7807_s0 + $0x38] sm:$0xff]  ;;  %v3382_v5 = vld [vmem:[%s7807_s0 + $0x20] sm:$0xff] }
   0x2   :  { %v3375_v2 = vld [vmem:[%s7807_s0 + $0x18] sm:$0xff]  ;;  %v138_v3 = vrot.slane %v3365_v0, 2  ;;  %v139_v4 = vrot.slane %v3370_v1, 2  ;;  %v3388_v7 = vld [vmem:[%s7807_s0] sm:$0xff]  ;;  %v3393_v8 = vld [vmem:[%s7807_s0 + $0x8] sm:$0xff]  ;;  %v134_v9 = vrot.slane %v3382_v5, 2 }
   0x3   :  { %v133_v6 = vrot.slane %v3375_v2, 2  ;;  %v128_v10 = vrot.slane %v3388_v7, 2  ;;  %v129_v11 = vrot.slane %v3393_v8, 2  ;;  %v3401_v12 = vld [vmem:[%s7807_s0 + $0x40] sm:$0xf]  ;;  %v3438_v25 = vld [vmem:[%s7807_s0 + $0x68] sm:$0xff] }
   0x4   :  { %v3404_v13 = vsel %vm127_vm0, %v138_v3, %v139_v4  ;;  %v3409_v14 = vld [vmem:[%s7807_s0 + $0x28] sm:$0xf]  ;;  %v3414_v15 = vld [vmem:[%s7807_s0 + $0x10] sm:$0xf]  ;;  %v141_v18 = vrot.slane %v3401_v12, 2  ;;  %v3433_v24 = vld [vmem:[%s7807_s0 + $0x60] sm:$0xff] }
   0x5   :  { %349 = vrot.lane.b32.xlu2 %v3404_v13, %s3326_s7  ;;  %v135_v16 = vsel %vm127_vm0, %v133_v6, %v134_v9  ;;  %v130_v17 = vsel %vm127_vm0, %v128_v10, %v129_v11  ;;  %v136_v19 = vrot.slane %v3409_v14, 2  ;;  %v131_v20 = vrot.slane %v3414_v15, 2  ;;  %v3443_v26 = vld [vmem:[%s7807_s0 + $0x50] sm:$0xff]  ;;  %v3448_v27 = vld [vmem:[%s7807_s0 + $0x58] sm:$0xf]  ;;  %v3453_v28 = vld [vmem:[%s7807_s0 + $0x48] sm:$0xff] }
   0x6   :  { %345 = vrot.lane.b32.xlu1 %v135_v16, %s3326_s7  ;;  %341 = vrot.lane.b32.xlu0 %v130_v17, %s3326_s7  ;;  %v3426_v21 = vsel %vm127_vm0, %v139_v4, %v141_v18 }
   0x7   :  { %v137_v22 = vsel %vm127_vm0, %v134_v9, %v136_v19  ;;  %v132_v23 = vsel %vm127_vm0, %v129_v11, %v131_v20 }
   0x8   :  { %9 = vsyncpa [#allocation3], 0  ;;  %v148_v29 = vrot.slane %v3433_v24, 2  ;;  %v149_v30 = vrot.slane %v3438_v25, 2  ;;  %v144_v31 = vrot.slane %v3443_v26, 2  ;;  %v146_v32 = vrot.slane %v3448_v27, 2 }
   0x9   :  { %v143_v33 = vrot.slane %v3453_v28, 2  ;;  %v3476_v37 = vld [vmem:[%s7807_s0 + $0x80] sm:$0xff]  ;;  %v3481_v38 = vld [vmem:[%s7807_s0 + $0x88] sm:$0xf]  ;;  %v3486_v39 = vld [vmem:[%s7807_s0 + $0x78] sm:$0xff]  ;;  %vm208_vm1 = vcmask 1043456  }
   0xa   :  { %v3465_v34 = vsel %vm127_vm0, %v148_v29, %v149_v30  ;;  %v3468_v35 = vsel %vm127_vm0, %v144_v31, %v146_v32  ;;  %v3491_v40 = vld [vmem:[%s7807_s0 + $0x70] sm:$0xf]  ;;  %v154_v41 = vrot.slane %v3476_v37, 2  ;;  %v156_v42 = vrot.slane %v3481_v38, 2  ;;  %v3515_v48 = vld [vmem:[%s7807_s0 + $0xa8] sm:$0xff]  ;;  %v3525_v50 = vld [vmem:[%s7807_s0 + $0x98] sm:$0xff] }
   0xb   :  { %v3471_v36 = vsel %vm127_vm0, %v143_v33, %v144_v31  ;;  %v153_v43 = vrot.slane %v3486_v39, 2  ;;  %v151_v44 = vrot.slane %v3491_v40, 2  ;;  %v3520_v49 = vld [vmem:[%s7807_s0 + $0xb0] sm:$0xff]  ;;  %v3530_v51 = vld [vmem:[%s7807_s0 + $0xa0] sm:$0xf]  ;;  %v163_v53 = vrot.slane %v3515_v48, 2 }
   0xc   :  { %v3504_v45 = vsel %vm127_vm0, %v154_v41, %v156_v42  ;;  %v3535_v52 = vld [vmem:[%s7807_s0 + $0x90] sm:$0xff]  ;;  %v164_v54 = vrot.slane %v3520_v49, 2  ;;  %v159_v55 = vrot.slane %v3525_v50, 2  ;;  %v161_v56 = vrot.slane %v3530_v51, 2  ;;  %v3560_v61 = vld [vmem:[%s7807_s0 + $0xc8] sm:$0xff]  ;;  %v3570_v63 = vld [vmem:[%s7807_s0 + $0xc0] sm:$0xff] }
   0xd   :  { %351 = vrot.lane.b32.xlu2 %v3426_v21, %s3326_s7  ;;  %7980 = vst [vmem:[#allocation5_spill] sm:$0xff] %v3504_v45  ;;  %v3507_v46 = vsel %vm127_vm0, %v153_v43, %v154_v41  ;;  %v3510_v47 = vsel %vm127_vm0, %v149_v30, %v151_v44  ;;  %v158_v57 = vrot.slane %v3535_v52, 2  ;;  %v3565_v62 = vld [vmem:[%s7807_s0 + $0xd0] sm:$0xf]  ;;  %v3575_v3 = vld [vmem:[%s7807_s0 + $0xb8] sm:$0xf] }
   0xe   :  { %347 = vrot.lane.b32.xlu1 %v137_v22, %s3326_s7  ;;  %343 = vrot.lane.b32.xlu0 %v132_v23, %s3326_s7  ;;  %7981 = vst [vmem:[#allocation6_spill] sm:$0xff] %v3507_v46  ;;  %v3549_v58 = vsel %vm127_vm0, %v163_v53, %v164_v54  ;;  %v3552_v59 = vsel %vm127_vm0, %v159_v55, %v161_v56  ;;  %v169_v4 = vrot.slane %v3560_v61, 2  ;;  %v171_v6 = vrot.slane %v3565_v62, 2  ;;  %v3599_v18 = vld [vmem:[%s7807_s0 + $0xf0] sm:$0xff]  ;;  %v3604_v19 = vld [vmem:[%s7807_s0 + $0xf8] sm:$0xff]  ;;  %s3327_s11 = smov 8  }
   0xf   :  { %7982 = vst [vmem:[#allocation7_spill] sm:$0xff] %v3549_v58  ;;  %v3555_v60 = vsel %vm127_vm0, %v158_v57, %v159_v55  ;;  %v168_v9 = vrot.slane %v3570_v63, 2  ;;  %v166_v10 = vrot.slane %v3575_v3, 2  ;;  %v3609_v20 = vld [vmem:[%s7807_s0 + $0xe0] sm:$0xff]  ;;  %v3614_v22 = vld [vmem:[%s7807_s0 + $0xe8] sm:$0xf] }
  0x10   :  { %7983 = vst [vmem:[#allocation8_spill] sm:$0xff] %v3552_v59  ;;  %v3588_v11 = vsel %vm127_vm0, %v169_v4, %v171_v6  ;;  %v3619_v23 = vld [vmem:[%s7807_s0 + $0xd8] sm:$0xff]  ;;  %v178_v29 = vrot.slane %v3599_v18, 2  ;;  %v179_v30 = vrot.slane %v3604_v19, 2  ;;  %v174_v31 = vrot.slane %v3609_v20, 2  ;;  %v3644_v44 = vld [vmem:[%s7807_s0 + $0x110] sm:$0xff] }
  0x11   :  { %7984 = vst [vmem:[#allocation9_spill] sm:$0xff] %v3588_v11  ;;  %v3591_v16 = vsel %vm127_vm0, %v168_v9, %v169_v4  ;;  %v3594_v17 = vsel %vm127_vm0, %v164_v54, %v166_v10  ;;  %v176_v32 = vrot.slane %v3614_v22, 2  ;;  %v173_v33 = vrot.slane %v3619_v23, 2  ;;  %v3649_v53 = vld [vmem:[%s7807_s0 + $0x118] sm:$0xf]  ;;  %v3654_v54 = vld [vmem:[%s7807_s0 + $0x108] sm:$0xff] }
  0x12   :  { %7985 = vst [vmem:[#allocation10_spill] sm:$0xff] %v3591_v16  ;;  %v3633_v41 = vsel %vm127_vm0, %v178_v29, %v179_v30  ;;  %v3659_v55 = vld [vmem:[%s7807_s0 + $0x100] sm:$0xf]  ;;  %v184_v56 = vrot.slane %v3644_v44, 2  ;;  %v186_v57 = vrot.slane %v3649_v53, 2  ;;  %v183_v4 = vrot.slane %v3654_v54, 2 }
  0x13   :  { %7986 = vst [vmem:[#allocation11_spill] sm:$0xff] %v3594_v17  ;;  %v3636_v42 = vsel %vm127_vm0, %v174_v31, %v176_v32  ;;  %v3639_v43 = vsel %vm127_vm0, %v173_v33, %v174_v31  ;;  %v181_v6 = vrot.slane %v3659_v55, 2  ;;  %v3683_v31 = vld [vmem:[%s7807_s0 + $0x138] sm:$0xff]  ;;  %v3688_v32 = vld [vmem:[%s7807_s0 + $0x140] sm:$0xff]  ;;  %v3693_v33 = vld [vmem:[%s7807_s0 + $0x128] sm:$0xff]  ;;  %s3328_s12 = smov 12  }
  0x14   :  { %7987 = vst [vmem:[#allocation12_spill] sm:$0xff] %v3633_v41  ;;  %v3672_v9 = vsel %vm127_vm0, %v184_v56, %v186_v57  ;;  %v3675_v10 = vsel %vm127_vm0, %v183_v4, %v184_v56  ;;  %v3703_v56 = vld [vmem:[%s7807_s0 + $0x120] sm:$0xff]  ;;  %v193_v57 = vrot.slane %v3683_v31, 2  ;;  %v194_v4 = vrot.slane %v3688_v32, 2  ;;  %s3329_s21 = smov 16   ;;  %s3330_s26 = smov 20  }
  0x15   :  { %357 = vrot.lane.b32.xlu2 %v3465_v34, %s3326_s7  ;;  %7988 = vst [vmem:[#allocation13_spill] sm:$0xff] %v3636_v42  ;;  %v3678_v29 = vsel %vm127_vm0, %v179_v30, %v181_v6  ;;  %v3698_v30 = vld [vmem:[%s7807_s0 + $0x130] sm:$0xf]  ;;  %v189_v6 = vrot.slane %v3693_v33, 2  ;;  %s3331_s27 = smov 24   ;;  %s3332_s13 = smov 28  }
  0x16   :  { %355 = vrot.lane.b32.xlu1 %v3468_v35, %s3326_s7  ;;  %353 = vrot.lane.b32.xlu0 %v3471_v36, %s3326_s7  ;;  %7989 = vst [vmem:[#allocation14_spill] sm:$0xff] %v3639_v43  ;;  %s3333_s18 = smov 32   ;;  %vm1109_vm2 = vcmask 31744   ;;  %vm1142_vm3 = vcmask 64512   ;;  %vm1175_vm4 = vcmask 97280   ;;  %vm1208_vm5 = vcmask 130048  }
  0x17   :  { %7990 = vst [vmem:[#allocation15_spill] sm:$0xff] %v3672_v9  ;;  %vm1241_vm6 = vcmask 162816   ;;  %vm1274_vm7 = vcmask 195584   ;;  %vm1307_vm8 = vcmask 228352   ;;  %vm1373_vm9 = vcmask 293888   ;;  %s3336_s10 = smov 256  }
  0x18   :  { %7991 = vst [vmem:[#allocation16_spill] sm:$0xff] %v3675_v10  ;;  %vm1340_vm10 = vcmask 261120  }
  0x19   :  { %7992 = vst [vmem:[#allocation17_spill] sm:$0xff] %v3678_v29 }
  0x1d   :  { %363 = vrot.lane.b32.xlu2 %v3504_v45, %s3326_s7 }
  0x1e   :  { %361 = vrot.lane.b32.xlu1 %v3507_v46, %s3326_s7  ;;  %359 = vrot.lane.b32.xlu0 %v3510_v47, %s3326_s7 }
  0x25   :  { %369 = vrot.lane.b32.xlu2 %v3549_v58, %s3326_s7 }
  0x26   :  { %367 = vrot.lane.b32.xlu1 %v3552_v59, %s3326_s7  ;;  %365 = vrot.lane.b32.xlu0 %v3555_v60, %s3326_s7 }
  0x2d   :  { %375 = vrot.lane.b32.xlu2 %v3588_v11, %s3326_s7  ;;  %v3733_v11 = vld [vmem:[%s7807_s0 + $0x160] sm:$0xf] }
  0x2e   :  { %373 = vrot.lane.b32.xlu1 %v3591_v16, %s3326_s7  ;;  %371 = vrot.lane.b32.xlu0 %v3594_v17, %s3326_s7  ;;  %v3717_v16 = vsel %vm127_vm0, %v193_v57, %v194_v4  ;;  %v3738_v57 = vld [vmem:[%s7807_s0 + $0x150] sm:$0xff] }
  0x2f   :  { %7993 = vst [vmem:[#allocation18_spill] sm:$0xff] %v3717_v16 }
  0x35   :  { %381 = vrot.lane.b32.xlu2 %v3633_v41, %s3326_s7  ;;  %v188_v41 = vrot.slane %v3703_v56, 2 }
  0x36   :  { %379 = vrot.lane.b32.xlu1 %v3636_v42, %s3326_s7  ;;  %377 = vrot.lane.b32.xlu0 %v3639_v43, %s3326_s7  ;;  %v191_v42 = vrot.slane %v3698_v30, 2  ;;  %v198_v43 = vrot.slane %v3738_v57, 2 }
  0x3d   :  { %387 = vrot.lane.b32.xlu2 %v3672_v9, %s3326_s7  ;;  %v3720_v9 = vsel %vm127_vm0, %v189_v6, %v191_v42 }
  0x3e   :  { %385 = vrot.lane.b32.xlu1 %v3675_v10, %s3326_s7  ;;  %383 = vrot.lane.b32.xlu0 %v3678_v29, %s3326_s7  ;;  %7994 = vst [vmem:[#allocation19_spill] sm:$0xff] %v3720_v9  ;;  %v3723_v10 = vsel %vm127_vm0, %v188_v41, %v189_v6  ;;  %v3728_v29 = vld [vmem:[%s7807_s0 + $0x158] sm:$0xff]  ;;  %v3743_v41 = vld [vmem:[%s7807_s0 + $0x148] sm:$0xf]  ;;  %v201_v6 = vrot.slane %v3733_v11, 2 }
  0x3f   :  { %7995 = vst [vmem:[#allocation20_spill] sm:$0xff] %v3723_v10  ;;  %v199_v42 = vrot.slane %v3728_v29, 2  ;;  %v196_v59 = vrot.slane %v3743_v41, 2 }
  0x41   :  { %v3756_v58 = vsel %vm127_vm0, %v199_v42, %v201_v6  ;;  %v3759_v17 = vsel %vm127_vm0, %v198_v43, %v199_v42  ;;  %v3777_v6 = vld [vmem:[%s7807_s0 + $0x168] sm:$0xff]  ;;  %v210_v43 = vrot.slane %v3393_v8, 4  ;;  %v217_v8 = vrot.slane %v3409_v14, 4 }
  0x42   :  { %7996 = vst [vmem:[#allocation21_spill] sm:$0xff] %v3756_v58  ;;  %v203_v46 = vrot.slane %v3777_v6, 2  ;;  %v225_v14 = vrot.slane %v3443_v26, 4 }
  0x43   :  { %7997 = vst [vmem:[#allocation22_spill] sm:$0xff] %v3759_v17 }
  0x45   :  { %393 = vrot.lane.b32.xlu2 %v3717_v16, %s3326_s7  ;;  %v3762_v16 = vsel %vm127_vm0, %v194_v4, %v196_v59  ;;  %v209_v59 = vrot.slane %v3388_v7, 4  ;;  %v215_v7 = vrot.slane %v3382_v5, 4  ;;  %v224_v5 = vrot.slane %v3453_v28, 4 }
  0x46   :  { %391 = vrot.lane.b32.xlu1 %v3720_v9, %s3326_s7  ;;  %389 = vrot.lane.b32.xlu0 %v3723_v10, %s3326_s7  ;;  %7998 = vst [vmem:[#allocation23_spill] sm:$0xff] %v3762_v16  ;;  %v3767_v9 = vld [vmem:[%s7807_s0 + $0x170] sm:$0xff]  ;;  %v3772_v10 = vld [vmem:[%s7807_s0 + $0x178] sm:$0xf] }
  0x47   :  { %v204_v4 = vrot.slane %v3767_v9, 2  ;;  %v206_v42 = vrot.slane %v3772_v10, 2  ;;  %v211_v45 = vsel %vm208_vm1, %v209_v59, %v210_v43  ;;  %v214_v59 = vrot.slane %v3375_v2, 4 }
  0x48   :  { %v220_v2 = vrot.slane %v3370_v1, 4 }
  0x4d   :  { %399 = vrot.lane.b32.xlu2 %v3756_v58, %s3326_s7  ;;  %v3792_v58 = vsel %vm127_vm0, %v204_v4, %v206_v42  ;;  %v212_v42 = vrot.slane %v3414_v15, 4  ;;  %v222_v15 = vrot.slane %v3401_v12, 4  ;;  %v230_v12 = vrot.slane %v3438_v25, 4 }
  0x4e   :  { %397 = vrot.lane.b32.xlu1 %v3759_v17, %s3326_s7  ;;  %395 = vrot.lane.b32.xlu0 %v3762_v16, %s3326_s7  ;;  %7999 = vst [vmem:[#allocation24_spill] sm:$0xff] %v3792_v58  ;;  %v3795_v17 = vsel %vm127_vm0, %v203_v46, %v204_v4  ;;  %v218_v46 = vsel %vm208_vm1, %v215_v7, %v217_v8 }
  0x4f   :  { %8000 = vst [vmem:[#allocation25_spill] sm:$0xff] %v3795_v17  ;;  %v216_v4 = vsel %vm208_vm1, %v214_v59, %v215_v7  ;;  %v219_v7 = vrot.slane %v3365_v0, 4  ;;  %v3823_v8 = vsel %vm208_vm1, %v220_v2, %v222_v15 }
  0x51   :  { %v3826_v59 = vsel %vm208_vm1, %v219_v7, %v220_v2 }
  0x55   :  { %437 = vrot.lane.b32.xlu2 %v211_v45, %s3327_s11  ;;  %v213_v45 = vsel %vm208_vm1, %v210_v43, %v212_v42  ;;  %v3820_v43 = vsel %vm208_vm1, %v224_v5, %v225_v14  ;;  %v232_v42 = vrot.slane %v3491_v40, 4  ;;  %v240_v40 = vrot.slane %v3525_v50, 4 }
  0x56   :  { %403 = vrot.lane.b32.xlu1 %v3792_v58, %s3326_s7  ;;  %401 = vrot.lane.b32.xlu0 %v3795_v17, %s3326_s7 }
  0x57   :  { %v3841_v5 = vsel %vm208_vm1, %v230_v12, %v232_v42  ;;  %v234_v42 = vrot.slane %v3486_v39, 4 }
  0x5d   :  { %443 = vrot.lane.b32.xlu2 %v218_v46, %s3327_s11 }
  0x5e   :  { %441 = vrot.lane.b32.xlu1 %v216_v4, %s3327_s11  ;;  %439 = vrot.lane.b32.xlu0 %v213_v45, %s3327_s11  ;;  %v229_v4 = vrot.slane %v3433_v24, 4  ;;  %v227_v45 = vrot.slane %v3448_v27, 4  ;;  %v239_v27 = vrot.slane %v3535_v52, 4 }
  0x5f   :  { %v3814_v58 = vpop.permute.xlu2 %349 }
  0x60   :  { %8001 = vst [vmem:[#allocation26_spill] sm:$0xff] %v3814_v58  ;;  %v3844_v2 = vsel %vm208_vm1, %v229_v4, %v230_v12  ;;  %v3847_v15 = vsel %vm208_vm1, %v225_v14, %v227_v45  ;;  %v235_v12 = vrot.slane %v3476_v37, 4  ;;  %v237_v14 = vrot.slane %v3481_v38, 4 }
  0x61   :  { %8003 = vst [vmem:[#allocation28_spill] sm:$0xff] %v3844_v2  ;;  %v3863_v4 = vsel %vm208_vm1, %v239_v27, %v240_v40  ;;  %v245_v38 = vrot.slane %v3520_v49, 4  ;;  %v247_v27 = vrot.slane %v3575_v3, 4  ;;  %v255_v3 = vrot.slane %v3609_v20, 4 }
  0x62   :  { %8005 = vst [vmem:[#allocation30_spill] sm:$0xff] %v3863_v4  ;;  %v3866_v45 = vsel %vm208_vm1, %v235_v12, %v237_v14  ;;  %v3869_v58 = vsel %vm208_vm1, %v234_v42, %v235_v12  ;;  %v244_v14 = vrot.slane %v3515_v48, 4  ;;  %v242_v12 = vrot.slane %v3530_v51, 4 }
  0x63   :  { %8006 = vst [vmem:[#allocation31_spill] sm:$0xff] %v3866_v45  ;;  %v254_v51 = vrot.slane %v3619_v23, 4 }
  0x65   :  { %449 = vrot.lane.b32.xlu2 %v3820_v43, %s3327_s11 }
  0x66   :  { %447 = vrot.lane.b32.xlu1 %v3823_v8, %s3327_s11  ;;  %445 = vrot.lane.b32.xlu0 %v3826_v59, %s3327_s11 }
  0x67   :  { %v3836_v46 = vpop.permute.xlu2 %351 }
  0x68   :  { %8002 = vst [vmem:[#allocation27_spill] sm:$0xff] %v3836_v46 }
  0x6d   :  { %455 = vrot.lane.b32.xlu2 %v3841_v5, %s3327_s11 }
  0x6e   :  { %453 = vrot.lane.b32.xlu1 %v3844_v2, %s3327_s11  ;;  %451 = vrot.lane.b32.xlu0 %v3847_v15, %s3327_s11  ;;  %v3894_v2 = vsel %vm208_vm1, %v240_v40, %v242_v12  ;;  %v252_v40 = vrot.slane %v3565_v62, 4  ;;  %v260_v62 = vrot.slane %v3604_v19, 4 }
  0x6f   :  { %v3857_v7 = vpop.permute.xlu2 %357 }
  0x70   :  { %8004 = vst [vmem:[#allocation29_spill] sm:$0xff] %v3857_v7 }
  0x75   :  { %461 = vrot.lane.b32.xlu2 %v3863_v4, %s3327_s11  ;;  %v3888_v4 = vsel %vm208_vm1, %v245_v38, %v247_v27 }
  0x76   :  { %459 = vrot.lane.b32.xlu1 %v3866_v45, %s3327_s11  ;;  %457 = vrot.lane.b32.xlu0 %v3869_v58, %s3327_s11  ;;  %8010 = vst [vmem:[#allocation35_spill] sm:$0xff] %v3888_v4  ;;  %v3891_v45 = vsel %vm208_vm1, %v244_v14, %v245_v38  ;;  %v250_v38 = vrot.slane %v3560_v61, 4  ;;  %v249_v14 = vrot.slane %v3570_v63, 4 }
  0x77   :  { %v3879_v46 = vpop.permute.xlu2 %363  ;;  %8011 = vst [vmem:[#allocation36_spill] sm:$0xff] %v3891_v45 }
  0x78   :  { %8007 = vst [vmem:[#allocation32_spill] sm:$0xff] %v3879_v46  ;;  %v3883_v42 = vpop.permute.xlu1 %345  ;;  %v3885_v7 = vpop.permute.xlu0 %341  ;;  %v3917_v46 = vsel %vm208_vm1, %v250_v38, %v252_v40  ;;  %v259_v40 = vrot.slane %v3599_v18, 4 }
  0x79   :  { %8008 = vst [vmem:[#allocation33_spill] sm:$0xff] %v3883_v42  ;;  %v3914_v42 = vsel %vm208_vm1, %v254_v51, %v255_v3  ;;  %v262_v51 = vrot.slane %v3659_v55, 4  ;;  %v270_v55 = vrot.slane %v3693_v33, 4 }
  0x7a   :  { %8009 = vst [vmem:[#allocation34_spill] sm:$0xff] %v3885_v7 }
  0x7b   :  { %8015 = vst [vmem:[#allocation40_spill] sm:$0xff] %v3914_v42 }
  0x7c   :  { %8016 = vst [vmem:[#allocation41_spill] sm:$0xff] %v3917_v46 }
  0x7d   :  { %467 = vrot.lane.b32.xlu2 %v3888_v4, %s3327_s11 }
  0x7e   :  { %465 = vrot.lane.b32.xlu1 %v3891_v45, %s3327_s11  ;;  %463 = vrot.lane.b32.xlu0 %v3894_v2, %s3327_s11  ;;  %v3920_v45 = vsel %vm208_vm1, %v249_v14, %v250_v38  ;;  %v257_v38 = vrot.slane %v3614_v22, 4  ;;  %v269_v22 = vrot.slane %v3703_v56, 4 }
  0x7f   :  { %v3904_v27 = vpop.permute.xlu2 %369  ;;  %8017 = vst [vmem:[#allocation42_spill] sm:$0xff] %v3920_v45 }
  0x80   :  { %8012 = vst [vmem:[#allocation37_spill] sm:$0xff] %v3904_v27  ;;  %v3909_v12 = vpop.permute.xlu1 %347  ;;  %v3911_v7 = vpop.permute.xlu0 %343  ;;  %v3939_v27 = vsel %vm208_vm1, %v260_v62, %v262_v51 }
  0x81   :  { %8013 = vst [vmem:[#allocation38_spill] sm:$0xff] %v3909_v12 }
  0x82   :  { %8014 = vst [vmem:[#allocation39_spill] sm:$0xff] %v3911_v7 }
  0x83   :  { %8021 = vst [vmem:[#allocation46_spill] sm:$0xff] %v3939_v27 }
  0x85   :  { %473 = vrot.lane.b32.xlu2 %v3914_v42, %s3327_s11  ;;  %v3945_v42 = vsel %vm208_vm1, %v255_v3, %v257_v38  ;;  %v267_v3 = vrot.slane %v3649_v53, 4  ;;  %v275_v53 = vrot.slane %v3688_v32, 4 }
  0x86   :  { %471 = vrot.lane.b32.xlu1 %v3917_v46, %s3327_s11  ;;  %469 = vrot.lane.b32.xlu0 %v3920_v45, %s3327_s11  ;;  %v3942_v46 = vsel %vm208_vm1, %v259_v40, %v260_v62  ;;  %v265_v62 = vrot.slane %v3644_v44, 4  ;;  %v264_v40 = vrot.slane %v3654_v54, 4 }
  0x87   :  { %v3930_v7 = vpop.permute.xlu2 %375  ;;  %8022 = vst [vmem:[#allocation47_spill] sm:$0xff] %v3942_v46 }
  0x88   :  { %8018 = vst [vmem:[#allocation43_spill] sm:$0xff] %v3930_v7  ;;  %v3934_v14 = vpop.permute.xlu1 %355  ;;  %v3936_v12 = vpop.permute.xlu0 %353 }
  0x89   :  { %8019 = vst [vmem:[#allocation44_spill] sm:$0xff] %v3934_v14  ;;  %v3968_v14 = vsel %vm208_vm1, %v265_v62, %v267_v3  ;;  %v274_v3 = vrot.slane %v3683_v31, 4 }
  0x8a   :  { %8020 = vst [vmem:[#allocation45_spill] sm:$0xff] %v3936_v12  ;;  %v3965_v12 = vsel %vm208_vm1, %v269_v22, %v270_v55  ;;  %v277_v22 = vrot.slane %v3743_v41, 4  ;;  %v285_v41 = vrot.slane %v3767_v9, 4 }
  0x8b   :  { %8026 = vst [vmem:[#allocation51_spill] sm:$0xff] %v3965_v12 }
  0x8c   :  { %8027 = vst [vmem:[#allocation52_spill] sm:$0xff] %v3968_v14 }
  0x8d   :  { %479 = vrot.lane.b32.xlu2 %v3939_v27, %s3327_s11 }
  0x8e   :  { %477 = vrot.lane.b32.xlu1 %v3942_v46, %s3327_s11  ;;  %475 = vrot.lane.b32.xlu0 %v3945_v42, %s3327_s11  ;;  %v3971_v46 = vsel %vm208_vm1, %v264_v40, %v265_v62  ;;  %v272_v62 = vrot.slane %v3698_v30, 4  ;;  %v284_v30 = vrot.slane %v3777_v6, 4 }
  0x8f   :  { %v3955_v51 = vpop.permute.xlu2 %381  ;;  %8028 = vst [vmem:[#allocation53_spill] sm:$0xff] %v3971_v46 }
  0x90   :  { %8023 = vst [vmem:[#allocation48_spill] sm:$0xff] %v3955_v51  ;;  %v3960_v38 = vpop.permute.xlu1 %361  ;;  %v3962_v7 = vpop.permute.xlu0 %359 }
  0x91   :  { %8024 = vst [vmem:[#allocation49_spill] sm:$0xff] %v3960_v38  ;;  %v3990_v38 = vsel %vm208_vm1, %v275_v53, %v277_v22 }
  0x92   :  { %8025 = vst [vmem:[#allocation50_spill] sm:$0xff] %v3962_v7 }
  0x93   :  { %8032 = vst [vmem:[#allocation57_spill] sm:$0xff] %v3990_v38 }
  0x95   :  { %485 = vrot.lane.b32.xlu2 %v3965_v12, %s3327_s11  ;;  %v3996_v12 = vsel %vm208_vm1, %v270_v55, %v272_v62  ;;  %v282_v55 = vrot.slane %v3733_v11, 4 }
  0x96   :  { %483 = vrot.lane.b32.xlu1 %v3968_v14, %s3327_s11  ;;  %481 = vrot.lane.b32.xlu0 %v3971_v46, %s3327_s11  ;;  %v3993_v14 = vsel %vm208_vm1, %v274_v3, %v275_v53  ;;  %v280_v53 = vrot.slane %v3728_v29, 4  ;;  %v279_v3 = vrot.slane %v3738_v57, 4 }
  0x97   :  { %v3981_v51 = vpop.permute.xlu2 %387  ;;  %8033 = vst [vmem:[#allocation58_spill] sm:$0xff] %v3993_v14 }
  0x98   :  { %8029 = vst [vmem:[#allocation54_spill] sm:$0xff] %v3981_v51  ;;  %v3985_v40 = vpop.permute.xlu1 %367  ;;  %v3987_v7 = vpop.permute.xlu0 %365 }
  0x99   :  { %8030 = vst [vmem:[#allocation55_spill] sm:$0xff] %v3985_v40  ;;  %v4019_v40 = vsel %vm208_vm1, %v280_v53, %v282_v55 }
  0x9a   :  { %8031 = vst [vmem:[#allocation56_spill] sm:$0xff] %v3987_v7  ;;  %v4016_v7 = vsel %vm208_vm1, %v284_v30, %v285_v41  ;;  %v287_v30 = vrot.slane %v3772_v10, 4 }
  0x9b   :  { %8037 = vst [vmem:[#allocation62_spill] sm:$0xff] %v4016_v7 }
  0x9c   :  { %8038 = vst [vmem:[#allocation63_spill] sm:$0xff] %v4019_v40 }
  0x9d   :  { %491 = vrot.lane.b32.xlu2 %v3990_v38, %s3327_s11 }
  0x9e   :  { %489 = vrot.lane.b32.xlu1 %v3993_v14, %s3327_s11  ;;  %487 = vrot.lane.b32.xlu0 %v3996_v12, %s3327_s11  ;;  %v4022_v14 = vsel %vm208_vm1, %v279_v3, %v280_v53  ;;  %v4038_v53 = vsel %vm208_vm1, %v285_v41, %v287_v30 }
  0x9f   :  { %v4006_v22 = vpop.permute.xlu2 %393  ;;  %8039 = vst [vmem:[#allocation64_spill] sm:$0xff] %v4022_v14 }
  0xa0   :  { %8034 = vst [vmem:[#allocation59_spill] sm:$0xff] %v4006_v22  ;;  %v4011_v62 = vpop.permute.xlu1 %373  ;;  %v4013_v51 = vpop.permute.xlu0 %371 }
  0xa1   :  { %8035 = vst [vmem:[#allocation60_spill] sm:$0xff] %v4011_v62 }
  0xa2   :  { %8036 = vst [vmem:[#allocation61_spill] sm:$0xff] %v4013_v51 }
  0xa3   :  { %8043 = vst [vmem:[#allocation68_spill] sm:$0xff] %v4038_v53 }
  0xa5   :  { %497 = vrot.lane.b32.xlu2 %v4016_v7, %s3327_s11 }
  0xa6   :  { %495 = vrot.lane.b32.xlu1 %v4019_v40, %s3327_s11  ;;  %493 = vrot.lane.b32.xlu0 %v4022_v14, %s3327_s11 }
  0xa7   :  { %v4030_v11 = vpop.permute.xlu2 %399 }
  0xa8   :  { %8040 = vst [vmem:[#allocation65_spill] sm:$0xff] %v4030_v11  ;;  %v4033_v62 = vpop.permute.xlu1 %379  ;;  %v4035_v55 = vpop.permute.xlu0 %377 }
  0xa9   :  { %8041 = vst [vmem:[#allocation66_spill] sm:$0xff] %v4033_v62 }
  0xaa   :  { %8042 = vst [vmem:[#allocation67_spill] sm:$0xff] %v4035_v55 }
  0xad   :  { %535 = vrot.lane.b32.xlu2 %v3370_v1, %s3328_s12 }
  0xae   :  { %533 = vrot.lane.b32.xlu1 %v3365_v0, %s3328_s12  ;;  %499 = vrot.lane.b32.xlu0 %v4038_v53, %s3327_s11 }
  0xaf   :  { %v4046_v3 = vpop.permute.xlu2 %437 }
  0xb0   :  { %8044 = vst [vmem:[#allocation69_spill] sm:$0xff] %v4046_v3  ;;  %v4048_v10 = vpop.permute.xlu1 %385  ;;  %v4050_v62 = vpop.permute.xlu0 %383 }
  0xb1   :  { %8045 = vst [vmem:[#allocation70_spill] sm:$0xff] %v4048_v10 }
  0xb2   :  { %8046 = vst [vmem:[#allocation71_spill] sm:$0xff] %v4050_v62 }
  0xb5   :  { %541 = vrot.lane.b32.xlu2 %v3433_v24, %s3328_s12 }
  0xb6   :  { %539 = vrot.lane.b32.xlu1 %v3443_v26, %s3328_s12  ;;  %537 = vrot.lane.b32.xlu0 %v3453_v28, %s3328_s12 }
  0xb7   :  { %v4058_v1 = vpop.permute.xlu2 %443 }
  0xb8   :  { %8047 = vst [vmem:[#allocation72_spill] sm:$0xff] %v4058_v1  ;;  %v4060_v0 = vpop.permute.xlu1 %391  ;;  %v4062_v41 = vpop.permute.xlu0 %389 }
  0xb9   :  { %8048 = vst [vmem:[#allocation73_spill] sm:$0xff] %v4060_v0 }
  0xba   :  { %8049 = vst [vmem:[#allocation74_spill] sm:$0xff] %v4062_v41 }
  0xbd   :  { %547 = vrot.lane.b32.xlu2 %v3476_v37, %s3328_s12 }
  0xbe   :  { %545 = vrot.lane.b32.xlu1 %v3486_v39, %s3328_s12  ;;  %543 = vrot.lane.b32.xlu0 %v3438_v25, %s3328_s12 }
  0xbf   :  { %v4070_v30 = vpop.permute.xlu2 %449 }
  0xc0   :  { %8050 = vst [vmem:[#allocation75_spill] sm:$0xff] %v4070_v30  ;;  %v4072_v26 = vpop.permute.xlu1 %397  ;;  %v4074_v28 = vpop.permute.xlu0 %395 }
  0xc1   :  { %8051 = vst [vmem:[#allocation76_spill] sm:$0xff] %v4072_v26 }
  0xc2   :  { %8052 = vst [vmem:[#allocation77_spill] sm:$0xff] %v4074_v28 }
  0xc5   :  { %553 = vrot.lane.b32.xlu2 %v3515_v48, %s3328_s12 }
  0xc6   :  { %551 = vrot.lane.b32.xlu1 %v3525_v50, %s3328_s12  ;;  %549 = vrot.lane.b32.xlu0 %v3535_v52, %s3328_s12 }
  0xc7   :  { %v4082_v55 = vpop.permute.xlu2 %455 }
  0xc8   :  { %8053 = vst [vmem:[#allocation78_spill] sm:$0xff] %v4082_v55  ;;  %v4084_v62 = vpop.permute.xlu1 %403  ;;  %v4086_v10 = vpop.permute.xlu0 %401  ;;  %v4173_v55 = vld [vmem:[%s7807_s0 + $0x198] sm:$0xff] }
  0xc9   :  { %8054 = vst [vmem:[#allocation79_spill] sm:$0xff] %v4084_v62 }
  0xca   :  { %8055 = vst [vmem:[#allocation80_spill] sm:$0xff] %v4086_v10 }
  0xcd   :  { %559 = vrot.lane.b32.xlu2 %v3560_v61, %s3328_s12 }
  0xce   :  { %557 = vrot.lane.b32.xlu1 %v3570_v63, %s3328_s12  ;;  %555 = vrot.lane.b32.xlu0 %v3520_v49, %s3328_s12 }
  0xcf   :  { %v4094_v41 = vpop.permute.xlu2 %461 }
  0xd0   :  { %8056 = vst [vmem:[#allocation81_spill] sm:$0xff] %v4094_v41  ;;  %v4096_v0 = vpop.permute.xlu1 %441  ;;  %v4098_v22 = vpop.permute.xlu0 %439 }
  0xd1   :  { %8057 = vst [vmem:[#allocation82_spill] sm:$0xff] %v4096_v0 }
  0xd2   :  { %8058 = vst [vmem:[#allocation83_spill] sm:$0xff] %v4098_v22 }
  0xd5   :  { %565 = vrot.lane.b32.xlu2 %v3599_v18, %s3328_s12 }
  0xd6   :  { %563 = vrot.lane.b32.xlu1 %v3609_v20, %s3328_s12  ;;  %561 = vrot.lane.b32.xlu0 %v3619_v23, %s3328_s12 }
  0xd7   :  { %v4106_v28 = vpop.permute.xlu2 %467 }
  0xd8   :  { %8059 = vst [vmem:[#allocation84_spill] sm:$0xff] %v4106_v28  ;;  %v4108_v26 = vpop.permute.xlu1 %447  ;;  %v4110_v10 = vpop.permute.xlu0 %445 }
  0xd9   :  { %8060 = vst [vmem:[#allocation85_spill] sm:$0xff] %v4108_v26 }
  0xda   :  { %8061 = vst [vmem:[#allocation86_spill] sm:$0xff] %v4110_v10 }
  0xdd   :  { %571 = vrot.lane.b32.xlu2 %v3644_v44, %s3328_s12 }
  0xde   :  { %569 = vrot.lane.b32.xlu1 %v3654_v54, %s3328_s12  ;;  %567 = vrot.lane.b32.xlu0 %v3604_v19, %s3328_s12 }
  0xdf   :  { %v4118_v22 = vpop.permute.xlu2 %473 }
  0xe0   :  { %8062 = vst [vmem:[#allocation87_spill] sm:$0xff] %v4118_v22  ;;  %v4120_v0 = vpop.permute.xlu1 %453  ;;  %v4122_v62 = vpop.permute.xlu0 %451 }
  0xe1   :  { %8063 = vst [vmem:[#allocation88_spill] sm:$0xff] %v4120_v0  ;;  %v4168_v0 = vld [vmem:[%s7807_s0 + $0x1a0] sm:$0xff] }
  0xe2   :  { %8064 = vst [vmem:[#allocation89_spill] sm:$0xff] %v4122_v62 }
  0xe5   :  { %577 = vrot.lane.b32.xlu2 %v3683_v31, %s3328_s12 }
  0xe6   :  { %575 = vrot.lane.b32.xlu1 %v3693_v33, %s3328_s12  ;;  %573 = vrot.lane.b32.xlu0 %v3703_v56, %s3328_s12 }
  0xe7   :  { %v4130_v3 = vpop.permute.xlu2 %479 }
  0xe8   :  { %8065 = vst [vmem:[#allocation90_spill] sm:$0xff] %v4130_v3  ;;  %v4132_v11 = vpop.permute.xlu1 %459  ;;  %v4134_v1 = vpop.permute.xlu0 %457  ;;  %v4151_v3 = vld [vmem:[%s7807_s0 + $0x180] sm:$0xff] }
  0xe9   :  { %8066 = vst [vmem:[#allocation91_spill] sm:$0xff] %v4132_v11 }
  0xea   :  { %8067 = vst [vmem:[#allocation92_spill] sm:$0xff] %v4134_v1  ;;  %v4178_v1 = vld [vmem:[%s7807_s0 + $0x188] sm:$0xff] }
  0xed   :  { %583 = vrot.lane.b32.xlu2 %v3728_v29, %s3328_s12 }
  0xee   :  { %581 = vrot.lane.b32.xlu1 %v3738_v57, %s3328_s12  ;;  %579 = vrot.lane.b32.xlu0 %v3688_v32, %s3328_s12 }
  0xef   :  { %v4142_v22 = vpop.permute.xlu2 %485 }
  0xf0   :  { %8068 = vst [vmem:[#allocation93_spill] sm:$0xff] %v4142_v22  ;;  %v4144_v10 = vpop.permute.xlu1 %465  ;;  %v4146_v26 = vpop.permute.xlu0 %463 }
  0xf1   :  { %8069 = vst [vmem:[#allocation94_spill] sm:$0xff] %v4144_v10 }
  0xf2   :  { %8070 = vst [vmem:[#allocation95_spill] sm:$0xff] %v4146_v26 }
  0xf5   :  { %589 = vrot.lane.b32.xlu2 %v4151_v3, %s3328_s12 }
  0xf6   :  { %587 = vrot.lane.b32.xlu1 %v3767_v9, %s3328_s12  ;;  %585 = vrot.lane.b32.xlu0 %v3777_v6, %s3328_s12 }
  0xf7   :  { %v4159_v30 = vpop.permute.xlu2 %491 }
  0xf8   :  { %8071 = vst [vmem:[#allocation96_spill] sm:$0xff] %v4159_v30  ;;  %v4161_v22 = vpop.permute.xlu1 %471  ;;  %v4163_v62 = vpop.permute.xlu0 %469 }
  0xf9   :  { %8072 = vst [vmem:[#allocation97_spill] sm:$0xff] %v4161_v22 }
  0xfa   :  { %8073 = vst [vmem:[#allocation98_spill] sm:$0xff] %v4163_v62 }
  0xfd   :  { %595 = vrot.lane.b32.xlu2 %v4168_v0, %s3328_s12 }
  0xfe   :  { %593 = vrot.lane.b32.xlu1 %v4173_v55, %s3328_s12  ;;  %591 = vrot.lane.b32.xlu0 %v4178_v1, %s3328_s12 }
  0xff   :  { %v4186_v62 = vpop.permute.xlu2 %497 }
 0x100   :  { %8074 = vst [vmem:[#allocation99_spill] sm:$0xff] %v4186_v62  ;;  %v4188_v22 = vpop.permute.xlu1 %477  ;;  %v4190_v30 = vpop.permute.xlu0 %475 }
 0x101   :  { %8075 = vst [vmem:[#allocation100_spill] sm:$0xff] %v4188_v22  ;;  %v8084_v22 = vld [vmem:[#allocation6_spill] sm:$0xff] }
 0x102   :  { %8076 = vst [vmem:[#allocation101_spill] sm:$0xff] %v4190_v30  ;;  %v8083_v30 = vld [vmem:[#allocation5_spill] sm:$0xff] }
 0x105   :  { %633 = vrot.lane.b32.xlu2 %v3471_v36, %s3329_s21 }
 0x106   :  { %631 = vrot.lane.b32.xlu1 %v3426_v21, %s3329_s21  ;;  %629 = vrot.lane.b32.xlu0 %v3404_v13, %s3329_s21 }
 0x107   :  { %v4198_v11 = vpop.permute.xlu2 %535 }
 0x108   :  { %8077 = vst [vmem:[#allocation102_spill] sm:$0xff] %v4198_v11  ;;  %v4200_v41 = vpop.permute.xlu1 %483  ;;  %v4202_v26 = vpop.permute.xlu0 %481  ;;  %v8088_v11 = vld [vmem:[#allocation11_spill] sm:$0xff] }
 0x109   :  { %8078 = vst [vmem:[#allocation103_spill] sm:$0xff] %v4200_v41 }
 0x10a   :  { %8079 = vst [vmem:[#allocation104_spill] sm:$0xff] %v4202_v26 }
 0x10d   :  { %639 = vrot.lane.b32.xlu2 %v3510_v47, %s3329_s21 }
 0x10e   :  { %637 = vrot.lane.b32.xlu1 %v3465_v34, %s3329_s21  ;;  %635 = vrot.lane.b32.xlu0 %v3468_v35, %s3329_s21 }
 0x10f   :  { %v4210_v36 = vpop.permute.xlu2 %541 }
 0x110   :  { %8080 = vst [vmem:[#allocation105_spill] sm:$0xff] %v4210_v36  ;;  %v4212_v21 = vpop.permute.xlu1 %489  ;;  %v4214_v13 = vpop.permute.xlu0 %487 }
 0x111   :  { %8081 = vst [vmem:[#allocation106_spill] sm:$0xff] %v4212_v21  ;;  %v8090_v21 = vld [vmem:[#allocation8_spill] sm:$0xff] }
 0x112   :  { %8082 = vst [vmem:[#allocation107_spill] sm:$0xff] %v4214_v13  ;;  %v8089_v13 = vld [vmem:[#allocation7_spill] sm:$0xff] }
 0x115   :  { %645 = vrot.lane.b32.xlu2 %v3555_v60, %s3329_s21 }
 0x116   :  { %643 = vrot.lane.b32.xlu1 %v8083_v30, %s3329_s21  ;;  %641 = vrot.lane.b32.xlu0 %v8084_v22, %s3329_s21 }
 0x117   :  { %v4222_v26 = vpop.permute.xlu2 %547 }
 0x118   :  { %8085 = vst [vmem:[#allocation5_spill] sm:$0xff] %v4222_v26  ;;  %v4224_v41 = vpop.permute.xlu1 %495  ;;  %v4226_v35 = vpop.permute.xlu0 %493  ;;  %v8094_v26 = vld [vmem:[#allocation14_spill] sm:$0xff] }
 0x119   :  { %8086 = vst [vmem:[#allocation6_spill] sm:$0xff] %v4224_v41  ;;  %v8096_v41 = vld [vmem:[#allocation10_spill] sm:$0xff] }
 0x11a   :  { %8087 = vst [vmem:[#allocation108_spill] sm:$0xff] %v4226_v35  ;;  %v8095_v35 = vld [vmem:[#allocation9_spill] sm:$0xff] }
 0x11d   :  { %651 = vrot.lane.b32.xlu2 %v8088_v11, %s3329_s21 }
 0x11e   :  { %649 = vrot.lane.b32.xlu1 %v8089_v13, %s3329_s21  ;;  %647 = vrot.lane.b32.xlu0 %v8090_v21, %s3329_s21 }
 0x11f   :  { %v4234_v62 = vpop.permute.xlu2 %553 }
 0x120   :  { %8091 = vst [vmem:[#allocation8_spill] sm:$0xff] %v4234_v62  ;;  %v4236_v36 = vpop.permute.xlu1 %533  ;;  %v4238_v10 = vpop.permute.xlu0 %499  ;;  %v8100_v62 = vld [vmem:[#allocation17_spill] sm:$0xff] }
 0x121   :  { %8092 = vst [vmem:[#allocation109_spill] sm:$0xff] %v4236_v36  ;;  %v8101_v36 = vld [vmem:[#allocation12_spill] sm:$0xff] }
 0x122   :  { %8093 = vst [vmem:[#allocation110_spill] sm:$0xff] %v4238_v10  ;;  %v8102_v10 = vld [vmem:[#allocation13_spill] sm:$0xff] }
 0x125   :  { %657 = vrot.lane.b32.xlu2 %v8094_v26, %s3329_s21 }
 0x126   :  { %655 = vrot.lane.b32.xlu1 %v8095_v35, %s3329_s21  ;;  %653 = vrot.lane.b32.xlu0 %v8096_v41, %s3329_s21 }
 0x127   :  { %v4246_v28 = vpop.permute.xlu2 %559 }
 0x128   :  { %8097 = vst [vmem:[#allocation10_spill] sm:$0xff] %v4246_v28  ;;  %v4248_v51 = vpop.permute.xlu1 %539  ;;  %v4250_v13 = vpop.permute.xlu0 %537  ;;  %v8106_v28 = vld [vmem:[#allocation20_spill] sm:$0xff] }
 0x129   :  { %8098 = vst [vmem:[#allocation111_spill] sm:$0xff] %v4248_v51  ;;  %v8108_v51 = vld [vmem:[#allocation16_spill] sm:$0xff] }
 0x12a   :  { %8099 = vst [vmem:[#allocation112_spill] sm:$0xff] %v4250_v13  ;;  %v8107_v13 = vld [vmem:[#allocation15_spill] sm:$0xff] }
 0x12d   :  { %663 = vrot.lane.b32.xlu2 %v8100_v62, %s3329_s21 }
 0x12e   :  { %661 = vrot.lane.b32.xlu1 %v8101_v36, %s3329_s21  ;;  %659 = vrot.lane.b32.xlu0 %v8102_v10, %s3329_s21 }
 0x12f   :  { %v4258_v26 = vpop.permute.xlu2 %565 }
 0x130   :  { %8103 = vst [vmem:[#allocation113_spill] sm:$0xff] %v4258_v26  ;;  %v4260_v35 = vpop.permute.xlu1 %545  ;;  %v4262_v11 = vpop.permute.xlu0 %543  ;;  %v8112_v26 = vld [vmem:[#allocation18_spill] sm:$0xff] }
 0x131   :  { %8104 = vst [vmem:[#allocation114_spill] sm:$0xff] %v4260_v35 }
 0x132   :  { %8105 = vst [vmem:[#allocation115_spill] sm:$0xff] %v4262_v11  ;;  %v8113_v11 = vld [vmem:[#allocation19_spill] sm:$0xff] }
 0x135   :  { %669 = vrot.lane.b32.xlu2 %v8106_v28, %s3329_s21 }
 0x136   :  { %667 = vrot.lane.b32.xlu1 %v8107_v13, %s3329_s21  ;;  %665 = vrot.lane.b32.xlu0 %v8108_v51, %s3329_s21 }
 0x137   :  { %v4270_v62 = vpop.permute.xlu2 %571 }
 0x138   :  { %8109 = vst [vmem:[#allocation116_spill] sm:$0xff] %v4270_v62  ;;  %v4272_v36 = vpop.permute.xlu1 %551  ;;  %v4274_v10 = vpop.permute.xlu0 %549  ;;  %v4291_v62 = vld [vmem:[%s7807_s0 + $0x190] sm:$0xf] }
 0x139   :  { %8110 = vst [vmem:[#allocation117_spill] sm:$0xff] %v4272_v36  ;;  %v8118_v36 = vld [vmem:[#allocation22_spill] sm:$0xff] }
 0x13a   :  { %8111 = vst [vmem:[#allocation118_spill] sm:$0xff] %v4274_v10  ;;  %v8117_v10 = vld [vmem:[#allocation21_spill] sm:$0xff] }
 0x13d   :  { %675 = vrot.lane.b32.xlu2 %v3762_v16, %s3329_s21 }
 0x13e   :  { %673 = vrot.lane.b32.xlu1 %v8112_v26, %s3329_s21  ;;  %671 = vrot.lane.b32.xlu0 %v8113_v11, %s3329_s21 }
 0x13f   :  { %v4282_v35 = vpop.permute.xlu2 %577 }
 0x140   :  { %8114 = vst [vmem:[#allocation119_spill] sm:$0xff] %v4282_v35  ;;  %v4284_v13 = vpop.permute.xlu1 %557  ;;  %v4286_v28 = vpop.permute.xlu0 %555  ;;  %v296_v35 = vrot.slane %v4178_v1, 2 }
 0x141   :  { %8115 = vst [vmem:[#allocation120_spill] sm:$0xff] %v4284_v13  ;;  %v298_v13 = vrot.slane %v4291_v62, 2 }
 0x142   :  { %8116 = vst [vmem:[#allocation121_spill] sm:$0xff] %v4286_v28  ;;  %v295_v28 = vrot.slane %v4151_v3, 2 }
 0x145   :  { %681 = vrot.lane.b32.xlu2 %v3795_v17, %s3329_s21  ;;  %v4309_v17 = vsel %vm127_vm0, %v296_v35, %v298_v13  ;;  %v301_v13 = vrot.slane %v4168_v0, 2 }
 0x146   :  { %679 = vrot.lane.b32.xlu1 %v8117_v10, %s3329_s21  ;;  %677 = vrot.lane.b32.xlu0 %v8118_v36, %s3329_s21  ;;  %8122 = vst [vmem:[#allocation125_spill] sm:$0xff] %v4309_v17  ;;  %v4312_v10 = vsel %vm127_vm0, %v295_v28, %v296_v35  ;;  %v4317_v36 = vld [vmem:[%s7807_s0 + $0x1a8] sm:$0xf]  ;;  %v300_v35 = vrot.slane %v4173_v55, 2 }
 0x147   :  { %v4301_v26 = vpop.permute.xlu2 %583  ;;  %8123 = vst [vmem:[#allocation126_spill] sm:$0xff] %v4312_v10  ;;  %v303_v28 = vrot.slane %v4317_v36, 2 }
 0x148   :  { %8119 = vst [vmem:[#allocation122_spill] sm:$0xff] %v4301_v26  ;;  %v4304_v16 = vpop.permute.xlu1 %563  ;;  %v4306_v11 = vpop.permute.xlu0 %561  ;;  %v8124_v26 = vld [vmem:[#allocation24_spill] sm:$0xff] }
 0x149   :  { %8120 = vst [vmem:[#allocation123_spill] sm:$0xff] %v4304_v16 }
 0x14a   :  { %8121 = vst [vmem:[#allocation124_spill] sm:$0xff] %v4306_v11 }
 0x14d   :  { %687 = vrot.lane.b32.xlu2 %v4309_v17, %s3329_s21  ;;  %v4335_v17 = vsel %vm127_vm0, %v301_v13, %v303_v28 }
 0x14e   :  { %685 = vrot.lane.b32.xlu1 %v4312_v10, %s3329_s21  ;;  %683 = vrot.lane.b32.xlu0 %v8124_v26, %s3329_s21  ;;  %v4338_v10 = vsel %vm127_vm0, %v300_v35, %v301_v13 }
 0x14f   :  { %v4325_v11 = vpop.permute.xlu2 %589 }
 0x150   :  { %8125 = vst [vmem:[#allocation24_spill] sm:$0xff] %v4325_v11  ;;  %v4330_v16 = vpop.permute.xlu1 %569  ;;  %v4332_v51 = vpop.permute.xlu0 %567 }
 0x151   :  { %8126 = vst [vmem:[#allocation127_spill] sm:$0xff] %v4330_v16 }
 0x152   :  { %8127 = vst [vmem:[#allocation128_spill] sm:$0xff] %v4332_v51 }
 0x155   :  { %725 = vrot.lane.b32.xlu2 %v3826_v59, %s3330_s26 }
 0x156   :  { %691 = vrot.lane.b32.xlu1 %v4335_v17, %s3329_s21  ;;  %689 = vrot.lane.b32.xlu0 %v4338_v10, %s3329_s21 }
 0x157   :  { %v4346_v11 = vpop.permute.xlu2 %595 }
 0x158   :  { %8128 = vst [vmem:[#allocation129_spill] sm:$0xff] %v4346_v11  ;;  %v4348_v16 = vpop.permute.xlu1 %575  ;;  %v4350_v51 = vpop.permute.xlu0 %573 }
 0x159   :  { %8129 = vst [vmem:[#allocation130_spill] sm:$0xff] %v4348_v16  ;;  %v8139_v16 = vld [vmem:[#allocation31_spill] sm:$0xff] }
 0x15a   :  { %8130 = vst [vmem:[#allocation131_spill] sm:$0xff] %v4350_v51  ;;  %v8138_v51 = vld [vmem:[#allocation30_spill] sm:$0xff] }
 0x15d   :  { %731 = vrot.lane.b32.xlu2 %v3847_v15, %s3330_s26  ;;  %v8134_v15 = vld [vmem:[#allocation28_spill] sm:$0xff] }
 0x15e   :  { %729 = vrot.lane.b32.xlu1 %v3820_v43, %s3330_s26  ;;  %727 = vrot.lane.b32.xlu0 %v3823_v8, %s3330_s26 }
 0x15f   :  { %v4358_v59 = vpop.permute.xlu2 %633 }
 0x160   :  { %8131 = vst [vmem:[#allocation132_spill] sm:$0xff] %v4358_v59  ;;  %v4360_v13 = vpop.permute.xlu1 %581  ;;  %v4362_v28 = vpop.permute.xlu0 %579 }
 0x161   :  { %8132 = vst [vmem:[#allocation133_spill] sm:$0xff] %v4360_v13 }
 0x162   :  { %8133 = vst [vmem:[#allocation134_spill] sm:$0xff] %v4362_v28 }
 0x165   :  { %737 = vrot.lane.b32.xlu2 %v3869_v58, %s3330_s26 }
 0x166   :  { %735 = vrot.lane.b32.xlu1 %v3841_v5, %s3330_s26  ;;  %733 = vrot.lane.b32.xlu0 %v8134_v15, %s3330_s26 }
 0x167   :  { %v4370_v35 = vpop.permute.xlu2 %639 }
 0x168   :  { %8135 = vst [vmem:[#allocation28_spill] sm:$0xff] %v4370_v35  ;;  %v4372_v43 = vpop.permute.xlu1 %587  ;;  %v4374_v8 = vpop.permute.xlu0 %585 }
 0x169   :  { %8136 = vst [vmem:[#allocation135_spill] sm:$0xff] %v4372_v43 }
 0x16a   :  { %8137 = vst [vmem:[#allocation136_spill] sm:$0xff] %v4374_v8  ;;  %v8143_v8 = vld [vmem:[#allocation36_spill] sm:$0xff] }
 0x16d   :  { %743 = vrot.lane.b32.xlu2 %v3894_v2, %s3330_s26 }
 0x16e   :  { %741 = vrot.lane.b32.xlu1 %v8138_v51, %s3330_s26  ;;  %739 = vrot.lane.b32.xlu0 %v8139_v16, %s3330_s26 }
 0x16f   :  { %v4382_v28 = vpop.permute.xlu2 %645 }
 0x170   :  { %8140 = vst [vmem:[#allocation30_spill] sm:$0xff] %v4382_v28  ;;  %v4384_v13 = vpop.permute.xlu1 %593  ;;  %v4386_v59 = vpop.permute.xlu0 %591 }
 0x171   :  { %8141 = vst [vmem:[#allocation31_spill] sm:$0xff] %v4384_v13  ;;  %v8148_v13 = vld [vmem:[#allocation41_spill] sm:$0xff] }
 0x172   :  { %8142 = vst [vmem:[#allocation137_spill] sm:$0xff] %v4386_v59  ;;  %v8147_v59 = vld [vmem:[#allocation40_spill] sm:$0xff] }
 0x175   :  { %749 = vrot.lane.b32.xlu2 %v3920_v45, %s3330_s26 }
 0x176   :  { %747 = vrot.lane.b32.xlu1 %v3888_v4, %s3330_s26  ;;  %745 = vrot.lane.b32.xlu0 %v8143_v8, %s3330_s26 }
 0x177   :  { %v4394_v43 = vpop.permute.xlu2 %651 }
 0x178   :  { %8144 = vst [vmem:[#allocation36_spill] sm:$0xff] %v4394_v43  ;;  %v4396_v11 = vpop.permute.xlu1 %631  ;;  %v4398_v35 = vpop.permute.xlu0 %629 }
 0x179   :  { %8145 = vst [vmem:[#allocation138_spill] sm:$0xff] %v4396_v11 }
 0x17a   :  { %8146 = vst [vmem:[#allocation139_spill] sm:$0xff] %v4398_v35  ;;  %v8152_v35 = vld [vmem:[#allocation47_spill] sm:$0xff] }
 0x17d   :  { %755 = vrot.lane.b32.xlu2 %v3945_v42, %s3330_s26 }
 0x17e   :  { %753 = vrot.lane.b32.xlu1 %v8147_v59, %s3330_s26  ;;  %751 = vrot.lane.b32.xlu0 %v8148_v13, %s3330_s26 }
 0x17f   :  { %v4406_v28 = vpop.permute.xlu2 %657 }
 0x180   :  { %8149 = vst [vmem:[#allocation41_spill] sm:$0xff] %v4406_v28  ;;  %v4408_v4 = vpop.permute.xlu1 %637  ;;  %v4410_v45 = vpop.permute.xlu0 %635 }
 0x181   :  { %8150 = vst [vmem:[#allocation140_spill] sm:$0xff] %v4408_v4  ;;  %v8157_v4 = vld [vmem:[#allocation52_spill] sm:$0xff] }
 0x182   :  { %8151 = vst [vmem:[#allocation141_spill] sm:$0xff] %v4410_v45  ;;  %v8156_v45 = vld [vmem:[#allocation51_spill] sm:$0xff] }
 0x185   :  { %761 = vrot.lane.b32.xlu2 %v3971_v46, %s3330_s26 }
 0x186   :  { %759 = vrot.lane.b32.xlu1 %v3939_v27, %s3330_s26  ;;  %757 = vrot.lane.b32.xlu0 %v8152_v35, %s3330_s26 }
 0x187   :  { %v4418_v11 = vpop.permute.xlu2 %663 }
 0x188   :  { %8153 = vst [vmem:[#allocation47_spill] sm:$0xff] %v4418_v11  ;;  %v4420_v43 = vpop.permute.xlu1 %643  ;;  %v4422_v59 = vpop.permute.xlu0 %641  ;;  %v8161_v11 = vld [vmem:[#allocation58_spill] sm:$0xff] }
 0x189   :  { %8154 = vst [vmem:[#allocation142_spill] sm:$0xff] %v4420_v43 }
 0x18a   :  { %8155 = vst [vmem:[#allocation143_spill] sm:$0xff] %v4422_v59 }
 0x18d   :  { %767 = vrot.lane.b32.xlu2 %v3996_v12, %s3330_s26 }
 0x18e   :  { %765 = vrot.lane.b32.xlu1 %v8156_v45, %s3330_s26  ;;  %763 = vrot.lane.b32.xlu0 %v8157_v4, %s3330_s26 }
 0x18f   :  { %v4430_v28 = vpop.permute.xlu2 %669 }
 0x190   :  { %8158 = vst [vmem:[#allocation52_spill] sm:$0xff] %v4430_v28  ;;  %v4432_v27 = vpop.permute.xlu1 %649  ;;  %v4434_v46 = vpop.permute.xlu0 %647  ;;  %v310_v28 = vrot.slane %v4173_v55, 4 }
 0x191   :  { %8159 = vst [vmem:[#allocation144_spill] sm:$0xff] %v4432_v27  ;;  %v305_v27 = vrot.slane %v4151_v3, 4 }
 0x192   :  { %8160 = vst [vmem:[#allocation145_spill] sm:$0xff] %v4434_v46  ;;  %v311_v46 = vrot.slane %v4168_v0, 4 }
 0x195   :  { %773 = vrot.lane.b32.xlu2 %v4022_v14, %s3330_s26  ;;  %v4466_v14 = vsel %vm208_vm1, %v310_v28, %v311_v46  ;;  %v313_v28 = vrot.slane %v4317_v36, 4 }
 0x196   :  { %771 = vrot.lane.b32.xlu1 %v3990_v38, %s3330_s26  ;;  %769 = vrot.lane.b32.xlu0 %v8161_v11, %s3330_s26 }
 0x197   :  { %v4442_v59 = vpop.permute.xlu2 %675 }
 0x198   :  { %8162 = vst [vmem:[#allocation58_spill] sm:$0xff] %v4442_v59  ;;  %v4444_v43 = vpop.permute.xlu1 %655  ;;  %v4446_v45 = vpop.permute.xlu0 %653  ;;  %v306_v59 = vrot.slane %v4178_v1, 4 }
 0x199   :  { %8163 = vst [vmem:[#allocation146_spill] sm:$0xff] %v4444_v43 }
 0x19a   :  { %8164 = vst [vmem:[#allocation147_spill] sm:$0xff] %v4446_v45  ;;  %v308_v45 = vrot.slane %v4291_v62, 4 }
 0x19d   :  { %779 = vrot.lane.b32.xlu2 %v4038_v53, %s3330_s26 }
 0x19e   :  { %777 = vrot.lane.b32.xlu1 %v4016_v7, %s3330_s26  ;;  %775 = vrot.lane.b32.xlu0 %v4019_v40, %s3330_s26  ;;  %v4469_v7 = vsel %vm208_vm1, %v306_v59, %v308_v45  ;;  %v4472_v40 = vsel %vm208_vm1, %v305_v27, %v306_v59  ;;  %v4488_v27 = vsel %vm208_vm1, %v311_v46, %v313_v28  ;;  %v4601_v28 = vld [vmem:[%s7807_s0 + $0x1b0] sm:$0xff] }
 0x19f   :  { %v4458_v43 = vpop.permute.xlu2 %681 }
 0x1a0   :  { %8165 = vst [vmem:[#allocation148_spill] sm:$0xff] %v4458_v43  ;;  %v4461_v38 = vpop.permute.xlu1 %661  ;;  %v4463_v53 = vpop.permute.xlu0 %659 }
 0x1a1   :  { %8166 = vst [vmem:[#allocation149_spill] sm:$0xff] %v4461_v38 }
 0x1a5   :  { %785 = vrot.lane.b32.xlu2 %v4466_v14, %s3330_s26 }
 0x1a6   :  { %783 = vrot.lane.b32.xlu1 %v4469_v7, %s3330_s26  ;;  %781 = vrot.lane.b32.xlu0 %v4472_v40, %s3330_s26 }
 0x1a7   :  { %v4480_v62 = vpop.permute.xlu2 %687 }
 0x1a8   :  { %8167 = vst [vmem:[#allocation150_spill] sm:$0xff] %v4480_v62  ;;  %v4483_v38 = vpop.permute.xlu1 %667  ;;  %v4485_v45 = vpop.permute.xlu0 %665 }
 0x1a9   :  { %8168 = vst [vmem:[#allocation151_spill] sm:$0xff] %v4483_v38 }
 0x1aa   :  { %8169 = vst [vmem:[#allocation152_spill] sm:$0xff] %v4485_v45  ;;  %v4623_v45 = vld [vmem:[%s7807_s0 + $0x1c8] sm:$0xff] }
 0x1ad   :  { %823 = vrot.lane.b32.xlu2 %v3438_v25, %s3331_s27 }
 0x1ae   :  { %821 = vrot.lane.b32.xlu1 %v3433_v24, %s3331_s27  ;;  %787 = vrot.lane.b32.xlu0 %v4488_v27, %s3330_s26 }
 0x1af   :  { %v4496_v59 = vpop.permute.xlu2 %725 }
 0x1b0   :  { %8170 = vst [vmem:[#allocation153_spill] sm:$0xff] %v4496_v59  ;;  %v4498_v36 = vpop.permute.xlu1 %673  ;;  %v4500_v38 = vpop.permute.xlu0 %671 }
 0x1b1   :  { %8171 = vst [vmem:[#allocation154_spill] sm:$0xff] %v4498_v36 }
 0x1b2   :  { %8172 = vst [vmem:[#allocation155_spill] sm:$0xff] %v4500_v38 }
 0x1b5   :  { %829 = vrot.lane.b32.xlu2 %v3535_v52, %s3331_s27 }
 0x1b6   :  { %827 = vrot.lane.b32.xlu1 %v3476_v37, %s3331_s27  ;;  %825 = vrot.lane.b32.xlu0 %v3486_v39, %s3331_s27 }
 0x1b7   :  { %v4508_v25 = vpop.permute.xlu2 %731 }
 0x1b8   :  { %8173 = vst [vmem:[#allocation156_spill] sm:$0xff] %v4508_v25  ;;  %v4510_v24 = vpop.permute.xlu1 %679  ;;  %v4512_v46 = vpop.permute.xlu0 %677 }
 0x1b9   :  { %8174 = vst [vmem:[#allocation157_spill] sm:$0xff] %v4510_v24  ;;  %v8205_v24 = vld [vmem:[#allocation16_spill] sm:$0xff] }
 0x1ba   :  { %8175 = vst [vmem:[#allocation158_spill] sm:$0xff] %v4512_v46  ;;  %v321_v46 = vrot.slane %v4601_v28, 2 }
 0x1bd   :  { %835 = vrot.lane.b32.xlu2 %v3520_v49, %s3331_s27 }
 0x1be   :  { %833 = vrot.lane.b32.xlu1 %v3515_v48, %s3331_s27  ;;  %831 = vrot.lane.b32.xlu0 %v3525_v50, %s3331_s27 }
 0x1bf   :  { %v4520_v52 = vpop.permute.xlu2 %737 }
 0x1c0   :  { %v4522_v37 = vpop.permute.xlu1 %685  ;;  %v4524_v39 = vpop.permute.xlu0 %683 }
 0x1c1   :  { %8176 = vst [vmem:[#allocation159_spill] sm:$0xff] %v4522_v37 }
 0x1c2   :  { %8177 = vst [vmem:[#allocation160_spill] sm:$0xff] %v4524_v39  ;;  %v8210_v39 = vld [vmem:[#allocation19_spill] sm:$0xff] }
 0x1c5   :  { %841 = vrot.lane.b32.xlu2 %v3619_v23, %s3331_s27 }
 0x1c6   :  { %839 = vrot.lane.b32.xlu1 %v3560_v61, %s3331_s27  ;;  %837 = vrot.lane.b32.xlu0 %v3570_v63, %s3331_s27 }
 0x1c7   :  { %v4532_v49 = vpop.permute.xlu2 %743 }
 0x1c8   :  { %v4534_v48 = vpop.permute.xlu1 %691  ;;  %v4536_v50 = vpop.permute.xlu0 %689 }
 0x1c9   :  { %8178 = vst [vmem:[#allocation161_spill] sm:$0xff] %v4534_v48 }
 0x1ca   :  { %8179 = vst [vmem:[#allocation162_spill] sm:$0xff] %v4536_v50 }
 0x1cd   :  { %847 = vrot.lane.b32.xlu2 %v3604_v19, %s3331_s27 }
 0x1ce   :  { %845 = vrot.lane.b32.xlu1 %v3599_v18, %s3331_s27  ;;  %843 = vrot.lane.b32.xlu0 %v3609_v20, %s3331_s27 }
 0x1cf   :  { %v4544_v23 = vpop.permute.xlu2 %749 }
 0x1d0   :  { %v4546_v61 = vpop.permute.xlu1 %729  ;;  %v4548_v63 = vpop.permute.xlu0 %727 }
 0x1d1   :  { %8180 = vst [vmem:[#allocation163_spill] sm:$0xff] %v4546_v61 }
 0x1d2   :  { %8181 = vst [vmem:[#allocation164_spill] sm:$0xff] %v4548_v63 }
 0x1d5   :  { %853 = vrot.lane.b32.xlu2 %v3703_v56, %s3331_s27 }
 0x1d6   :  { %851 = vrot.lane.b32.xlu1 %v3644_v44, %s3331_s27  ;;  %849 = vrot.lane.b32.xlu0 %v3654_v54, %s3331_s27 }
 0x1d7   :  { %v4556_v19 = vpop.permute.xlu2 %755 }
 0x1d8   :  { %v4558_v18 = vpop.permute.xlu1 %735  ;;  %v4560_v20 = vpop.permute.xlu0 %733 }
 0x1dd   :  { %859 = vrot.lane.b32.xlu2 %v3688_v32, %s3331_s27 }
 0x1de   :  { %857 = vrot.lane.b32.xlu1 %v3683_v31, %s3331_s27  ;;  %855 = vrot.lane.b32.xlu0 %v3693_v33, %s3331_s27 }
 0x1df   :  { %v4568_v56 = vpop.permute.xlu2 %761 }
 0x1e0   :  { %8182 = vst [vmem:[#allocation165_spill] sm:$0xff] %v4568_v56  ;;  %v4570_v44 = vpop.permute.xlu1 %741  ;;  %v4572_v54 = vpop.permute.xlu0 %739  ;;  %v4618_v56 = vld [vmem:[%s7807_s0 + $0x1d0] sm:$0xff] }
 0x1e5   :  { %865 = vrot.lane.b32.xlu2 %v3777_v6, %s3331_s27 }
 0x1e6   :  { %863 = vrot.lane.b32.xlu1 %v3728_v29, %s3331_s27  ;;  %861 = vrot.lane.b32.xlu0 %v3738_v57, %s3331_s27 }
 0x1e7   :  { %v4580_v32 = vpop.permute.xlu2 %767 }
 0x1e8   :  { %8183 = vst [vmem:[#allocation166_spill] sm:$0xff] %v4580_v32  ;;  %v4582_v31 = vpop.permute.xlu1 %747  ;;  %v4584_v33 = vpop.permute.xlu0 %745 }
 0x1ed   :  { %871 = vrot.lane.b32.xlu2 %v4178_v1, %s3331_s27 }
 0x1ee   :  { %869 = vrot.lane.b32.xlu1 %v4151_v3, %s3331_s27  ;;  %867 = vrot.lane.b32.xlu0 %v3767_v9, %s3331_s27 }
 0x1ef   :  { %v4592_v6 = vpop.permute.xlu2 %773 }
 0x1f0   :  { %8184 = vst [vmem:[#allocation167_spill] sm:$0xff] %v4592_v6  ;;  %v4594_v29 = vpop.permute.xlu1 %753  ;;  %v4596_v57 = vpop.permute.xlu0 %751 }
 0x1f5   :  { %877 = vrot.lane.b32.xlu2 %v4601_v28, %s3331_s27 }
 0x1f6   :  { %875 = vrot.lane.b32.xlu1 %v4168_v0, %s3331_s27  ;;  %873 = vrot.lane.b32.xlu0 %v4173_v55, %s3331_s27  ;;  %v4628_v55 = vld [vmem:[%s7807_s0 + $0x1b8] sm:$0xff] }
 0x1f7   :  { %v4609_v9 = vpop.permute.xlu2 %779 }
 0x1f8   :  { %8185 = vst [vmem:[#allocation168_spill] sm:$0xff] %v4609_v9  ;;  %v4611_v3 = vpop.permute.xlu1 %759  ;;  %v4613_v1 = vpop.permute.xlu0 %757 }
 0x1f9   :  { %8186 = vst [vmem:[#allocation169_spill] sm:$0xff] %v4611_v3 }
 0x1fa   :  { %8187 = vst [vmem:[#allocation170_spill] sm:$0xff] %v4613_v1 }
 0x1fd   :  { %883 = vrot.lane.b32.xlu2 %v4618_v56, %s3331_s27 }
 0x1fe   :  { %881 = vrot.lane.b32.xlu1 %v4623_v45, %s3331_s27  ;;  %879 = vrot.lane.b32.xlu0 %v4628_v55, %s3331_s27 }
 0x1ff   :  { %v4636_v0 = vpop.permute.xlu2 %785 }
 0x200   :  { %8188 = vst [vmem:[#allocation171_spill] sm:$0xff] %v4636_v0  ;;  %v4638_v1 = vpop.permute.xlu1 %765  ;;  %v4640_v3 = vpop.permute.xlu0 %763 }
 0x201   :  { %8189 = vst [vmem:[#allocation172_spill] sm:$0xff] %v4638_v1 }
 0x202   :  { %8190 = vst [vmem:[#allocation173_spill] sm:$0xff] %v4640_v3  ;;  %v8196_v3 = vld [vmem:[#allocation11_spill] sm:$0xff] }
 0x205   :  { %921 = vrot.lane.b32.xlu2 %v8084_v22, %s3332_s13 }
 0x206   :  { %919 = vrot.lane.b32.xlu1 %v3510_v47, %s3332_s13  ;;  %917 = vrot.lane.b32.xlu0 %v3465_v34, %s3332_s13 }
 0x207   :  { %v4648_v32 = vpop.permute.xlu2 %823 }
 0x208   :  { %8191 = vst [vmem:[#allocation174_spill] sm:$0xff] %v4648_v32  ;;  %v4650_v38 = vpop.permute.xlu1 %771  ;;  %v4652_v36 = vpop.permute.xlu0 %769  ;;  %v8218_v32 = vld [vmem:[#allocation25_spill] sm:$0xff] }
 0x209   :  { %8192 = vst [vmem:[#allocation175_spill] sm:$0xff] %v4650_v38  ;;  %v8201_v38 = vld [vmem:[#allocation14_spill] sm:$0xff] }
 0x20a   :  { %8193 = vst [vmem:[#allocation176_spill] sm:$0xff] %v4652_v36  ;;  %v8200_v36 = vld [vmem:[#allocation13_spill] sm:$0xff] }
 0x20d   :  { %927 = vrot.lane.b32.xlu2 %v8090_v21, %s3332_s13  ;;  %v8197_v21 = vld [vmem:[#allocation7_spill] sm:$0xff] }
 0x20e   :  { %925 = vrot.lane.b32.xlu1 %v3555_v60, %s3332_s13  ;;  %923 = vrot.lane.b32.xlu0 %v8083_v30, %s3332_s13 }
 0x20f   :  { %v4660_v22 = vpop.permute.xlu2 %829 }
 0x210   :  { %v4662_v47 = vpop.permute.xlu1 %777  ;;  %v4664_v34 = vpop.permute.xlu0 %775 }
 0x211   :  { %8194 = vst [vmem:[#allocation177_spill] sm:$0xff] %v4662_v47 }
 0x212   :  { %8195 = vst [vmem:[#allocation178_spill] sm:$0xff] %v4664_v34  ;;  %v322_v34 = vrot.slane %v4628_v55, 2 }
 0x214   :  { %v323_v9 = vsel %vm127_vm0, %v321_v46, %v322_v34  ;;  %v8214_v46 = vld [vmem:[#allocation22_spill] sm:$0xff] }
 0x215   :  { %933 = vrot.lane.b32.xlu2 %v8096_v41, %s3332_s13  ;;  %v8202_v41 = vld [vmem:[#allocation9_spill] sm:$0xff] }
 0x216   :  { %931 = vrot.lane.b32.xlu1 %v8196_v3, %s3332_s13  ;;  %929 = vrot.lane.b32.xlu0 %v8197_v21, %s3332_s13 }
 0x217   :  { %v4672_v1 = vpop.permute.xlu2 %835 }
 0x218   :  { %v4674_v60 = vpop.permute.xlu1 %783  ;;  %v4676_v30 = vpop.permute.xlu0 %781 }
 0x219   :  { %8198 = vst [vmem:[#allocation11_spill] sm:$0xff] %v4674_v60  ;;  %v327_v60 = vrot.slane %v4618_v56, 2 }
 0x21a   :  { %8199 = vst [vmem:[#allocation7_spill] sm:$0xff] %v4676_v30  ;;  %v8211_v30 = vld [vmem:[#allocation20_spill] sm:$0xff] }
 0x21d   :  { %939 = vrot.lane.b32.xlu2 %v8200_v36, %s3332_s13  ;;  %v8206_v36 = vld [vmem:[#allocation17_spill] sm:$0xff] }
 0x21e   :  { %937 = vrot.lane.b32.xlu1 %v8201_v38, %s3332_s13  ;;  %935 = vrot.lane.b32.xlu0 %v8202_v41, %s3332_s13  ;;  %v8207_v38 = vld [vmem:[#allocation12_spill] sm:$0xff] }
 0x21f   :  { %v4684_v6 = vpop.permute.xlu2 %841 }
 0x220   :  { %v4686_v3 = vpop.permute.xlu1 %821  ;;  %v4688_v21 = vpop.permute.xlu0 %787 }
 0x221   :  { %8203 = vst [vmem:[#allocation13_spill] sm:$0xff] %v4686_v3  ;;  %v326_v3 = vrot.slane %v4623_v45, 2 }
 0x222   :  { %8204 = vst [vmem:[#allocation14_spill] sm:$0xff] %v4688_v21 }
 0x225   :  { %945 = vrot.lane.b32.xlu2 %v8205_v24, %s3332_s13  ;;  %v8212_v24 = vld [vmem:[#allocation15_spill] sm:$0xff] }
 0x226   :  { %943 = vrot.lane.b32.xlu1 %v8206_v36, %s3332_s13  ;;  %941 = vrot.lane.b32.xlu0 %v8207_v38, %s3332_s13 }
 0x227   :  { %v4698_v41 = vpop.permute.xlu2 %847 }
 0x228   :  { %v4700_v47 = vpop.permute.xlu1 %827  ;;  %v4702_v43 = vpop.permute.xlu0 %825 }
 0x229   :  { %8208 = vst [vmem:[#allocation9_spill] sm:$0xff] %v4700_v47 }
 0x22a   :  { %8209 = vst [vmem:[#allocation16_spill] sm:$0xff] %v4702_v43 }
 0x22d   :  { %951 = vrot.lane.b32.xlu2 %v8210_v39, %s3332_s13  ;;  %v328_v39 = vsel %vm127_vm0, %v326_v3, %v327_v60  ;;  %v8219_v3 = vld [vmem:[#allocation21_spill] sm:$0xff] }
 0x22e   :  { %949 = vrot.lane.b32.xlu1 %v8211_v30, %s3332_s13  ;;  %947 = vrot.lane.b32.xlu0 %v8212_v24, %s3332_s13  ;;  %v8215_v30 = vld [vmem:[#allocation23_spill] sm:$0xff]  ;;  %v8216_v24 = vld [vmem:[#allocation18_spill] sm:$0xff] }
 0x22f   :  { %v4711_v36 = vpop.permute.xlu2 %853 }
 0x230   :  { %8213 = vst [vmem:[#allocation17_spill] sm:$0xff] %v4711_v36  ;;  %v4713_v38 = vpop.permute.xlu1 %833  ;;  %v4715_v37 = vpop.permute.xlu0 %831 }
 0x235   :  { %957 = vrot.lane.b32.xlu2 %v8214_v46, %s3332_s13 }
 0x236   :  { %955 = vrot.lane.b32.xlu1 %v8215_v30, %s3332_s13  ;;  %953 = vrot.lane.b32.xlu0 %v8216_v24, %s3332_s13 }
 0x237   :  { %v4726_v36 = vpop.permute.xlu2 %859 }
 0x238   :  { %8217 = vst [vmem:[#allocation12_spill] sm:$0xff] %v4726_v36  ;;  %v4728_v59 = vpop.permute.xlu1 %839  ;;  %v4730_v62 = vpop.permute.xlu0 %837  ;;  %v4747_v36 = vld [vmem:[%s7807_s0 + $0x1c0] sm:$0xf] }
 0x23d   :  { %963 = vrot.lane.b32.xlu2 %v8124_v26, %s3332_s13  ;;  %v8221_v26 = vld [vmem:[#allocation125_spill] sm:$0xff] }
 0x23e   :  { %961 = vrot.lane.b32.xlu1 %v8218_v32, %s3332_s13  ;;  %959 = vrot.lane.b32.xlu0 %v8219_v3, %s3332_s13  ;;  %v8222_v32 = vld [vmem:[#allocation126_spill] sm:$0xff]  ;;  %v324_v3 = vrot.slane %v4747_v36, 2 }
 0x23f   :  { %v4738_v46 = vpop.permute.xlu2 %865 }
 0x240   :  { %8220 = vst [vmem:[#allocation19_spill] sm:$0xff] %v4738_v46  ;;  %v4740_v30 = vpop.permute.xlu1 %845  ;;  %v4742_v24 = vpop.permute.xlu0 %843  ;;  %v325_v50 = vsel %vm127_vm0, %v322_v34, %v324_v3  ;;  %v8235_v3 = vld [vmem:[#allocation42_spill] sm:$0xff] }
 0x245   :  { %969 = vrot.lane.b32.xlu2 %v4338_v10, %s3332_s13  ;;  %v4766_v10 = vld [vmem:[%s7807_s0 + $0x1d8] sm:$0xf] }
 0x246   :  { %967 = vrot.lane.b32.xlu1 %v8221_v26, %s3332_s13  ;;  %965 = vrot.lane.b32.xlu0 %v8222_v32, %s3332_s13  ;;  %v329_v32 = vrot.slane %v4766_v10, 2 }
 0x247   :  { %v4756_v46 = vpop.permute.xlu2 %871 }
 0x248   :  { %8223 = vst [vmem:[#allocation20_spill] sm:$0xff] %v4756_v46  ;;  %v4758_v0 = vpop.permute.xlu1 %851  ;;  %v4760_v63 = vpop.permute.xlu0 %849  ;;  %v330_v34 = vsel %vm127_vm0, %v327_v60, %v329_v32 }
 0x24d   :  { %975 = vrot.lane.b32.xlu2 %v325_v50, %s3332_s13 }
 0x24e   :  { %973 = vrot.lane.b32.xlu1 %v323_v9, %s3332_s13  ;;  %971 = vrot.lane.b32.xlu0 %v4335_v17, %s3332_s13 }
 0x24f   :  { %v4772_v26 = vpop.permute.xlu2 %877 }
 0x250   :  { %8224 = vst [vmem:[#allocation15_spill] sm:$0xff] %v4772_v26  ;;  %v4775_v46 = vpop.permute.xlu1 %857  ;;  %v4777_v43 = vpop.permute.xlu0 %855 }
 0x251   :  { %8225 = vst [vmem:[#allocation22_spill] sm:$0xff] %v4775_v46 }
 0x252   :  { %8226 = vst [vmem:[#allocation23_spill] sm:$0xff] %v4777_v43  ;;  %v8242_v43 = vld [vmem:[#allocation53_spill] sm:$0xff] }
 0x255   :  { %1013 = vrot.lane.b32.xlu2 %v8134_v15, %s3333_s18 }
 0x256   :  { %979 = vrot.lane.b32.xlu1 %v330_v34, %s3332_s13  ;;  %977 = vrot.lane.b32.xlu0 %v328_v39, %s3332_s13 }
 0x257   :  { %v4784_v50 = vpop.permute.xlu2 %883 }
 0x258   :  { %8227 = vst [vmem:[#allocation18_spill] sm:$0xff] %v4784_v50  ;;  %v4786_v17 = vpop.permute.xlu1 %863  ;;  %v4788_v9 = vpop.permute.xlu0 %861 }
 0x259   :  { %8228 = vst [vmem:[#allocation25_spill] sm:$0xff] %v4786_v17  ;;  %v336_v17 = vrot.slane %v4623_v45, 4 }
 0x25a   :  { %8229 = vst [vmem:[#allocation21_spill] sm:$0xff] %v4788_v9  ;;  %v331_v9 = vrot.slane %v4601_v28, 4 }
 0x25d   :  { %1019 = vrot.lane.b32.xlu2 %v8139_v16, %s3333_s18 }
 0x25e   :  { %1017 = vrot.lane.b32.xlu1 %v3869_v58, %s3333_s18  ;;  %1015 = vrot.lane.b32.xlu0 %v3841_v5, %s3333_s18 }
 0x25f   :  { %v4796_v15 = vpop.permute.xlu2 %921 }
 0x260   :  { %8230 = vst [vmem:[#allocation125_spill] sm:$0xff] %v4796_v15  ;;  %v4798_v60 = vpop.permute.xlu1 %869  ;;  %v4800_v39 = vpop.permute.xlu0 %867 }
 0x261   :  { %8231 = vst [vmem:[#allocation126_spill] sm:$0xff] %v4798_v60  ;;  %v8245_v60 = vld [vmem:[#allocation51_spill] sm:$0xff] }
 0x262   :  { %8232 = vst [vmem:[#allocation179_spill] sm:$0xff] %v4800_v39  ;;  %v337_v39 = vrot.slane %v4618_v56, 4 }
 0x265   :  { %1025 = vrot.lane.b32.xlu2 %v8143_v8, %s3333_s18  ;;  %v8236_v8 = vld [vmem:[#allocation35_spill] sm:$0xff] }
 0x266   :  { %1023 = vrot.lane.b32.xlu1 %v3894_v2, %s3333_s18  ;;  %1021 = vrot.lane.b32.xlu0 %v8138_v51, %s3333_s18 }
 0x267   :  { %v4808_v16 = vpop.permute.xlu2 %927 }
 0x268   :  { %v4810_v58 = vpop.permute.xlu1 %875  ;;  %v4812_v5 = vpop.permute.xlu0 %873 }
 0x269   :  { %8233 = vst [vmem:[#allocation180_spill] sm:$0xff] %v4810_v58 }
 0x26a   :  { %8234 = vst [vmem:[#allocation181_spill] sm:$0xff] %v4812_v5 }
 0x26d   :  { %1031 = vrot.lane.b32.xlu2 %v8148_v13, %s3333_s18  ;;  %v8239_v13 = vld [vmem:[#allocation40_spill] sm:$0xff] }
 0x26e   :  { %1029 = vrot.lane.b32.xlu1 %v8235_v3, %s3333_s18  ;;  %1027 = vrot.lane.b32.xlu0 %v8236_v8, %s3333_s18 }
 0x26f   :  { %v4820_v32 = vpop.permute.xlu2 %933 }
 0x270   :  { %v4822_v2 = vpop.permute.xlu1 %881  ;;  %v4824_v51 = vpop.permute.xlu0 %879 }
 0x271   :  { %8237 = vst [vmem:[#allocation42_spill] sm:$0xff] %v4822_v2 }
 0x272   :  { %8238 = vst [vmem:[#allocation35_spill] sm:$0xff] %v4824_v51 }
 0x275   :  { %1037 = vrot.lane.b32.xlu2 %v8152_v35, %s3333_s18  ;;  %v8243_v35 = vld [vmem:[#allocation46_spill] sm:$0xff] }
 0x276   :  { %1035 = vrot.lane.b32.xlu1 %v3945_v42, %s3333_s18  ;;  %1033 = vrot.lane.b32.xlu0 %v8239_v13, %s3333_s18 }
 0x277   :  { %v4832_v34 = vpop.permute.xlu2 %939 }
 0x278   :  { %v4834_v3 = vpop.permute.xlu1 %919  ;;  %v4836_v8 = vpop.permute.xlu0 %917 }
 0x279   :  { %8240 = vst [vmem:[#allocation40_spill] sm:$0xff] %v4834_v3 }
 0x27a   :  { %8241 = vst [vmem:[#allocation182_spill] sm:$0xff] %v4836_v8 }
 0x27d   :  { %1043 = vrot.lane.b32.xlu2 %v8157_v4, %s3333_s18  ;;  %v332_v4 = vrot.slane %v4628_v55, 4  ;;  %v8247_v55 = vld [vmem:[#allocation63_spill] sm:$0xff] }
 0x27e   :  { %1041 = vrot.lane.b32.xlu1 %v8242_v43, %s3333_s18  ;;  %1039 = vrot.lane.b32.xlu0 %v8243_v35, %s3333_s18  ;;  %v338_v43 = vsel %vm208_vm1, %v336_v17, %v337_v39  ;;  %v8249_v17 = vld [vmem:[#allocation57_spill] sm:$0xff] }
 0x27f   :  { %v4844_v46 = vpop.permute.xlu2 %945  ;;  %v333_v35 = vsel %vm208_vm1, %v331_v9, %v332_v4 }
 0x280   :  { %v4846_v42 = vpop.permute.xlu1 %925  ;;  %v4848_v13 = vpop.permute.xlu0 %923 }
 0x281   :  { %8244 = vst [vmem:[#allocation53_spill] sm:$0xff] %v4848_v13 }
 0x285   :  { %1049 = vrot.lane.b32.xlu2 %v8161_v11, %s3333_s18  ;;  %v8248_v11 = vld [vmem:[#allocation64_spill] sm:$0xff] }
 0x286   :  { %1047 = vrot.lane.b32.xlu1 %v3996_v12, %s3333_s18  ;;  %1045 = vrot.lane.b32.xlu0 %v8245_v60, %s3333_s18 }
 0x287   :  { %v4862_v28 = vpop.permute.xlu2 %951 }
 0x288   :  { %8246 = vst [vmem:[#allocation46_spill] sm:$0xff] %v4862_v28  ;;  %v4864_v45 = vpop.permute.xlu1 %931  ;;  %v4866_v56 = vpop.permute.xlu0 %929  ;;  %v8251_v28 = vld [vmem:[#allocation68_spill] sm:$0xff] }
 0x28d   :  { %1055 = vrot.lane.b32.xlu2 %v8247_v55, %s3333_s18  ;;  %v8252_v55 = vld [vmem:[#allocation62_spill] sm:$0xff] }
 0x28e   :  { %1053 = vrot.lane.b32.xlu1 %v8248_v11, %s3333_s18  ;;  %1051 = vrot.lane.b32.xlu0 %v8249_v17, %s3333_s18 }
 0x28f   :  { %v4874_v9 = vpop.permute.xlu2 %957 }
 0x290   :  { %8250 = vst [vmem:[#allocation51_spill] sm:$0xff] %v4874_v9  ;;  %v4876_v12 = vpop.permute.xlu1 %937  ;;  %v4878_v60 = vpop.permute.xlu0 %935 }
 0x295   :  { %1061 = vrot.lane.b32.xlu2 %v4472_v40, %s3333_s18 }
 0x296   :  { %1059 = vrot.lane.b32.xlu1 %v8251_v28, %s3333_s18  ;;  %1057 = vrot.lane.b32.xlu0 %v8252_v55, %s3333_s18  ;;  %v334_v28 = vrot.slane %v4747_v36, 4 }
 0x297   :  { %v4886_v5 = vpop.permute.xlu2 %963 }
 0x298   :  { %8253 = vst [vmem:[#allocation63_spill] sm:$0xff] %v4886_v5  ;;  %v4888_v11 = vpop.permute.xlu1 %943  ;;  %v4890_v17 = vpop.permute.xlu0 %941  ;;  %v335_v5 = vsel %vm208_vm1, %v332_v4, %v334_v28  ;;  %v339_v28 = vrot.slane %v4766_v10, 4  ;;  %v3115_v10 = vld [vmem:[%s7807_s0 + $0x1f0] sm:$0xf] }
 0x29d   :  { %1067 = vrot.lane.b32.xlu2 %v4488_v27, %s3333_s18  ;;  %v4909_v27 = vld [vmem:[%s7807_s0 + $0x1e0] sm:$0xff] }
 0x29e   :  { %1065 = vrot.lane.b32.xlu1 %v4466_v14, %s3333_s18  ;;  %1063 = vrot.lane.b32.xlu0 %v4469_v7, %s3333_s18  ;;  %v4914_v14 = vld [vmem:[%s7807_s0 + $0x1e8] sm:$0xff]  ;;  %v1626_v7 = vrot.slane %v4909_v27, 2 }
 0x29f   :  { %v4898_v40 = vpop.permute.xlu2 %969  ;;  %v1627_v36 = vrot.slane %v4914_v14, 2 }
 0x2a0   :  { %8254 = vst [vmem:[#allocation64_spill] sm:$0xff] %v4898_v40  ;;  %v4901_v55 = vpop.permute.xlu1 %949  ;;  %v4903_v9 = vpop.permute.xlu0 %947 }
 0x2a1   :  { %8255 = vst [vmem:[#allocation57_spill] sm:$0xff] %v4901_v55  ;;  %v1628_v58 = vsel %vm127_vm0, %v1626_v7, %v1627_v36 }
 0x2a5   :  { %1073 = vrot.lane.b32.xlu2 %v338_v43, %s3333_s18  ;;  %v340_v43 = vsel %vm208_vm1, %v337_v39, %v339_v28 }
 0x2a6   :  { %1071 = vrot.lane.b32.xlu1 %v335_v5, %s3333_s18  ;;  %1069 = vrot.lane.b32.xlu0 %v333_v35, %s3333_s18  ;;  %v4933_v5 = vld [vmem:[%s7807_s0 + $0x1f8] sm:$0xff]  ;;  %v4938_v35 = vld [vmem:[%s7807_s0 + $0x200] sm:$0xff] }
 0x2a7   :  { %v4921_v4 = vpop.permute.xlu2 %975  ;;  %v1631_v39 = vrot.slane %v4933_v5, 2  ;;  %v1632_v7 = vrot.slane %v4938_v35, 2 }
 0x2a8   :  { %8256 = vst [vmem:[#allocation68_spill] sm:$0xff] %v4921_v4  ;;  %v4924_v55 = vpop.permute.xlu1 %955  ;;  %v4926_v40 = vpop.permute.xlu0 %953 }
 0x2a9   :  { %8257 = vst [vmem:[#allocation62_spill] sm:$0xff] %v4924_v55  ;;  %v1633_v4 = vsel %vm127_vm0, %v1631_v39, %v1632_v7 }
 0x2aa   :  { %8258 = vst [vmem:[#allocation183_spill] sm:$0xff] %v4926_v40  ;;  %v1629_v40 = vrot.slane %v3115_v10, 2  ;;  %v4966_v10 = vld [vmem:[%s7807_s0 + $0x208] sm:$0xf] }
 0x2ac   :  { %v1630_v8 = vsel %vm127_vm0, %v1627_v36, %v1629_v40 }
 0x2ad   :  { %1838 = vrot.lane.b32.xlu2 %v1628_v58, %s3326_s7  ;;  %v3119_v58 = vld [vmem:[%s7807_s0 + $0x210] sm:$0xff] }
 0x2ae   :  { %1075 = vrot.lane.b32.xlu0 %v340_v43, %s3333_s18  ;;  %v4961_v43 = vld [vmem:[%s7807_s0 + $0x218] sm:$0xff]  ;;  %v1636_v39 = vrot.slane %v3119_v58, 2  ;;  %v4995_v58 = vld [vmem:[%s7807_s0 + $0x220] sm:$0xf] }
 0x2af   :  { %v4947_v28 = vpop.permute.xlu2 %1013  ;;  %8262 = vst [vmem:[#allocation187_spill] sm:$0xff] %v4961_v43  ;;  %v1637_v40 = vrot.slane %v4961_v43, 2 }
 0x2b0   :  { %8259 = vst [vmem:[#allocation184_spill] sm:$0xff] %v4947_v28  ;;  %v4949_v55 = vpop.permute.xlu1 %961  ;;  %v4951_v26 = vpop.permute.xlu0 %959 }
 0x2b1   :  { %8260 = vst [vmem:[#allocation185_spill] sm:$0xff] %v4949_v55  ;;  %v4979_v51 = vsel %vm127_vm0, %v1636_v39, %v1637_v40 }
 0x2b2   :  { %8261 = vst [vmem:[#allocation186_spill] sm:$0xff] %v4951_v26  ;;  %v1634_v26 = vrot.slane %v4966_v10, 2 }
 0x2b3   :  { %8266 = vst [vmem:[#allocation191_spill] sm:$0xff] %v4979_v51 }
 0x2b4   :  { %v1635_v3 = vsel %vm127_vm0, %v1632_v7, %v1634_v26  ;;  %8269 = vst [vmem:[#allocation194_spill] sm:$0xff] %v4995_v58 }
 0x2b5   :  { %1842 = vrot.lane.b32.xlu2 %v1633_v4, %s3326_s7  ;;  %v4990_v4 = vld [vmem:[%s7807_s0 + $0x230] sm:$0xff] }
 0x2b6   :  { %1840 = vrot.lane.b32.xlu0 %v1630_v8, %s3326_s7  ;;  %v4985_v8 = vld [vmem:[%s7807_s0 + $0x228] sm:$0xff]  ;;  %8268 = vst [vmem:[#allocation193_spill] sm:$0xff] %v4990_v4  ;;  %v1642_v7 = vrot.slane %v4990_v4, 2 }
 0x2b7   :  { %v4971_v36 = vpop.permute.xlu2 %1019  ;;  %8267 = vst [vmem:[#allocation192_spill] sm:$0xff] %v4985_v8  ;;  %v1641_v26 = vrot.slane %v4985_v8, 2 }
 0x2b8   :  { %8263 = vst [vmem:[#allocation188_spill] sm:$0xff] %v4971_v36  ;;  %v4974_v55 = vpop.permute.xlu1 %967  ;;  %v4976_v28 = vpop.permute.xlu0 %965 }
 0x2b9   :  { %8264 = vst [vmem:[#allocation189_spill] sm:$0xff] %v4974_v55  ;;  %v5010_v15 = vsel %vm127_vm0, %v1641_v26, %v1642_v7 }
 0x2ba   :  { %8265 = vst [vmem:[#allocation190_spill] sm:$0xff] %v4976_v28  ;;  %v1639_v28 = vrot.slane %v4995_v58, 2 }
 0x2bb   :  { %8272 = vst [vmem:[#allocation197_spill] sm:$0xff] %v5010_v15 }
 0x2bc   :  { %v5013_v43 = vsel %vm127_vm0, %v1637_v40, %v1639_v28 }
 0x2bd   :  { %1846 = vrot.lane.b32.xlu2 %v4979_v51, %s3326_s7  ;;  %8273 = vst [vmem:[#allocation198_spill] sm:$0xff] %v5013_v43  ;;  %v5023_v51 = vld [vmem:[%s7807_s0 + $0x248] sm:$0xff] }
 0x2be   :  { %1844 = vrot.lane.b32.xlu0 %v1635_v3, %s3326_s7  ;;  %v5018_v3 = vld [vmem:[%s7807_s0 + $0x240] sm:$0xff]  ;;  %8275 = vst [vmem:[#allocation200_spill] sm:$0xff] %v5023_v51  ;;  %v1647_v40 = vrot.slane %v5023_v51, 2 }
 0x2bf   :  { %v5002_v39 = vpop.permute.xlu2 %1025  ;;  %8274 = vst [vmem:[#allocation199_spill] sm:$0xff] %v5018_v3  ;;  %v1646_v28 = vrot.slane %v5018_v3, 2 }
 0x2c0   :  { %v5005_v55 = vpop.permute.xlu1 %973  ;;  %v5007_v2 = vpop.permute.xlu0 %971 }
 0x2c1   :  { %8270 = vst [vmem:[#allocation195_spill] sm:$0xff] %v5005_v55  ;;  %v5041_v4 = vsel %vm127_vm0, %v1646_v28, %v1647_v40 }
 0x2c2   :  { %8271 = vst [vmem:[#allocation196_spill] sm:$0xff] %v5007_v2  ;;  %v3124_v2 = vld [vmem:[%s7807_s0 + $0x238] sm:$0xf] }
 0x2c3   :  { %v1644_v55 = vrot.slane %v3124_v2, 2  ;;  %8278 = vst [vmem:[#allocation203_spill] sm:$0xff] %v5041_v4  ;;  %v5059_v2 = vld [vmem:[%s7807_s0 + $0x250] sm:$0xf] }
 0x2c4   :  { %8282 = vst [vmem:[#allocation207_spill] sm:$0xff] %v5059_v2  ;;  %v1649_v3 = vrot.slane %v5059_v2, 2 }
 0x2c5   :  { %1850 = vrot.lane.b32.xlu2 %v5010_v15, %s3326_s7  ;;  %v5044_v8 = vsel %vm127_vm0, %v1642_v7, %v1644_v55  ;;  %v5054_v15 = vld [vmem:[%s7807_s0 + $0x260] sm:$0xff] }
 0x2c6   :  { %1848 = vrot.lane.b32.xlu0 %v5013_v43, %s3326_s7  ;;  %8279 = vst [vmem:[#allocation204_spill] sm:$0xff] %v5044_v8  ;;  %v5049_v43 = vld [vmem:[%s7807_s0 + $0x258] sm:$0xff]  ;;  %v8287_v21 = vrot.slane %v5054_v15, 2  ;;  %v5089_v61 = vsel %vm127_vm0, %v1647_v40, %v1649_v3 }
 0x2c7   :  { %v5034_v26 = vpop.permute.xlu2 %1031  ;;  %8280 = vst [vmem:[#allocation205_spill] sm:$0xff] %v5049_v43  ;;  %v1651_v55 = vrot.slane %v5049_v43, 2  ;;  %v8286_v43 = vld [vmem:[#allocation84_spill] sm:$0xff] }
 0x2c8   :  { %v5036_v58 = vpop.permute.xlu1 %979  ;;  %v5038_v50 = vpop.permute.xlu0 %977  ;;  %8281 = vst [vmem:[#allocation206_spill] sm:$0xff] %v5054_v15  ;;  %v8304_v15 = vld [vmem:[#allocation37_spill] sm:$0xff] }
 0x2c9   :  { %8276 = vst [vmem:[#allocation201_spill] sm:$0xff] %v5036_v58  ;;  %v8285_v58 = vld [vmem:[#allocation61_spill] sm:$0xff]  ;;  %v5084_v2 = vsel %vm127_vm0, %v1651_v55, %v8287_v21 }
 0x2ca   :  { %8277 = vst [vmem:[#allocation202_spill] sm:$0xff] %v5038_v50 }
 0x2cb   :  { %8288 = vst [vmem:[#allocation61_spill] sm:$0xff] %v5084_v2 }
 0x2cc   :  { %8290 = vst [vmem:[#allocation84_spill] sm:$0xff] %v5089_v61 }
 0x2cd   :  { %1854 = vrot.lane.b32.xlu2 %v5041_v4, %s3326_s7  ;;  %v3222_v4 = vld [vmem:[%s7807_s0 + $0xb0] sm:$0xff] }
 0x2ce   :  { %1852 = vrot.lane.b32.xlu0 %v5044_v8, %s3326_s7  ;;  %v1125_v8 = vsel %vm1109_vm2, %v3222_v4, %v8285_v58  ;;  %v5094_v4 = vld [vmem:[%s7807_s0 + $0x278] sm:$0xff] }
 0x2cf   :  { %v5067_v28 = vpop.permute.xlu2 %1037  ;;  %v1158_v7 = vsel %vm1142_vm3, %v1125_v8, %v8286_v43  ;;  %v3133_v43 = vld [vmem:[%s7807_s0 + $0x280] sm:$0xf] }
 0x2d0   :  { %v5070_v51 = vpop.permute.xlu1 %1017  ;;  %v5072_v50 = vpop.permute.xlu0 %1015 }
 0x2d1   :  { %8283 = vst [vmem:[#allocation208_spill] sm:$0xff] %v5070_v51  ;;  %v8289_v51 = vld [vmem:[#allocation123_spill] sm:$0xff] }
 0x2d2   :  { %8284 = vst [vmem:[#allocation209_spill] sm:$0xff] %v5072_v50  ;;  %v1191_v50 = vsel %vm1175_vm4, %v1158_v7, %v8289_v51  ;;  %v5104_v51 = vld [vmem:[%s7807_s0 + $0x270] sm:$0xff] }
 0x2d3   :  { %8291 = vst [vmem:[#allocation123_spill] sm:$0xff] %v5094_v4  ;;  %v1224_v21 = vsel %vm1208_vm5, %v1191_v50, %v4463_v53  ;;  %v1657_v53 = vrot.slane %v5094_v4, 2  ;;  %v1659_v50 = vrot.slane %v3133_v43, 2 }
 0x2d4   :  { %8292 = vst [vmem:[#allocation210_spill] sm:$0xff] %v5104_v51  ;;  %v1257_v8 = vsel %vm1241_vm6, %v1224_v21, %v4556_v19  ;;  %v1656_v19 = vrot.slane %v5104_v51, 2  ;;  %v5209_v51 = vld [vmem:[%s7807_s0 + $0x2d8] sm:$0xff] }
 0x2d5   :  { %1858 = vrot.lane.b32.xlu2 %v5084_v2, %s3326_s7  ;;  %v1290_v58 = vsel %vm1274_vm7, %v1257_v8, %v4758_v0  ;;  %v5125_v21 = vsel %vm127_vm0, %v1657_v53, %v1659_v50  ;;  %v5138_v8 = vld [vmem:[%s7807_s0 + $0x298] sm:$0xf] }
 0x2d6   :  { %1856 = vrot.lane.b32.xlu0 %v5089_v61, %s3326_s7  ;;  %v1323_v3 = vsel %vm1307_vm8, %v1290_v58, %v4903_v9  ;;  %8294 = vst [vmem:[#allocation212_spill] sm:$0xff] %v5125_v21  ;;  %v5128_v43 = vsel %vm127_vm0, %v1656_v19, %v1657_v53  ;;  %v5133_v9 = vld [vmem:[%s7807_s0 + $0x290] sm:$0xff]  ;;  %v5143_v58 = vld [vmem:[%s7807_s0 + $0x288] sm:$0xff]  ;;  %v1664_v50 = vrot.slane %v5138_v8, 2  ;;  %v5175_v61 = vld [vmem:[%s7807_s0 + $0x2a0] sm:$0xff] }
 0x2d7   :  { %v1044_v40 = vpop.permute.xlu2 %1043  ;;  %8295 = vst [vmem:[#allocation213_spill] sm:$0xff] %v5128_v43  ;;  %v1662_v53 = vrot.slane %v5133_v9, 2 }
 0x2d8   :  { %v5118_v55 = vpop.permute.xlu1 %1023  ;;  %v5120_v7 = vpop.permute.xlu0 %1021  ;;  %v1356_v0 = vsel %vm1340_vm10, %v1323_v3, %v1044_v40  ;;  %8296 = vst [vmem:[#allocation214_spill] sm:$0xff] %v5133_v9  ;;  %v1661_v3 = vrot.slane %v5143_v58, 2  ;;  %v3223_v9 = vld [vmem:[%s7807_s0 + $0xa8] sm:$0xff] }
 0x2d9   :  { %8293 = vst [vmem:[#allocation211_spill] sm:$0xff] %v5120_v7  ;;  %3079 = vmatpush.xpose.msk.msra.mxu0 %vm1373_vm9, %v1356_v0  ;;  %v5157_v0 = vsel %vm127_vm0, %v1662_v53, %v1664_v50 }
 0x2da   :  { %8297 = vst [vmem:[#allocation215_spill] sm:$0xff] %v5138_v8  ;;  %v5160_v2 = vsel %vm127_vm0, %v1661_v3, %v1662_v53  ;;  %v1666_v3 = vrot.slane %v5175_v61, 2 }
 0x2db   :  { %8298 = vst [vmem:[#allocation216_spill] sm:$0xff] %v5143_v58 }
 0x2dc   :  { %8299 = vst [vmem:[#allocation217_spill] sm:$0xff] %v5157_v0 }
 0x2dd   :  { %1864 = vrot.lane.b32.xlu2 %v5125_v21, %s3326_s7  ;;  %8300 = vst [vmem:[#allocation218_spill] sm:$0xff] %v5160_v2  ;;  %v5165_v21 = vld [vmem:[%s7807_s0 + $0x2a8] sm:$0xff] }
 0x2de   :  { %1862 = vrot.lane.b32.xlu0 %v5128_v43, %s3326_s7  ;;  %8301 = vst [vmem:[#allocation219_spill] sm:$0xff] %v5165_v21  ;;  %v5170_v43 = vld [vmem:[%s7807_s0 + $0x2b0] sm:$0xf]  ;;  %v1667_v53 = vrot.slane %v5165_v21, 2 }
 0x2df   :  { %8302 = vst [vmem:[#allocation220_spill] sm:$0xff] %v5170_v43  ;;  %v1669_v50 = vrot.slane %v5170_v43, 2 }
 0x2e0   :  { %v5152_v40 = vpop.permute.xlu1 %1029  ;;  %v5154_v19 = vpop.permute.xlu0 %1027  ;;  %8303 = vst [vmem:[#allocation221_spill] sm:$0xff] %v5175_v61  ;;  %v5199_v43 = vsel %vm127_vm0, %v1666_v3, %v1667_v53  ;;  %v5204_v61 = vld [vmem:[%s7807_s0 + $0x2d0] sm:$0xff]  ;;  %v3224_v3 = vld [vmem:[%s7807_s0 + $0x98] sm:$0xff] }
 0x2e1   :  { %v5194_v4 = vsel %vm127_vm0, %v1667_v53, %v1669_v50  ;;  %8308 = vst [vmem:[#allocation222_spill] sm:$0xff] %v5204_v61  ;;  %v8310_v53 = vld [vmem:[#allocation41_spill] sm:$0xff]  ;;  %v1676_v48 = vrot.slane %v5204_v61, 2  ;;  %v8314_v61 = vld [vmem:[#allocation146_spill] sm:$0xff] }
 0x2e2   :  { %8305 = vst [vmem:[#allocation37_spill] sm:$0xff] %v5194_v4 }
 0x2e5   :  { %1868 = vrot.lane.b32.xlu2 %v5157_v0, %s3326_s7  ;;  %v1124_v0 = vsel %vm1109_vm2, %v3223_v9, %v8304_v15  ;;  %v8309_v15 = vld [vmem:[#allocation124_spill] sm:$0xff] }
 0x2e6   :  { %1866 = vrot.lane.b32.xlu0 %v5160_v2, %s3326_s7  ;;  %v8306_v2 = vld [vmem:[#allocation94_spill] sm:$0xff] }
 0x2e7   :  { %v1157_v21 = vsel %vm1142_vm3, %v1124_v0, %v8306_v2  ;;  %8307 = vst [vmem:[#allocation94_spill] sm:$0xff] %v5199_v43  ;;  %v5216_v2 = vld [vmem:[%s7807_s0 + $0x2c0] sm:$0xff]  ;;  %v3142_v0 = vld [vmem:[%s7807_s0 + $0x2c8] sm:$0xf] }
 0x2e8   :  { %v5184_v58 = vpop.permute.xlu1 %1035  ;;  %v5186_v8 = vpop.permute.xlu0 %1033  ;;  %v1190_v9 = vsel %vm1175_vm4, %v1157_v21, %v8309_v15  ;;  %v8311_v21 = vld [vmem:[#allocation55_spill] sm:$0xff]  ;;  %v7938_v47 = vrot.slane %v5216_v2, 2  ;;  %v1674_v25 = vrot.slane %v3142_v0, 2 }
 0x2e9   :  { %v1223_v50 = vsel %vm1208_vm5, %v1190_v9, %v8310_v53  ;;  %v1123_v15 = vsel %vm1109_vm2, %v3224_v3, %v8311_v21  ;;  %v8312_v53 = vld [vmem:[#allocation95_spill] sm:$0xff]  ;;  %v8313_v3 = vld [vmem:[#allocation10_spill] sm:$0xff] }
 0x2ea   :  { %v1256_v36 = vsel %vm1241_vm6, %v1223_v50, %v4594_v29 }
 0x2eb   :  { %v1289_v13 = vsel %vm1274_vm7, %v1256_v36, %v4760_v63  ;;  %v3225_v63 = vld [vmem:[%s7807_s0 + $0x90] sm:$0xff]  ;;  %v8315_v36 = vld [vmem:[#allocation56_spill] sm:$0xff] }
 0x2ec   :  { %v1322_v29 = vsel %vm1307_vm8, %v1289_v13, %v4844_v46  ;;  %v1122_v0 = vsel %vm1109_vm2, %v3225_v63, %v8315_v36  ;;  %v8316_v46 = vrot.slane %v5209_v51, 2  ;;  %v3226_v63 = vld [vmem:[%s7807_s0 + $0x80] sm:$0xff]  ;;  %v8320_v36 = vld [vmem:[#allocation32_spill] sm:$0xff] }
 0x2ed   :  { %1872 = vrot.lane.b32.xlu2 %v5194_v4, %s3326_s7  ;;  %v1156_v4 = vsel %vm1142_vm3, %v1123_v15, %v8312_v53 }
 0x2ee   :  { %1870 = vrot.lane.b32.xlu0 %v5199_v43, %s3326_s7  ;;  %v1189_v21 = vsel %vm1175_vm4, %v1156_v4, %v8313_v3  ;;  %v5259_v13 = vsel %vm127_vm0, %v1676_v48, %v8316_v46  ;;  %v5268_v3 = vsel %vm127_vm0, %v7938_v47, %v1674_v25  ;;  %v5278_v48 = vld [vmem:[%s7807_s0 + $0x2f8] sm:$0xf]  ;;  %v5287_v25 = vld [vmem:[%s7807_s0 + $0x2e8] sm:$0xff] }
 0x2ef   :  { %v1222_v9 = vsel %vm1208_vm5, %v1189_v21, %v8314_v61  ;;  %v8317_v61 = vld [vmem:[#allocation81_spill] sm:$0xff]  ;;  %v8319_v21 = vld [vmem:[#allocation147_spill] sm:$0xff]  ;;  %v1684_v46 = vrot.slane %v5278_v48, 2 }
 0x2f0   :  { %v1042_v50 = vpop.permute.xlu1 %1041  ;;  %v1040_v43 = vpop.permute.xlu0 %1039  ;;  %v1255_v4 = vsel %vm1241_vm6, %v1222_v9, %v4596_v57  ;;  %v1155_v15 = vsel %vm1142_vm3, %v1122_v0, %v8317_v61  ;;  %v5273_v57 = vld [vmem:[%s7807_s0 + $0x2f0] sm:$0xff] }
 0x2f1   :  { %v1355_v7 = vsel %vm1340_vm10, %v1322_v29, %v1042_v50  ;;  %v1288_v53 = vsel %vm1274_vm7, %v1255_v4, %v4698_v41  ;;  %v1682_v4 = vrot.slane %v5273_v57, 2 }
 0x2f2   :  { %3080 = vmatpush.xpose.msk.msra.mxu0 %vm1373_vm9, %v1355_v7  ;;  %v8318_v7 = vld [vmem:[#allocation120_spill] sm:$0xff]  ;;  %v1321_v41 = vsel %vm1307_vm8, %v1288_v53, %v4888_v11  ;;  %v1121_v11 = vsel %vm1109_vm2, %v3226_v63, %v8320_v36  ;;  %v1681_v53 = vrot.slane %v5287_v25, 2  ;;  %v8324_v63 = vld [vmem:[#allocation49_spill] sm:$0xff] }
 0x2f3   :  { %v1188_v9 = vsel %vm1175_vm4, %v1155_v15, %v8318_v7  ;;  %v1354_v50 = vsel %vm1340_vm10, %v1321_v41, %v1040_v43  ;;  %v8321_v43 = vld [vmem:[#allocation91_spill] sm:$0xff]  ;;  %v8322_v7 = vld [vmem:[#allocation121_spill] sm:$0xff] }
 0x2f4   :  { %v1221_v29 = vsel %vm1208_vm5, %v1188_v9, %v8319_v21  ;;  %v1154_v61 = vsel %vm1142_vm3, %v1121_v11, %v8321_v43  ;;  %v8323_v21 = vld [vmem:[#allocation36_spill] sm:$0xff] }
 0x2f5   :  { %1878 = vrot.lane.b32.xlu2 %v5259_v13, %s3326_s7  ;;  %v1254_v0 = vsel %vm1241_vm6, %v1221_v29, %v4544_v23  ;;  %v1187_v23 = vsel %vm1175_vm4, %v1154_v61, %v8322_v7  ;;  %v5336_v61 = vpop.permute.xlu2 %1049  ;;  %v8326_v7 = vld [vmem:[#allocation8_spill] sm:$0xff] }
 0x2f6   :  { %1876 = vrot.lane.b32.xlu0 %v5268_v3, %s3326_s7  ;;  %3081 = vmatpush.xpose.msk.msra.mxu0 %vm1373_vm9, %v1354_v50  ;;  %v1287_v15 = vsel %vm1274_vm7, %v1254_v0, %v4740_v30  ;;  %v1220_v29 = vsel %vm1208_vm5, %v1187_v23, %v8323_v21  ;;  %v3227_v30 = vld [vmem:[%s7807_s0 + $0x78] sm:$0xff] }
 0x2f7   :  { %v1320_v9 = vsel %vm1307_vm8, %v1287_v15, %v4890_v17  ;;  %v1120_v36 = vsel %vm1109_vm2, %v3227_v30, %v8324_v63  ;;  %v1253_v11 = vsel %vm1241_vm6, %v1220_v29, %v4582_v31  ;;  %v5330_v17 = vsel %vm127_vm0, %v1682_v4, %v1684_v46  ;;  %v8325_v0 = vld [vmem:[#allocation92_spill] sm:$0xff]  ;;  %v5349_v46 = vld [vmem:[%s7807_s0 + $0x320] sm:$0xff] }
 0x2f8   :  { %v5315_v41 = vpop.permute.xlu0 %1045  ;;  %v1353_v50 = vsel %vm1340_vm10, %v1320_v9, %v5067_v28  ;;  %v1153_v43 = vsel %vm1142_vm3, %v1120_v36, %v8325_v0  ;;  %v1286_v28 = vsel %vm1274_vm7, %v1253_v11, %v4742_v24  ;;  %v5339_v15 = vsel %vm127_vm0, %v1681_v53, %v1682_v4  ;;  %v5344_v31 = vld [vmem:[%s7807_s0 + $0x318] sm:$0xff]  ;;  %v5358_v4 = vld [vmem:[%s7807_s0 + $0x308] sm:$0xff]  ;;  %v3151_v53 = vld [vmem:[%s7807_s0 + $0x310] sm:$0xf] }
 0x2f9   :  { %v1186_v23 = vsel %vm1175_vm4, %v1153_v43, %v8326_v7  ;;  %v1319_v24 = vsel %vm1307_vm8, %v1286_v28, %v4832_v34  ;;  %v8327_v9 = vld [vmem:[#allocation144_spill] sm:$0xff]  ;;  %v3228_v34 = vld [vmem:[%s7807_s0 + $0x68] sm:$0xff]  ;;  %v1691_v36 = vrot.slane %v5344_v31, 2  ;;  %v7932_v11 = vrot.slane %v5349_v46, 2  ;;  %v5385_v28 = vpop.permute.xlu1 %1047 }
 0x2fa   :  { %3082 = vmatpush.xpose.msk.msra.mxu0 %vm1373_vm9, %v1353_v50  ;;  %v1219_v21 = vsel %vm1208_vm5, %v1186_v23, %v8327_v9  ;;  %v1352_v29 = vsel %vm1340_vm10, %v1319_v24, %v5184_v58  ;;  %v8328_v50 = vld [vmem:[#allocation50_spill] sm:$0xff]  ;;  %v7937_v7 = vrot.slane %v5358_v4, 2  ;;  %v8330_v23 = vld [vmem:[#allocation117_spill] sm:$0xff] }
 0x2fb   :  { %v1119_v30 = vsel %vm1109_vm2, %v3228_v34, %v8328_v50  ;;  %v1252_v63 = vsel %vm1241_vm6, %v1219_v21, %v4584_v33  ;;  %v8329_v58 = vld [vmem:[#allocation78_spill] sm:$0xff]  ;;  %v1689_v33 = vrot.slane %v3151_v53, 2 }
 0x2fc   :  { %v1152_v0 = vsel %vm1142_vm3, %v1119_v30, %v8329_v58  ;;  %v1285_v43 = vsel %vm1274_vm7, %v1252_v63, %v4684_v6  ;;  %v3229_v6 = vld [vmem:[%s7807_s0 + $0x60] sm:$0xff]  ;;  %v8333_v58 = vld [vmem:[#allocation88_spill] sm:$0xff] }
 0x2fd   :  { %1884 = vrot.lane.b32.xlu2 %v5330_v17, %s3326_s7  ;;  %v1185_v24 = vsel %vm1175_vm4, %v1152_v0, %v8330_v23  ;;  %v1318_v9 = vsel %vm1307_vm8, %v1285_v43, %v4876_v12  ;;  %v8332_v30 = vld [vmem:[#allocation29_spill] sm:$0xff]  ;;  %v5409_v12 = vsel %vm127_vm0, %v1691_v36, %v7932_v11  ;;  %v5418_v43 = vsel %vm127_vm0, %v7937_v7, %v1689_v33  ;;  %v8335_v23 = vld [vmem:[#allocation118_spill] sm:$0xff]  ;;  %v5437_v33 = vld [vmem:[%s7807_s0 + $0x330] sm:$0xff] }
 0x2fe   :  { %1882 = vrot.lane.b32.xlu0 %v5339_v15, %s3326_s7  ;;  %3083 = vmatpush.xpose.msk.msra.mxu0 %vm1373_vm9, %v1352_v29  ;;  %v8331_v29 = vld [vmem:[#allocation145_spill] sm:$0xff]  ;;  %v1351_v50 = vsel %vm1340_vm10, %v1318_v9, %v5186_v8  ;;  %v1118_v53 = vsel %vm1109_vm2, %v3229_v6, %v8332_v30  ;;  %8334 = vst [vmem:[#allocation124_spill] sm:$0xff] %v5418_v43  ;;  %v8336_v9 = vld [vmem:[#allocation30_spill] sm:$0xff]  ;;  %v8337_v6 = vld [vmem:[#allocation44_spill] sm:$0xff] }
 0x2ff   :  { %v1218_v34 = vsel %vm1208_vm5, %v1185_v24, %v8331_v29  ;;  %v1151_v8 = vsel %vm1142_vm3, %v1118_v53, %v8333_v58  ;;  %v5428_v36 = vld [vmem:[%s7807_s0 + $0x340] sm:$0xf]  ;;  %v8470_v7 = vld [vmem:[#allocation119_spill] sm:$0xff] }
 0x300   :  { %v5392_v21 = vpop.permute.xlu0 %1051  ;;  %v1251_v63 = vsel %vm1241_vm6, %v1218_v34, %v4532_v49  ;;  %v5423_v49 = vld [vmem:[%s7807_s0 + $0x338] sm:$0xff]  ;;  %v1184_v24 = vsel %vm1175_vm4, %v1151_v8, %v8335_v23  ;;  %v5441_v34 = vpop.permute.xlu2 %1055  ;;  %v1699_v58 = vrot.slane %v5428_v36, 2  ;;  %v1696_v23 = vrot.slane %v5437_v33, 2 }
 0x301   :  { %v1284_v0 = vsel %vm1274_vm7, %v1251_v63, %v4728_v59  ;;  %v1217_v29 = vsel %vm1208_vm5, %v1184_v24, %v8336_v9  ;;  %v1697_v63 = vrot.slane %v5423_v49, 2  ;;  %v8339_v24 = vld [vmem:[#allocation5_spill] sm:$0xff] }
 0x302   :  { %3084 = vmatpush.xpose.msk.msra.mxu0 %vm1373_vm9, %v1351_v50  ;;  %v1317_v59 = vsel %vm1307_vm8, %v1284_v0, %v4878_v60  ;;  %v3230_v60 = vld [vmem:[%s7807_s0 + $0x50] sm:$0xff]  ;;  %v1250_v53 = vsel %vm1241_vm6, %v1217_v29, %v4570_v44  ;;  %v8340_v29 = vld [vmem:[#allocation142_spill] sm:$0xff] }
 0x303   :  { %v1350_v50 = vsel %vm1340_vm10, %v1317_v59, %v5034_v26  ;;  %v1117_v30 = vsel %vm1109_vm2, %v3230_v60, %v8337_v6  ;;  %v8338_v26 = vld [vmem:[#allocation89_spill] sm:$0xff]  ;;  %v1283_v0 = vsel %vm1274_vm7, %v1250_v53, %v4730_v62  ;;  %v5472_v60 = vpop.permute.xlu1 %1053  ;;  %v3231_v62 = vld [vmem:[%s7807_s0 + $0x48] sm:$0xff] }
 0x304   :  { %v1150_v8 = vsel %vm1142_vm3, %v1117_v30, %v8338_v26  ;;  %v1316_v59 = vsel %vm1307_vm8, %v1283_v0, %v4820_v32  ;;  %v8341_v30 = vld [vmem:[#allocation45_spill] sm:$0xff]  ;;  %v5485_v26 = vsel %vm127_vm0, %v1697_v63, %v1699_v58  ;;  %v5501_v58 = vld [vmem:[%s7807_s0 + $0x350] sm:$0xff] }
 0x305   :  { %1890 = vrot.lane.b32.xlu2 %v5409_v12, %s3326_s7  ;;  %v1183_v44 = vsel %vm1175_vm4, %v1150_v8, %v8339_v24  ;;  %v1349_v6 = vsel %vm1340_vm10, %v1316_v59, %v5152_v40  ;;  %v1116_v53 = vsel %vm1109_vm2, %v3231_v62, %v8341_v30  ;;  %v8342_v8 = vld [vmem:[#allocation75_spill] sm:$0xff]  ;;  %v5492_v24 = vsel %vm127_vm0, %v1696_v23, %v1697_v63 }
 0x306   :  { %1888 = vrot.lane.b32.xlu0 %v5418_v43, %s3326_s7  ;;  %3085 = vmatpush.xpose.msk.msra.mxu0 %vm1373_vm9, %v1350_v50  ;;  %v1216_v50 = vsel %vm1208_vm5, %v1183_v44, %v8340_v29  ;;  %v1149_v0 = vsel %vm1142_vm3, %v1116_v53, %v8342_v8  ;;  %8343 = vst [vmem:[#allocation41_spill] sm:$0xff] %v5492_v24  ;;  %v8344_v44 = vld [vmem:[#allocation114_spill] sm:$0xff]  ;;  %v3160_v29 = vld [vmem:[%s7807_s0 + $0x358] sm:$0xf]  ;;  %v8346_v23 = vld [vmem:[#allocation27_spill] sm:$0xff]  ;;  %v1706_v30 = vrot.slane %v4909_v27, 4 }
 0x307   :  { %v1249_v32 = vsel %vm1241_vm6, %v1216_v50, %v4572_v54  ;;  %v1182_v59 = vsel %vm1175_vm4, %v1149_v0, %v8344_v44  ;;  %v8345_v50 = vld [vmem:[#allocation143_spill] sm:$0xff]  ;;  %v7930_v53 = vrot.slane %v4914_v14, 4 }
 0x308   :  { %v5468_v9 = vpop.permute.xlu0 %1057  ;;  %v1282_v40 = vsel %vm1274_vm7, %v1249_v32, %v4672_v1  ;;  %v1215_v1 = vsel %vm1208_vm5, %v1182_v59, %v8345_v50  ;;  %v5528_v0 = vpop.permute.xlu2 %1061  ;;  %v8348_v44 = vld [vmem:[#allocation115_spill] sm:$0xff]  ;;  %v8349_v50 = vld [vmem:[#allocation28_spill] sm:$0xff] }
 0x309   :  { %v1315_v54 = vsel %vm1307_vm8, %v1282_v40, %v4864_v45  ;;  %v3232_v45 = vld [vmem:[%s7807_s0 + $0x38] sm:$0xff]  ;;  %v1248_v62 = vsel %vm1241_vm6, %v1215_v1, %v4520_v52  ;;  %v7931_v40 = vrot.slane %v5501_v58, 2  ;;  %v1704_v52 = vrot.slane %v3160_v29, 2 }
 0x30a   :  { %3086 = vmatpush.xpose.msk.msra.mxu0 %vm1373_vm9, %v1349_v6  ;;  %v1348_v63 = vsel %vm1340_vm10, %v1315_v54, %v5154_v19  ;;  %v1115_v6 = vsel %vm1109_vm2, %v3232_v45, %v8346_v23  ;;  %v8347_v19 = vld [vmem:[#allocation85_spill] sm:$0xff]  ;;  %v1281_v8 = vsel %vm1274_vm7, %v1248_v62, %v4713_v38  ;;  %v3233_v38 = vld [vmem:[%s7807_s0 + $0x30] sm:$0xff]  ;;  %v8350_v45 = vld [vmem:[#allocation26_spill] sm:$0xff] }
 0x30b   :  { %v1148_v32 = vsel %vm1142_vm3, %v1115_v6, %v8347_v19  ;;  %v1314_v54 = vsel %vm1307_vm8, %v1281_v8, %v4866_v56  ;;  %v1114_v29 = vsel %vm1109_vm2, %v3233_v38, %v8350_v45  ;;  %v1708_v56 = vsel %vm208_vm1, %v1706_v30, %v7930_v53  ;;  %v8351_v6 = vld [vmem:[#allocation86_spill] sm:$0xff]  ;;  %v5556_v19 = vpop.permute.xlu1 %1059  ;;  %v8353_v30 = vld [vmem:[#allocation140_spill] sm:$0xff] }
 0x30c   :  { %v1181_v59 = vsel %vm1175_vm4, %v1148_v32, %v8348_v44  ;;  %v1147_v62 = vsel %vm1142_vm3, %v1114_v29, %v8351_v6  ;;  %v5561_v32 = vsel %vm127_vm0, %v7931_v40, %v1704_v52  ;;  %v8354_v52 = vld [vmem:[#allocation38_spill] sm:$0xff]  ;;  %v1711_v29 = vrot.slane %v4933_v5, 4 }
 0x30d   :  { %1896 = vrot.lane.b32.xlu2 %v5485_v26, %s3326_s7  ;;  %v1214_v1 = vsel %vm1208_vm5, %v1181_v59, %v8349_v50 }
 0x30e   :  { %1894 = vrot.lane.b32.xlu0 %v5492_v24, %s3326_s7  ;;  %3087 = vmatpush.xpose.msk.msra.mxu0 %vm1373_vm9, %v1348_v63  ;;  %v1347_v63 = vsel %vm1340_vm10, %v1314_v54, %v5002_v39  ;;  %v1247_v23 = vsel %vm1241_vm6, %v1214_v1, %v4558_v18  ;;  %v8352_v18 = vld [vmem:[#allocation105_spill] sm:$0xff] }
 0x30f   :  { %v1280_v39 = vsel %vm1274_vm7, %v1247_v23, %v4715_v37  ;;  %v1180_v8 = vsel %vm1175_vm4, %v1147_v62, %v8352_v18  ;;  %v3234_v54 = vld [vmem:[%s7807_s0 + $0x20] sm:$0xff]  ;;  %v8358_v62 = vld [vmem:[#allocation111_spill] sm:$0xff]  ;;  %v3237_v18 = vld [vmem:[%s7807_s0 + $0x8] sm:$0xff] }
 0x310   :  { %v5535_v27 = vpop.permute.xlu0 %1063  ;;  %v1313_v44 = vsel %vm1307_vm8, %v1280_v39, %v4808_v16  ;;  %v1213_v59 = vsel %vm1208_vm5, %v1180_v8, %v8353_v30  ;;  %v1113_v50 = vsel %vm1109_vm2, %v3234_v54, %v8354_v52  ;;  %v1712_v16 = vrot.slane %v4938_v35, 4  ;;  %v8356_v23 = vld [vmem:[#allocation33_spill] sm:$0xff]  ;;  %v8359_v8 = vld [vmem:[#allocation39_spill] sm:$0xff]  ;;  %v3238_v30 = vld [vmem:[%s7807_s0 + $0x158] sm:$0xff] }
 0x311   :  { %v1346_v37 = vsel %vm1340_vm10, %v1313_v44, %v5118_v55  ;;  %v1246_v1 = vsel %vm1241_vm6, %v1213_v59, %v4560_v20  ;;  %v8355_v55 = vld [vmem:[#allocation72_spill] sm:$0xff]  ;;  %v3236_v35 = vld [vmem:[%s7807_s0] sm:$0xff]  ;;  %v1111_v44 = vsel %vm1109_vm2, %v3237_v18, %v8359_v8  ;;  %v8367_v18 = vld [vmem:[#allocation110_spill] sm:$0xff] }
 0x312   :  { %3088 = vmatpush.xpose.msk.msra.mxu0 %vm1373_vm9, %v1347_v63  ;;  %v1714_v63 = vrot.slane %v4966_v10, 4  ;;  %v1146_v38 = vsel %vm1142_vm3, %v1113_v50, %v8355_v55  ;;  %v1279_v45 = vsel %vm1274_vm7, %v1246_v1, %v4660_v22  ;;  %v3235_v20 = vld [vmem:[%s7807_s0 + $0x18] sm:$0xff]  ;;  %v8357_v10 = vld [vmem:[#allocation34_spill] sm:$0xff]  ;;  %v8360_v59 = vld [vmem:[#allocation65_spill] sm:$0xff] }
 0x313   :  { %v1110_v6 = vsel %vm1109_vm2, %v3236_v35, %v8357_v10  ;;  %v1179_v39 = vsel %vm1175_vm4, %v1146_v38, %v8358_v62  ;;  %v1312_v22 = vsel %vm1307_vm8, %v1279_v45, %v4846_v42  ;;  %v8361_v54 = vld [vmem:[#allocation141_spill] sm:$0xff]  ;;  %v5617_v42 = vpop.permute.xlu2 %1067  ;;  %v8362_v50 = vld [vmem:[#allocation211_spill] sm:$0xff]  ;;  %v8365_v35 = vld [vmem:[#allocation156_spill] sm:$0xff] }
 0x314   :  { %v1212_v52 = vsel %vm1208_vm5, %v1179_v39, %v8361_v54  ;;  %v1345_v1 = vsel %vm1340_vm10, %v1312_v22, %v8362_v50  ;;  %v8363_v55 = vld [vmem:[#allocation69_spill] sm:$0xff]  ;;  %v3239_v45 = vld [vmem:[%s7807_s0 + $0x170] sm:$0xff]  ;;  %v1715_v62 = vsel %vm208_vm1, %v1712_v16, %v1714_v63  ;;  %v8366_v39 = vld [vmem:[#allocation82_spill] sm:$0xff] }
 0x315   :  { %1934 = vrot.lane.b32.xlu2 %v1708_v56, %s3327_s11  ;;  %v1112_v56 = vsel %vm1109_vm2, %v3235_v20, %v8356_v23  ;;  %v1143_v38 = vsel %vm1142_vm3, %v1110_v6, %v8363_v55  ;;  %v8364_v20 = vld [vmem:[#allocation79_spill] sm:$0xff]  ;;  %v1245_v10 = vsel %vm1241_vm6, %v1212_v52, %v8365_v35  ;;  %v8368_v8 = vld [vmem:[#allocation9_spill] sm:$0xff]  ;;  %v3240_v54 = vld [vmem:[%s7807_s0 + $0x168] sm:$0xff] }
 0x316   :  { %1900 = vrot.lane.b32.xlu0 %v5561_v32, %s3326_s7  ;;  %3089 = vmatpush.xpose.msk.msra.mxu0 %vm1373_vm9, %v1346_v37  ;;  %v1139_v37 = vsel %vm1109_vm2, %v3238_v30, %v8360_v59  ;;  %v1141_v23 = vsel %vm1109_vm2, %v3239_v45, %v8364_v20  ;;  %v1145_v22 = vsel %vm1142_vm3, %v1112_v56, %v8366_v39  ;;  %v8369_v52 = vld [vmem:[#allocation80_spill] sm:$0xff]  ;;  %v8371_v55 = vld [vmem:[#allocation129_spill] sm:$0xff] }
 0x317   :  { %v1174_v6 = vsel %vm1142_vm3, %v1141_v23, %v8367_v18  ;;  %v1278_v30 = vsel %vm1274_vm7, %v1245_v10, %v8368_v8  ;;  %v1713_v59 = vsel %vm208_vm1, %v1711_v29, %v1712_v16  ;;  %v1140_v50 = vsel %vm1109_vm2, %v3240_v54, %v8369_v52  ;;  %v8372_v45 = vld [vmem:[#allocation53_spill] sm:$0xff]  ;;  %v8373_v23 = vld [vmem:[#allocation83_spill] sm:$0xff]  ;;  %v8374_v16 = vld [vmem:[#allocation132_spill] sm:$0xff]  ;;  %v5656_v18 = vpop.permute.xlu1 %1065 }
 0x318   :  { %v5603_v5 = vpop.permute.xlu0 %1069  ;;  %v1207_v56 = vsel %vm1175_vm4, %v1174_v6, %v8371_v55  ;;  %v1311_v20 = vsel %vm1307_vm8, %v1278_v30, %v8372_v45  ;;  %v1144_v35 = vsel %vm1142_vm3, %v1111_v44, %v8373_v23  ;;  %v8375_v10 = vld [vmem:[#allocation161_spill] sm:$0xff]  ;;  %v8377_v6 = vld [vmem:[#allocation163_spill] sm:$0xff]  ;;  %v8378_v30 = vld [vmem:[#allocation14_spill] sm:$0xff] }
 0x319   :  { %v1240_v39 = vsel %vm1208_vm5, %v1207_v56, %v8375_v10  ;;  %v8379_v44 = vld [vmem:[#allocation192_spill] sm:$0xff]  ;;  %v8382_v45 = vld [vmem:[#allocation18_spill] sm:$0xff]  ;;  %v8383_v23 = vld [vmem:[#allocation187_spill] sm:$0xff] }
 0x31a   :  { %3090 = vmatpush.xpose.msk.msra.mxu0 %vm1373_vm9, %v1345_v1  ;;  %v8370_v1 = vld [vmem:[#allocation112_spill] sm:$0xff]  ;;  %v1273_v52 = vsel %vm1241_vm6, %v1240_v39, %v8378_v30 }
 0x31b   :  { %v1178_v63 = vsel %vm1175_vm4, %v1145_v22, %v8370_v1  ;;  %v8376_v22 = vld [vmem:[#allocation188_spill] sm:$0xff]  ;;  %v1721_v1 = vrot.slane %v8379_v44, 4  ;;  %v8388_v44 = vld [vmem:[#allocation201_spill] sm:$0xff] }
 0x31c   :  { %v1211_v29 = vsel %vm1208_vm5, %v1178_v63, %v8374_v16  ;;  %v1344_v8 = vsel %vm1340_vm10, %v1311_v20, %v8376_v22  ;;  %v8380_v63 = vld [vmem:[#allocation193_spill] sm:$0xff]  ;;  %v8381_v56 = vld [vmem:[#allocation16_spill] sm:$0xff]  ;;  %v1306_v20 = vsel %vm1274_vm7, %v1273_v52, %v8382_v45  ;;  %v7936_v16 = vrot.slane %v8383_v23, 4  ;;  %v8385_v22 = vld [vmem:[#allocation99_spill] sm:$0xff] }
 0x31d   :  { %1940 = vrot.lane.b32.xlu2 %v1715_v62, %s3327_s11  ;;  %v1244_v54 = vsel %vm1241_vm6, %v1211_v29, %v8377_v6  ;;  %v7933_v55 = vrot.slane %v8380_v63, 4  ;;  %v8384_v29 = vld [vmem:[#allocation194_spill] sm:$0xff]  ;;  %v1173_v39 = vsel %vm1142_vm3, %v1140_v50, %v8385_v22  ;;  %v8387_v6 = vld [vmem:[#allocation125_spill] sm:$0xff]  ;;  %v1339_v53 = vsel %vm1307_vm8, %v1306_v20, %v8388_v44 }
 0x31e   :  { %1938 = vrot.lane.b32.xlu0 %v1713_v59, %s3327_s11  ;;  %3091 = vmatpush.xpose.msk.msra.mxu0 %vm1373_vm9, %v1344_v8  ;;  %v1277_v62 = vsel %vm1274_vm7, %v1244_v54, %v8381_v56  ;;  %v1719_v10 = vrot.slane %v8384_v29, 4  ;;  %v8386_v59 = vld [vmem:[#allocation102_spill] sm:$0xff]  ;;  %v8389_v56 = vld [vmem:[#allocation31_spill] sm:$0xff]  ;;  %v8391_v29 = vld [vmem:[#allocation208_spill] sm:$0xff] }
 0x31f   :  { %v1177_v8 = vsel %vm1175_vm4, %v1144_v35, %v8386_v59  ;;  %v1310_v30 = vsel %vm1307_vm8, %v1277_v62, %v8387_v6  ;;  %v1206_v52 = vsel %vm1175_vm4, %v1173_v39, %v8389_v56  ;;  %v8390_v45 = vld [vmem:[#allocation138_spill] sm:$0xff]  ;;  %v8393_v59 = vld [vmem:[#allocation164_spill] sm:$0xff]  ;;  %v5699_v20 = vsel %vm208_vm1, %v1721_v1, %v7933_v55  ;;  %v8395_v6 = vld [vmem:[#allocation171_spill] sm:$0xff] }
 0x320   :  { %v1076_v54 = vpop.permute.xlu0 %1075  ;;  %v1210_v40 = vsel %vm1208_vm5, %v1177_v8, %v8390_v45  ;;  %v1343_v11 = vsel %vm1340_vm10, %v1310_v30, %v8391_v29  ;;  %v8392_v22 = vld [vmem:[#allocation162_spill] sm:$0xff]  ;;  %v8399_v1 = vld [vmem:[#allocation137_spill] sm:$0xff]  ;;  %v8401_v29 = vld [vmem:[#allocation40_spill] sm:$0xff] }
 0x321   :  { %v1372_v50 = vsel %vm1340_vm10, %v1339_v53, %v1076_v54  ;;  %v1239_v35 = vsel %vm1208_vm5, %v1206_v52, %v8392_v22  ;;  %v1243_v62 = vsel %vm1241_vm6, %v1210_v40, %v8393_v59  ;;  %v8394_v39 = vld [vmem:[#allocation6_spill] sm:$0xff]  ;;  %v1074_v54 = vpop.permute.xlu2 %1073  ;;  %v8398_v40 = vld [vmem:[#allocation109_spill] sm:$0xff]  ;;  %v8402_v22 = vld [vmem:[#allocation139_spill] sm:$0xff] }
 0x322   :  { %3092 = vmatpush.xpose.msk.msra.mxu0 %vm1373_vm9, %v1343_v11  ;;  %3096 = vmatpush.xpose.msk.msra.mxu1 %vm1373_vm9, %v1372_v50  ;;  %v1172_v8 = vsel %vm1142_vm3, %v1139_v37, %v8394_v39  ;;  %v1272_v53 = vsel %vm1241_vm6, %v1239_v35, %v8395_v6  ;;  %v8396_v30 = vld [vmem:[#allocation174_spill] sm:$0xff]  ;;  %v5710_v11 = vsel %vm208_vm1, %v7936_v16, %v1719_v10  ;;  %v8406_v6 = vld [vmem:[#allocation153_spill] sm:$0xff]  ;;  %v8436_v55 = vld [vmem:[#allocation196_spill] sm:$0xff] }
 0x323   :  { %v1276_v44 = vsel %vm1274_vm7, %v1243_v62, %v8396_v30  ;;  %8397 = vst [vmem:[#allocation55_spill] sm:$0xff] %v5710_v11  ;;  %v1176_v56 = vsel %vm1175_vm4, %v1143_v38, %v8398_v40  ;;  %v1205_v52 = vsel %vm1175_vm4, %v1172_v8, %v8399_v1  ;;  %v8400_v45 = vld [vmem:[#allocation42_spill] sm:$0xff]  ;;  %v8405_v38 = vld [vmem:[#allocation209_spill] sm:$0xff] }
 0x324   :  { %v1305_v37 = vsel %vm1274_vm7, %v1272_v53, %v8400_v45  ;;  %v1309_v50 = vsel %vm1307_vm8, %v1276_v44, %v8401_v29  ;;  %v1209_v35 = vsel %vm1208_vm5, %v1176_v56, %v8402_v22  ;;  %v8403_v59 = vld [vmem:[#allocation150_spill] sm:$0xff]  ;;  %v8407_v44 = vld [vmem:[#allocation200_spill] sm:$0xff]  ;;  %v8408_v56 = vld [vmem:[#allocation207_spill] sm:$0xff] }
 0x325   :  { %v1238_v62 = vsel %vm1208_vm5, %v1205_v52, %v8403_v59  ;;  %v8404_v10 = vld [vmem:[#allocation202_spill] sm:$0xff]  ;;  %1946 = vrot.lane.b32.xlu2 %v5699_v20, %s3327_s11  ;;  %v1342_v8 = vsel %vm1340_vm10, %v1309_v50, %v8405_v38  ;;  %v1242_v53 = vsel %vm1241_vm6, %v1209_v35, %v8406_v6  ;;  %v1727_v40 = vrot.slane %v8407_v44, 4  ;;  %v3241_v52 = vld [vmem:[%s7807_s0 + $0x150] sm:$0xff]  ;;  %v8409_v45 = vld [vmem:[#allocation76_spill] sm:$0xff]  ;;  %v1072_v59 = vpop.permute.xlu1 %1071 }
 0x326   :  { %v1338_v39 = vsel %vm1307_vm8, %v1305_v37, %v8404_v10  ;;  %1944 = vrot.lane.b32.xlu0 %v5710_v11, %s3327_s11  ;;  %3093 = vmatpush.xpose.msk.msra.mxu0 %vm1373_vm9, %v1342_v8  ;;  %v1729_v1 = vrot.slane %v8408_v56, 4  ;;  %v1138_v37 = vsel %vm1109_vm2, %v3241_v52, %v8409_v45  ;;  %v8410_v29 = vld [vmem:[#allocation11_spill] sm:$0xff]  ;;  %v8411_v22 = vld [vmem:[#allocation13_spill] sm:$0xff]  ;;  %v8415_v44 = vld [vmem:[#allocation182_spill] sm:$0xff] }
 0x327   :  { %v1371_v30 = vsel %vm1340_vm10, %v1338_v39, %v1074_v54  ;;  %v1271_v50 = vsel %vm1241_vm6, %v1238_v62, %v8410_v29  ;;  %v1275_v35 = vsel %vm1274_vm7, %v1242_v53, %v8411_v22  ;;  %v8412_v54 = vld [vmem:[#allocation199_spill] sm:$0xff]  ;;  %v8413_v39 = vld [vmem:[#allocation108_spill] sm:$0xff] }
 0x328   :  { %3097 = vmatpush.xpose.msk.msra.mxu1 %vm1373_vm9, %v1371_v30  ;;  %v1726_v10 = vrot.slane %v8412_v54, 4  ;;  %v1171_v38 = vsel %vm1142_vm3, %v1138_v37, %v8413_v39  ;;  %v8414_v8 = vld [vmem:[#allocation35_spill] sm:$0xff]  ;;  %v1308_v56 = vsel %vm1307_vm8, %v1275_v35, %v8415_v44  ;;  %v8416_v52 = vld [vmem:[#allocation24_spill] sm:$0xff]  ;;  %v3242_v35 = vld [vmem:[%s7807_s0 + $0x140] sm:$0xff] }
 0x329   :  { %v1304_v6 = vsel %vm1274_vm7, %v1271_v50, %v8414_v8  ;;  %v1204_v62 = vsel %vm1175_vm4, %v1171_v38, %v8416_v52  ;;  %v8417_v45 = vld [vmem:[#allocation68_spill] sm:$0xff]  ;;  %v8419_v22 = vld [vmem:[#allocation159_spill] sm:$0xff]  ;;  %v5766_v50 = vsel %vm208_vm1, %v1727_v40, %v1729_v1  ;;  %v8420_v39 = vld [vmem:[#allocation77_spill] sm:$0xff] }
 0x32a   :  { %v1337_v53 = vsel %vm1307_vm8, %v1304_v6, %v8417_v45  ;;  %v8418_v29 = vld [vmem:[#allocation184_spill] sm:$0xff]  ;;  %v1237_v54 = vsel %vm1208_vm5, %v1204_v62, %v8419_v22  ;;  %v1137_v38 = vsel %vm1109_vm2, %v3242_v35, %v8420_v39  ;;  %v8421_v8 = vld [vmem:[#allocation7_spill] sm:$0xff]  ;;  %v5777_v44 = vsel %vm208_vm1, %v1726_v10, %v1727_v40  ;;  %v5786_v62 = vld [vmem:[%s7807_s0 + $0x268] sm:$0xf] }
 0x32b   :  { %v1341_v30 = vsel %vm1340_vm10, %v1308_v56, %v8418_v29  ;;  %v1370_v37 = vsel %vm1340_vm10, %v1337_v53, %v1072_v59  ;;  %v1270_v6 = vsel %vm1241_vm6, %v1237_v54, %v8421_v8  ;;  %8422 = vst [vmem:[#allocation95_spill] sm:$0xff] %v5777_v44  ;;  %v8423_v56 = vld [vmem:[#allocation96_spill] sm:$0xff]  ;;  %v8424_v1 = vld [vmem:[#allocation15_spill] sm:$0xff]  ;;  %v8428_v54 = vld [vmem:[#allocation210_spill] sm:$0xff] }
 0x32c   :  { %3094 = vmatpush.xpose.msk.msra.mxu0 %vm1373_vm9, %v1341_v30  ;;  %3098 = vmatpush.xpose.msk.msra.mxu1 %vm1373_vm9, %v1370_v37  ;;  %v1170_v59 = vsel %vm1142_vm3, %v1137_v38, %v8423_v56  ;;  %v1303_v52 = vsel %vm1274_vm7, %v1270_v6, %v8424_v1  ;;  %v8425_v45 = vld [vmem:[#allocation135_spill] sm:$0xff]  ;;  %v8427_v40 = vld [vmem:[#allocation160_spill] sm:$0xff]  ;;  %v1736_v37 = vrot.slane %v8428_v54, 4  ;;  %v8432_v1 = vld [vmem:[#allocation206_spill] sm:$0xff] }
 0x32d   :  { %v1203_v53 = vsel %vm1175_vm4, %v1170_v59, %v8425_v45  ;;  %v8426_v29 = vld [vmem:[#allocation195_spill] sm:$0xff]  ;;  %1952 = vrot.lane.b32.xlu2 %v5766_v50, %s3327_s11  ;;  %v3243_v38 = vld [vmem:[%s7807_s0 + $0x138] sm:$0xff]  ;;  %v8433_v45 = vld [vmem:[#allocation106_spill] sm:$0xff] }
 0x32e   :  { %v1336_v30 = vsel %vm1307_vm8, %v1303_v52, %v8426_v29  ;;  %v1236_v10 = vsel %vm1208_vm5, %v1203_v53, %v8427_v40  ;;  %1950 = vrot.lane.b32.xlu0 %v5777_v44, %s3327_s11  ;;  %v8429_v35 = vld [vmem:[#allocation123_spill] sm:$0xff]  ;;  %v8431_v56 = vld [vmem:[#allocation168_spill] sm:$0xff]  ;;  %v7935_v52 = vrot.slane %v8432_v1, 4 }
 0x32f   :  { %v1369_v22 = vsel %vm1340_vm10, %v1336_v30, %v5603_v5  ;;  %v7934_v39 = vrot.slane %v8429_v35, 4  ;;  %v8430_v8 = vld [vmem:[#allocation59_spill] sm:$0xff]  ;;  %v1269_v59 = vsel %vm1241_vm6, %v1236_v10, %v8431_v56  ;;  %v1734_v5 = vrot.slane %v5786_v62, 4  ;;  %v8434_v29 = vld [vmem:[#allocation180_spill] sm:$0xff] }
 0x330   :  { %v1136_v6 = vsel %vm1109_vm2, %v3243_v38, %v8430_v8  ;;  %3099 = vmatpush.xpose.msk.msra.mxu1 %vm1373_vm9, %v1369_v22  ;;  %v1302_v30 = vsel %vm1274_vm7, %v1269_v59, %v8434_v29  ;;  %v8435_v40 = vld [vmem:[#allocation136_spill] sm:$0xff]  ;;  %v8439_v59 = vld [vmem:[#allocation73_spill] sm:$0xff]  ;;  %v8442_v29 = vld [vmem:[#allocation107_spill] sm:$0xff] }
 0x331   :  { %v1169_v53 = vsel %vm1142_vm3, %v1136_v6, %v8433_v45  ;;  %v1335_v38 = vsel %vm1307_vm8, %v1302_v30, %v8436_v55  ;;  %v8437_v8 = vld [vmem:[#allocation148_spill] sm:$0xff]  ;;  %v5827_v56 = vsel %vm208_vm1, %v1736_v37, %v7934_v39  ;;  %v3244_v6 = vld [vmem:[%s7807_s0 + $0x128] sm:$0xff]  ;;  %v8443_v30 = vld [vmem:[#allocation181_spill] sm:$0xff] }
 0x332   :  { %v1202_v54 = vsel %vm1175_vm4, %v1169_v53, %v8435_v40  ;;  %v1368_v22 = vsel %vm1340_vm10, %v1335_v38, %v5617_v42  ;;  %8438 = vst [vmem:[#allocation10_spill] sm:$0xff] %v5827_v56  ;;  %v1135_v45 = vsel %vm1109_vm2, %v3244_v6, %v8439_v59  ;;  %v8440_v53 = vld [vmem:[#allocation177_spill] sm:$0xff]  ;;  %v5840_v42 = vsel %vm208_vm1, %v7935_v52, %v1734_v5  ;;  %v8447_v59 = vld [vmem:[#allocation214_spill] sm:$0xff] }
 0x333   :  { %v1235_v10 = vsel %vm1208_vm5, %v1202_v54, %v8437_v8  ;;  %8441 = vst [vmem:[#allocation146_spill] sm:$0xff] %v5840_v42  ;;  %v1168_v37 = vsel %vm1142_vm3, %v1135_v45, %v8442_v29  ;;  %v8444_v54 = vld [vmem:[#allocation122_spill] sm:$0xff]  ;;  %v8445_v8 = vld [vmem:[#allocation64_spill] sm:$0xff]  ;;  %v1742_v45 = vrot.slane %v8447_v59, 4  ;;  %v3245_v29 = vld [vmem:[%s7807_s0 + $0x120] sm:$0xff] }
 0x334   :  { %v1268_v55 = vsel %vm1241_vm6, %v1235_v10, %v8440_v53  ;;  %3100 = vmatpush.xpose.msk.msra.mxu1 %vm1373_vm9, %v1368_v22  ;;  %v1201_v38 = vsel %vm1175_vm4, %v1168_v37, %v8444_v54  ;;  %v8446_v10 = vld [vmem:[#allocation157_spill] sm:$0xff]  ;;  %v8448_v53 = vld [vmem:[#allocation215_spill] sm:$0xff]  ;;  %v8449_v37 = vld [vmem:[#allocation74_spill] sm:$0xff] }
 0x335   :  { %v1301_v40 = vsel %vm1274_vm7, %v1268_v55, %v8443_v30  ;;  %1958 = vrot.lane.b32.xlu2 %v5827_v56, %s3327_s11  ;;  %v1234_v22 = vsel %vm1208_vm5, %v1201_v38, %v8446_v10  ;;  %v1744_v55 = vrot.slane %v8448_v53, 4  ;;  %v1134_v30 = vsel %vm1109_vm2, %v3245_v29, %v8449_v37  ;;  %v8451_v38 = vld [vmem:[#allocation216_spill] sm:$0xff]  ;;  %v8452_v10 = vld [vmem:[#allocation93_spill] sm:$0xff]  ;;  %v8456_v29 = vld [vmem:[#allocation158_spill] sm:$0xff] }
 0x336   :  { %v1334_v6 = vsel %vm1307_vm8, %v1301_v40, %v8445_v8  ;;  %1956 = vrot.lane.b32.xlu0 %v5840_v42, %s3327_s11  ;;  %v8450_v40 = vld [vmem:[#allocation178_spill] sm:$0xff]  ;;  %v1741_v8 = vrot.slane %v8451_v38, 4  ;;  %v8454_v53 = vld [vmem:[#allocation133_spill] sm:$0xff] }
 0x337   :  { %v1367_v5 = vsel %vm1340_vm10, %v1334_v6, %v5656_v18  ;;  %v1267_v54 = vsel %vm1241_vm6, %v1234_v22, %v8450_v40  ;;  %v1167_v18 = vsel %vm1142_vm3, %v1134_v30, %v8452_v10  ;;  %v8453_v6 = vld [vmem:[#allocation20_spill] sm:$0xff]  ;;  %v8455_v52 = vld [vmem:[#allocation189_spill] sm:$0xff]  ;;  %v3246_v30 = vld [vmem:[%s7807_s0 + $0x110] sm:$0xff] }
 0x338   :  { %3101 = vmatpush.xpose.msk.msra.mxu1 %vm1373_vm9, %v1367_v5  ;;  %v1300_v59 = vsel %vm1274_vm7, %v1267_v54, %v8453_v6  ;;  %v1200_v39 = vsel %vm1175_vm4, %v1167_v18, %v8454_v53  ;;  %v5882_v5 = vsel %vm208_vm1, %v1742_v45, %v1744_v55  ;;  %v8457_v40 = vld [vmem:[#allocation54_spill] sm:$0xff]  ;;  %v8458_v10 = vld [vmem:[#allocation167_spill] sm:$0xff] }
 0x339   :  { %v1333_v16 = vsel %vm1307_vm8, %v1300_v59, %v8455_v52  ;;  %v1233_v37 = vsel %vm1208_vm5, %v1200_v39, %v8456_v29  ;;  %v1133_v54 = vsel %vm1109_vm2, %v3246_v30, %v8457_v40  ;;  %v5893_v39 = vsel %vm208_vm1, %v1741_v8, %v1742_v45  ;;  %v8460_v55 = vld [vmem:[#allocation126_spill] sm:$0xff]  ;;  %v8471_v40 = vld [vmem:[#allocation63_spill] sm:$0xff] }
 0x33a   :  { %v1366_v22 = vsel %vm1340_vm10, %v1333_v16, %v5535_v27  ;;  %v1266_v18 = vsel %vm1241_vm6, %v1233_v37, %v8458_v10  ;;  %v5898_v27 = vld [vmem:[%s7807_s0 + $0x2b8] sm:$0xff]  ;;  %v8459_v16 = vld [vmem:[#allocation103_spill] sm:$0xff]  ;;  %v8461_v59 = vld [vmem:[#allocation134_spill] sm:$0xff] }
 0x33b   :  { %v1166_v52 = vsel %vm1142_vm3, %v1133_v54, %v8459_v16  ;;  %v1299_v6 = vsel %vm1274_vm7, %v1266_v18, %v8460_v55  ;;  %v8462_v29 = vld [vmem:[#allocation190_spill] sm:$0xff]  ;;  %v1751_v30 = vrot.slane %v5898_v27, 4  ;;  %v8465_v16 = vld [vmem:[#allocation175_spill] sm:$0xff] }
 0x33c   :  { %3102 = vmatpush.xpose.msk.msra.mxu1 %vm1373_vm9, %v1366_v22  ;;  %v1199_v53 = vsel %vm1175_vm4, %v1166_v52, %v8461_v59  ;;  %v1332_v37 = vsel %vm1307_vm8, %v1299_v6, %v8462_v29  ;;  %v8463_v45 = vld [vmem:[#allocation58_spill] sm:$0xff]  ;;  %v8466_v55 = vld [vmem:[#allocation219_spill] sm:$0xff]  ;;  %v8467_v59 = vld [vmem:[#allocation220_spill] sm:$0xff] }
 0x33d   :  { %1964 = vrot.lane.b32.xlu2 %v5882_v5, %s3327_s11  ;;  %v1232_v8 = vsel %vm1208_vm5, %v1199_v53, %v8463_v45  ;;  %v1365_v22 = vsel %vm1340_vm10, %v1332_v37, %v5528_v0  ;;  %v3247_v54 = vld [vmem:[%s7807_s0 + $0x108] sm:$0xff]  ;;  %v7939_v6 = vrot.slane %v8466_v55, 4  ;;  %v1749_v0 = vrot.slane %v8467_v59, 4  ;;  %v8468_v53 = vld [vmem:[#allocation104_spill] sm:$0xff]  ;;  %v8469_v37 = vld [vmem:[#allocation179_spill] sm:$0xff] }
 0x33e   :  { %1962 = vrot.lane.b32.xlu0 %v5893_v39, %s3327_s11  ;;  %v8464_v10 = vld [vmem:[#allocation70_spill] sm:$0xff]  ;;  %v1265_v52 = vsel %vm1241_vm6, %v1232_v8, %v8465_v16  ;;  %v5939_v8 = vld [vmem:[%s7808_s1] sm:$0xff]  ;;  %v8473_v16 = vrot.slane %v5216_v2, 4 }
 0x33f   :  { %v1132_v18 = vsel %vm1109_vm2, %v3247_v54, %v8464_v10  ;;  %v1298_v45 = vsel %vm1274_vm7, %v1265_v52, %v8469_v37  ;;  %3095 = vmatmul.msk.f32.vlgmr.msra.gmra.mxu0 %vm1373_vm9, %v5939_v8  ;;  %v8487_v42 = vld [vmem:[#allocation186_spill] sm:$0xff] }
 0x340   :  { %3103 = vmatpush.xpose.msk.msra.mxu1 %vm1373_vm9, %v1365_v22  ;;  %v1165_v29 = vsel %vm1142_vm3, %v1132_v18, %v8468_v53  ;;  %v1331_v54 = vsel %vm1307_vm8, %v1298_v45, %v8471_v40  ;;  %v8472_v22 = vld [vmem:[#allocation154_spill] sm:$0xff]  ;;  %v5948_v52 = vsel %vm208_vm1, %v1751_v30, %v8473_v16  ;;  %v8474_v40 = vld [vmem:[#allocation71_spill] sm:$0xff]  ;;  %v8475_v53 = vld [vmem:[#allocation176_spill] sm:$0xff] }
 0x341   :  { %v1198_v47 = vsel %vm1175_vm4, %v1165_v29, %v8470_v7  ;;  %v1364_v18 = vsel %vm1340_vm10, %v1331_v54, %v5556_v19  ;;  %v3248_v7 = vld [vmem:[%s7807_s0 + $0xf8] sm:$0xff]  ;;  %v5963_v19 = vsel %vm208_vm1, %v7939_v6, %v1749_v0  ;;  %v5968_v30 = vld [vmem:[%s7807_s0 + $0x2e0] sm:$0xf]  ;;  %v8476_v29 = vld [vmem:[#allocation90_spill] sm:$0xff] }
 0x342   :  { %v1231_v10 = vsel %vm1208_vm5, %v1198_v47, %v8472_v22  ;;  %v1131_v59 = vsel %vm1109_vm2, %v3248_v7, %v8474_v40  ;;  %v8477_v45 = vld [vmem:[#allocation19_spill] sm:$0xff]  ;;  %v8478_v22 = vld [vmem:[#allocation130_spill] sm:$0xff] }
 0x343   :  { %v1264_v47 = vsel %vm1241_vm6, %v1231_v10, %v8475_v53  ;;  %v1164_v37 = vsel %vm1142_vm3, %v1131_v59, %v8476_v29  ;;  %v8480_v0 = vld [vmem:[#allocation155_spill] sm:$0xff]  ;;  %v1757_v59 = vrot.slane %v5209_v51, 4  ;;  %v1759_v53 = vrot.slane %v5968_v30, 4  ;;  %v8481_v29 = vld [vmem:[#allocation48_spill] sm:$0xff] }
 0x344   :  { %3104 = vmatpush.xpose.msk.msra.mxu1 %vm1373_vm9, %v1364_v18  ;;  %v1297_v54 = vsel %vm1274_vm7, %v1264_v47, %v8477_v45  ;;  %v1197_v10 = vsel %vm1175_vm4, %v1164_v37, %v8478_v22  ;;  %v8479_v18 = vld [vmem:[#allocation185_spill] sm:$0xff]  ;;  %v3249_v47 = vld [vmem:[%s7807_s0 + $0xf0] sm:$0xff]  ;;  %v8482_v45 = vld [vmem:[#allocation166_spill] sm:$0xff] }
 0x345   :  { %v1330_v16 = vsel %vm1307_vm8, %v1297_v54, %v8479_v18  ;;  %1970 = vrot.lane.b32.xlu2 %v5948_v52, %s3327_s11  ;;  %v1230_v7 = vsel %vm1208_vm5, %v1197_v10, %v8480_v0  ;;  %v1130_v37 = vsel %vm1109_vm2, %v3249_v47, %v8481_v29  ;;  %v8483_v22 = vld [vmem:[#allocation222_spill] sm:$0xff]  ;;  %v8484_v18 = vld [vmem:[#allocation100_spill] sm:$0xff]  ;;  %v8486_v6 = vld [vmem:[#allocation131_spill] sm:$0xff] }
 0x346   :  { %1968 = vrot.lane.b32.xlu0 %v5963_v19, %s3327_s11  ;;  %v1363_v40 = vsel %vm1340_vm10, %v1330_v16, %v5468_v9  ;;  %v1263_v54 = vsel %vm1241_vm6, %v1230_v7, %v8482_v45  ;;  %v1756_v10 = vrot.slane %v8483_v22, 4  ;;  %v1163_v9 = vsel %vm1142_vm3, %v1130_v37, %v8484_v18  ;;  %v8485_v16 = vld [vmem:[#allocation25_spill] sm:$0xff]  ;;  %v8488_v47 = vld [vmem:[#allocation52_spill] sm:$0xff]  ;;  %v8489_v45 = vld [vmem:[#allocation66_spill] sm:$0xff] }
 0x347   :  { %v1296_v0 = vsel %vm1274_vm7, %v1263_v54, %v8485_v16  ;;  %v1196_v44 = vsel %vm1175_vm4, %v1163_v9, %v8486_v6  ;;  %v3250_v37 = vld [vmem:[%s7807_s0 + $0xe0] sm:$0xff]  ;;  %v8490_v6 = vld [vmem:[#allocation172_spill] sm:$0xff] }
 0x348   :  { %3105 = vmatpush.xpose.msk.msra.mxu1 %vm1373_vm9, %v1363_v40  ;;  %v1329_v11 = vsel %vm1307_vm8, %v1296_v0, %v8487_v42  ;;  %v1229_v29 = vsel %vm1208_vm5, %v1196_v44, %v8488_v47  ;;  %v6010_v40 = vsel %vm208_vm1, %v1757_v59, %v1759_v53  ;;  %v1129_v54 = vsel %vm1109_vm2, %v3250_v37, %v8489_v45  ;;  %v8493_v53 = vld [vmem:[#allocation21_spill] sm:$0xff]  ;;  %v8494_v16 = vld [vmem:[#allocation116_spill] sm:$0xff]  ;;  %v8495_v47 = vld [vmem:[#allocation51_spill] sm:$0xff] }
 0x349   :  { %v1362_v7 = vsel %vm1340_vm10, %v1329_v11, %v5441_v34  ;;  %v1262_v18 = vsel %vm1241_vm6, %v1229_v29, %v8490_v6  ;;  %v6021_v44 = vsel %vm208_vm1, %v1756_v10, %v1757_v59  ;;  %v6026_v34 = vld [vmem:[%s7807_s0 + $0x300] sm:$0xff]  ;;  %v8496_v59 = vld [vmem:[#allocation151_spill] sm:$0xff]  ;;  %v8502_v45 = vld [vmem:[#allocation62_spill] sm:$0xff] }
 0x34a   :  { %8491 = vst [vmem:[#allocation56_spill] sm:$0xff] %v6021_v44  ;;  %v8492_v11 = vld [vmem:[#allocation101_spill] sm:$0xff]  ;;  %v1295_v9 = vsel %vm1274_vm7, %v1262_v18, %v8493_v53  ;;  %v1766_v37 = vrot.slane %v6026_v34, 4  ;;  %v8497_v6 = vld [vmem:[#allocation67_spill] sm:$0xff]  ;;  %v7945_v53 = vrot.slane %v5273_v57, 4 }
 0x34b   :  { %v1162_v42 = vsel %vm1142_vm3, %v1129_v54, %v8492_v11  ;;  %v1328_v29 = vsel %vm1307_vm8, %v1295_v9, %v8495_v47  ;;  %v3251_v54 = vld [vmem:[%s7807_s0 + $0xd8] sm:$0xff]  ;;  %v8498_v11 = vld [vmem:[#allocation173_spill] sm:$0xff]  ;;  %v8499_v9 = vld [vmem:[#allocation87_spill] sm:$0xff] }
 0x34c   :  { %3106 = vmatpush.xpose.msk.msra.mxu1 %vm1373_vm9, %v1362_v7  ;;  %v1195_v0 = vsel %vm1175_vm4, %v1162_v42, %v8494_v16  ;;  %v1361_v7 = vsel %vm1340_vm10, %v1328_v29, %v5472_v60  ;;  %v1128_v18 = vsel %vm1109_vm2, %v3251_v54, %v8497_v6  ;;  %v1764_v60 = vrot.slane %v5278_v48, 4  ;;  %v8501_v29 = vld [vmem:[#allocation127_spill] sm:$0xff]  ;;  %v8503_v6 = vld [vmem:[#allocation152_spill] sm:$0xff] }
 0x34d   :  { %1976 = vrot.lane.b32.xlu2 %v6010_v40, %s3327_s11  ;;  %v1228_v10 = vsel %vm1208_vm5, %v1195_v0, %v8496_v59  ;;  %v1161_v16 = vsel %vm1142_vm3, %v1128_v18, %v8499_v9  ;;  %v8500_v0 = vld [vmem:[#allocation12_spill] sm:$0xff]  ;;  %v8504_v48 = vrot.slane %v5358_v4, 4  ;;  %v3252_v18 = vld [vmem:[%s7807_s0 + $0xc8] sm:$0xff] }
 0x34e   :  { %1974 = vrot.lane.b32.xlu0 %v6021_v44, %s3327_s11  ;;  %v1261_v42 = vsel %vm1241_vm6, %v1228_v10, %v8498_v11  ;;  %v1194_v59 = vsel %vm1175_vm4, %v1161_v16, %v8501_v29  ;;  %v8507_v16 = vld [vmem:[#allocation165_spill] sm:$0xff]  ;;  %v8510_v29 = vld [vmem:[#allocation22_spill] sm:$0xff] }
 0x34f   :  { %v1294_v47 = vsel %vm1274_vm7, %v1261_v42, %v8500_v0  ;;  %v1227_v10 = vsel %vm1208_vm5, %v1194_v59, %v8503_v6  ;;  %v6071_v11 = vsel %vm208_vm1, %v1766_v37, %v8504_v48  ;;  %v8506_v42 = vld [vmem:[#allocation43_spill] sm:$0xff]  ;;  %v6089_v37 = vld [vmem:[%s7807_s0 + $0x328] sm:$0xf]  ;;  %v8509_v0 = vld [vmem:[#allocation97_spill] sm:$0xff] }
 0x350   :  { %3107 = vmatpush.xpose.msk.msra.mxu1 %vm1373_vm9, %v1361_v7  ;;  %v1327_v54 = vsel %vm1307_vm8, %v1294_v47, %v8502_v45  ;;  %8505 = vst [vmem:[#allocation81_spill] sm:$0xff] %v6071_v11  ;;  %v1127_v9 = vsel %vm1109_vm2, %v3252_v18, %v8506_v42  ;;  %v1260_v45 = vsel %vm1241_vm6, %v1227_v10, %v8507_v16  ;;  %v8512_v10 = vld [vmem:[#allocation183_spill] sm:$0xff]  ;;  %v1772_v42 = vrot.slane %v5349_v46, 4  ;;  %v3253_v16 = vld [vmem:[%s7807_s0 + $0xc0] sm:$0xff] }
 0x351   :  { %v1360_v7 = vsel %vm1340_vm10, %v1327_v54, %v5392_v21  ;;  %v6084_v21 = vsel %vm208_vm1, %v7945_v53, %v1764_v60  ;;  %v1160_v47 = vsel %vm1142_vm3, %v1127_v9, %v8509_v0  ;;  %v1293_v59 = vsel %vm1274_vm7, %v1260_v45, %v8510_v29  ;;  %v8511_v54 = vld [vmem:[#allocation128_spill] sm:$0xff]  ;;  %v8513_v60 = vld [vmem:[#allocation47_spill] sm:$0xff]  ;;  %v8519_v53 = vld [vmem:[#allocation46_spill] sm:$0xff] }
 0x352   :  { %8508 = vst [vmem:[#allocation120_spill] sm:$0xff] %v6084_v21  ;;  %v1193_v6 = vsel %vm1175_vm4, %v1160_v47, %v8511_v54  ;;  %v1774_v9 = vrot.slane %v6089_v37, 4  ;;  %v8514_v45 = vld [vmem:[#allocation60_spill] sm:$0xff]  ;;  %v8515_v47 = vld [vmem:[#allocation169_spill] sm:$0xff]  ;;  %v8516_v54 = vld [vmem:[#allocation98_spill] sm:$0xff] }
 0x353   :  { %v1226_v48 = vsel %vm1208_vm5, %v1193_v6, %v8513_v60  ;;  %v1126_v0 = vsel %vm1109_vm2, %v3253_v16, %v8514_v45  ;;  %v8517_v6 = vld [vmem:[#allocation23_spill] sm:$0xff]  ;;  %v8520_v16 = vld [vmem:[#allocation149_spill] sm:$0xff] }
 0x354   :  { %3108 = vmatpush.xpose.msk.msra.mxu1 %vm1373_vm9, %v1360_v7  ;;  %v1326_v7 = vsel %vm1307_vm8, %v1293_v59, %v8512_v10  ;;  %v1259_v29 = vsel %vm1241_vm6, %v1226_v48, %v8515_v47  ;;  %v1771_v59 = vrot.slane %v5344_v31, 4  ;;  %v8522_v47 = vld [vmem:[#allocation170_spill] sm:$0xff] }
 0x355   :  { %1982 = vrot.lane.b32.xlu2 %v6071_v11, %s3327_s11  ;;  %v1359_v18 = vsel %vm1340_vm10, %v1326_v7, %v5336_v61  ;;  %v1159_v61 = vsel %vm1142_vm3, %v1126_v0, %v8516_v54  ;;  %v1292_v10 = vsel %vm1274_vm7, %v1259_v29, %v8517_v6  ;;  %v8518_v7 = vld [vmem:[#allocation113_spill] sm:$0xff]  ;;  %v7949_v6 = vrot.slane %v5423_v49, 4 }
 0x356   :  { %1980 = vrot.lane.b32.xlu0 %v6084_v21, %s3327_s11  ;;  %v1192_v60 = vsel %vm1175_vm4, %v1159_v61, %v8518_v7  ;;  %v1325_v56 = vsel %vm1307_vm8, %v1292_v10, %v8519_v53  ;;  %v6137_v29 = vsel %vm208_vm1, %v1771_v59, %v1772_v42  ;;  %v6142_v53 = vld [vmem:[%s7807_s0 + $0x348] sm:$0xff]  ;;  %v8523_v54 = vld [vmem:[#allocation17_spill] sm:$0xff]  ;;  %v7948_v59 = vrot.slane %v5501_v58, 4 }
 0x357   :  { %v1225_v45 = vsel %vm1208_vm5, %v1192_v60, %v8520_v16  ;;  %v1358_v48 = vsel %vm1340_vm10, %v1325_v56, %v5385_v28  ;;  %v8524_v28 = vld [vmem:[#allocation57_spill] sm:$0xff]  ;;  %v1779_v10 = vrot.slane %v5428_v36, 4  ;;  %v3254_v36 = vld [vmem:[%s7807_s0 + $0x218] sm:$0xff]  ;;  %v3257_v16 = vld [vmem:[%s7807_s0 + $0x230] sm:$0xff] }
 0x358   :  { %3109 = vmatpush.xpose.msk.msra.mxu1 %vm1373_vm9, %v1359_v18  ;;  %v6131_v18 = vsel %vm208_vm1, %v1772_v42, %v1774_v9  ;;  %v1258_v0 = vsel %vm1241_vm6, %v1225_v45, %v8522_v47  ;;  %v1781_v9 = vrot.slane %v6142_v53, 4  ;;  %v6189_v60 = vld [vmem:[%s7807_s0 + $0x240] sm:$0xff]  ;;  %v6207_v47 = vpop.permute.xlu0 %1840 }
 0x359   :  { %8521 = vst [vmem:[#allocation147_spill] sm:$0xff] %v6131_v18  ;;  %v1291_v61 = vsel %vm1274_vm7, %v1258_v0, %v8523_v54  ;;  %v8526_v45 = vld [vmem:[#allocation205_spill] sm:$0xff] }
 0x35a   :  { %v1324_v56 = vsel %vm1307_vm8, %v1291_v61, %v8524_v28  ;;  %v6164_v7 = vsel %vm208_vm1, %v1781_v9, %v7948_v59  ;;  %8528 = vst [vmem:[#allocation121_spill] sm:$0xff] %v6207_v47  ;;  %v8530_v54 = vld [vmem:[#allocation221_spill] sm:$0xff]  ;;  %v8547_v47 = vld [vmem:[#allocation84_spill] sm:$0xff] }
 0x35b   :  { %v1357_v42 = vsel %vm1340_vm10, %v1324_v56, %v5315_v41  ;;  %8525 = vst [vmem:[#allocation32_spill] sm:$0xff] %v6164_v7  ;;  %v6169_v41 = vsel %vm208_vm1, %v7949_v6, %v1779_v10  ;;  %v8545_v6 = vld [vmem:[#allocation198_spill] sm:$0xff] }
 0x35c   :  { %3110 = vmatpush.xpose.msk.msra.mxu1 %vm1373_vm9, %v1358_v48  ;;  %v6201_v48 = vpop.permute.xlu2 %1838 }
 0x35d   :  { %1988 = vrot.lane.b32.xlu2 %v6131_v18, %s3327_s11  ;;  %8527 = vst [vmem:[#allocation91_spill] sm:$0xff] %v6201_v48 }
 0x35e   :  { %1986 = vrot.lane.b32.xlu0 %v6137_v29, %s3327_s11 }
 0x360   :  { %3111 = vmatpush.xpose.msk.msra.mxu1 %vm1373_vm9, %v1357_v42  ;;  %v6215_v61 = vpop.permute.xlu0 %1844 }
 0x361   :  { %8531 = vst [vmem:[#allocation49_spill] sm:$0xff] %v6215_v61  ;;  %v1654_v61 = vrot.slane %v5786_v62, 2 }
 0x363   :  { %3112 = vmatmul.msk.f32.vlgmr.msra.gmra.mxu1 %vm1373_vm9, %v5939_v8  ;;  %v6182_v8 = vld [vmem:[%s7807_s0 + $0x210] sm:$0xff] }
 0x364   :  { %v6209_v0 = vpop.permute.xlu2 %1842 }
 0x365   :  { %1994 = vrot.lane.b32.xlu2 %v6164_v7, %s3327_s11  ;;  %8529 = vst [vmem:[#allocation36_spill] sm:$0xff] %v6209_v0  ;;  %v8548_v0 = vld [vmem:[#allocation203_spill] sm:$0xff] }
 0x366   :  { %1992 = vrot.lane.b32.xlu0 %v6169_v41, %s3327_s11 }
 0x36c   :  { %v6217_v28 = vpop.permute.xlu2 %1846 }
 0x36d   :  { %2032 = vrot.lane.b32.xlu2 %v3254_v36, %s3328_s12  ;;  %8532 = vst [vmem:[#allocation92_spill] sm:$0xff] %v6217_v28  ;;  %v6266_v36 = vld [vmem:[%s7807_s0 + $0x378] sm:$0xff] }
 0x36e   :  { %2030 = vrot.lane.b32.xlu0 %v6182_v8, %s3328_s12 }
 0x374   :  { %v6227_v56 = vpop.permute.xlu2 %1850 }
 0x375   :  { %2038 = vrot.lane.b32.xlu2 %v6189_v60, %s3328_s12  ;;  %8534 = vst [vmem:[#allocation144_spill] sm:$0xff] %v6227_v56  ;;  %v8552_v56 = vld [vmem:[#allocation213_spill] sm:$0xff] }
 0x376   :  { %2036 = vrot.lane.b32.xlu0 %v3257_v16, %s3328_s12 }
 0x37d   :  { %2044 = vrot.lane.b32.xlu2 %v8432_v1, %s3328_s12 }
 0x37e   :  { %2042 = vrot.lane.b32.xlu0 %v8526_v45, %s3328_s12 }
 0x385   :  { %2050 = vrot.lane.b32.xlu2 %v8451_v38, %s3328_s12  ;;  %v6223_v38 = vpop.permute.xlu0 %1848 }
 0x386   :  { %2048 = vrot.lane.b32.xlu0 %v8429_v35, %s3328_s12  ;;  %8533 = vst [vmem:[#allocation8_spill] sm:$0xff] %v6223_v38  ;;  %v8550_v38 = vrot.slane %v8432_v1, 2 }
 0x38d   :  { %2056 = vrot.lane.b32.xlu2 %v8466_v55, %s3328_s12  ;;  %v6231_v42 = vpop.permute.xlu0 %1852 }
 0x38e   :  { %2054 = vrot.lane.b32.xlu0 %v8530_v54, %s3328_s12  ;;  %8535 = vst [vmem:[#allocation50_spill] sm:$0xff] %v6231_v42  ;;  %v8543_v54 = vld [vmem:[#allocation197_spill] sm:$0xff] }
 0x395   :  { %2062 = vrot.lane.b32.xlu2 %v8483_v22, %s3328_s12  ;;  %v6237_v22 = vpop.permute.xlu2 %1854  ;;  %v6243_v9 = vpop.permute.xlu0 %1856 }
 0x396   :  { %2060 = vrot.lane.b32.xlu0 %v5216_v2, %s3328_s12  ;;  %8536 = vst [vmem:[#allocation78_spill] sm:$0xff] %v6237_v22 }
 0x397   :  { %8537 = vst [vmem:[#allocation117_spill] sm:$0xff] %v6243_v9 }
 0x39d   :  { %2068 = vrot.lane.b32.xlu2 %v5273_v57, %s3328_s12  ;;  %v6245_v10 = vpop.permute.xlu2 %1858 }
 0x39e   :  { %2066 = vrot.lane.b32.xlu0 %v5287_v25, %s3328_s12  ;;  %8538 = vst [vmem:[#allocation145_spill] sm:$0xff] %v6245_v10  ;;  %v6250_v25 = vld [vmem:[%s7807_s0 + $0x360] sm:$0xff] }
 0x39f   :  { %8539 = vst [vmem:[#allocation29_spill] sm:$0xff] %v6250_v25  ;;  %v8563_v10 = vld [vmem:[#allocation37_spill] sm:$0xff] }
 0x3a5   :  { %2074 = vrot.lane.b32.xlu2 %v5344_v31, %s3328_s12  ;;  %v6256_v31 = vpop.permute.xlu0 %1862  ;;  %v6268_v16 = vpop.permute.xlu2 %1864 }
 0x3a6   :  { %2072 = vrot.lane.b32.xlu0 %v5358_v4, %s3328_s12  ;;  %8540 = vst [vmem:[#allocation88_spill] sm:$0xff] %v6256_v31 }
 0x3a7   :  { %8541 = vst [vmem:[#allocation118_spill] sm:$0xff] %v6268_v16  ;;  %v3166_v16 = vld [vmem:[%s7807_s0 + $0x388] sm:$0xf] }
 0x3ad   :  { %2080 = vrot.lane.b32.xlu2 %v5423_v49, %s3328_s12  ;;  %v6274_v45 = vpop.permute.xlu0 %1866  ;;  %v6278_v59 = vpop.permute.xlu2 %1868 }
 0x3ae   :  { %2078 = vrot.lane.b32.xlu0 %v5437_v33, %s3328_s12  ;;  %v6261_v33 = vld [vmem:[%s7807_s0 + $0x380] sm:$0xff]  ;;  %8542 = vst [vmem:[#allocation30_spill] sm:$0xff] %v6274_v45  ;;  %v1800_v45 = vrot.slane %v3166_v16, 2 }
 0x3af   :  { %8544 = vst [vmem:[#allocation44_spill] sm:$0xff] %v6278_v59 }
 0x3b5   :  { %2086 = vrot.lane.b32.xlu2 %v6250_v25, %s3328_s12  ;;  %v6282_v48 = vpop.permute.xlu0 %1870  ;;  %v6289_v28 = vpop.permute.xlu2 %1872 }
 0x3b6   :  { %2084 = vrot.lane.b32.xlu0 %v5501_v58, %s3328_s12  ;;  %8546 = vst [vmem:[#allocation89_spill] sm:$0xff] %v6282_v48 }
 0x3b7   :  { %8549 = vst [vmem:[#allocation5_spill] sm:$0xff] %v6289_v28  ;;  %v8557_v28 = vld [vmem:[#allocation218_spill] sm:$0xff] }
 0x3bc   :  { %v6306_v62 = vpop.f32.mrf.mxu0 }
 0x3bd   :  { %2092 = vrot.lane.b32.xlu2 %v6261_v33, %s3328_s12  ;;  %v6302_v48 = vpop.permute.xlu2 %1878  ;;  %8556 = vst [vmem:[#allocation114_spill] sm:$0xff] %v6306_v62 }
 0x3be   :  { %2090 = vrot.lane.b32.xlu0 %v6266_v36, %s3328_s12  ;;  %8554 = vst [vmem:[#allocation75_spill] sm:$0xff] %v6302_v48 }
 0x3c5   :  { %2130 = vrot.lane.b32.xlu2 %v8543_v54, %s3329_s21  ;;  %v6294_v54 = vsel %vm127_vm0, %v8550_v38, %v1654_v61  ;;  %v1671_v61 = vrot.slane %v5898_v27, 2  ;;  %v6322_v9 = vpop.permute.xlu2 %1884 }
 0x3c6   :  { %2128 = vrot.lane.b32.xlu0 %v8545_v6, %s3329_s21  ;;  %8551 = vst [vmem:[#allocation142_spill] sm:$0xff] %v6294_v54  ;;  %v6300_v6 = vpop.permute.xlu0 %1876 }
 0x3c7   :  { %8553 = vst [vmem:[#allocation45_spill] sm:$0xff] %v6300_v6  ;;  %v8560_v6 = vrot.slane %v5216_v2, 2 }
 0x3c8   :  { %8562 = vst [vmem:[#allocation115_spill] sm:$0xff] %v6322_v9  ;;  %v8570_v9 = vrot.slane %v5349_v46, 2  ;;  %v8573_v46 = vrot.slane %v5501_v58, 2 }
 0x3c9   :  { %v6320_v48 = vsel %vm127_vm0, %v1671_v61, %v8560_v6  ;;  %v1686_v61 = vrot.slane %v6026_v34, 2 }
 0x3ca   :  { %8561 = vst [vmem:[#allocation85_spill] sm:$0xff] %v6320_v48 }
 0x3cd   :  { %2136 = vrot.lane.b32.xlu2 %v8547_v47, %s3329_s21  ;;  %v6338_v6 = vpop.permute.xlu2 %1890 }
 0x3ce   :  { %2134 = vrot.lane.b32.xlu0 %v8548_v0, %s3329_s21  ;;  %v8555_v0 = vld [vmem:[#allocation217_spill] sm:$0xff]  ;;  %v6315_v22 = vpop.permute.xlu0 %1882  ;;  %8566 = vst [vmem:[#allocation26_spill] sm:$0xff] %v6338_v6 }
 0x3cf   :  { %8559 = vst [vmem:[#allocation27_spill] sm:$0xff] %v6315_v22  ;;  %v8567_v22 = vrot.slane %v5358_v4, 2 }
 0x3d5   :  { %2142 = vrot.lane.b32.xlu2 %v8552_v56, %s3329_s21 }
 0x3d6   :  { %2140 = vrot.lane.b32.xlu0 %v6294_v54, %s3329_s21 }
 0x3dd   :  { %2148 = vrot.lane.b32.xlu2 %v8555_v0, %s3329_s21 }
 0x3de   :  { %2146 = vrot.lane.b32.xlu0 %v8557_v28, %s3329_s21  ;;  %v1679_v28 = vrot.slane %v5968_v30, 2  ;;  %v6346_v30 = vsel %vm127_vm0, %v1686_v61, %v8567_v22  ;;  %v1701_v22 = vrot.slane %v6142_v53, 2 }
 0x3e0   :  { %v6311_v38 = vpop.f32.mrf.mxu1 }
 0x3e1   :  { %8558 = vst [vmem:[#allocation143_spill] sm:$0xff] %v6311_v38  ;;  %v1513_v42 = vadd.f32 %v6311_v38, %v6306_v62  ;;  %v8564_v38 = vrot.slane %v5209_v51, 2 }
 0x3e3   :  { %1514 = vadd.xlane.f32.xlu1 %v1513_v42  ;;  %v6332_v62 = vsel %vm127_vm0, %v8564_v38, %v1679_v28  ;;  %v6334_v42 = vpop.permute.xlu0 %1888  ;;  %v1694_v28 = vrot.slane %v6089_v37, 2  ;;  %v6355_v38 = vpop.permute.xlu2 %1896 }
 0x3e4   :  { %8565 = vst [vmem:[#allocation28_spill] sm:$0xff] %v6334_v42 }
 0x3e5   :  { %2154 = vrot.lane.b32.xlu2 %v6320_v48, %s3329_s21  ;;  %8569 = vst [vmem:[#allocation105_spill] sm:$0xff] %v6355_v38  ;;  %v6360_v42 = vsel %vm127_vm0, %v8570_v9, %v1694_v28  ;;  %v6376_v9 = vsel %vm127_vm0, %v1701_v22, %v8573_v46  ;;  %v6383_v28 = vld [vmem:[%s7807_s0 + $0x368] sm:$0xff] }
 0x3e6   :  { %2152 = vrot.lane.b32.xlu0 %v8563_v10, %s3329_s21  ;;  %v1793_v22 = vrot.slane %v6383_v28, 2 }
 0x3eb   :  { %v6348_v51 = vpop.permute.xlu0 %1894  ;;  %v6371_v37 = vpop.permute.xlu2 %1934 }
 0x3ec   :  { %8568 = vst [vmem:[#allocation86_spill] sm:$0xff] %v6348_v51 }
 0x3ed   :  { %2160 = vrot.lane.b32.xlu2 %v6332_v62, %s3329_s21  ;;  %8572 = vst [vmem:[#allocation38_spill] sm:$0xff] %v6371_v37  ;;  %v1792_v37 = vrot.slane %v6250_v25, 2 }
 0x3ee   :  { %2158 = vrot.lane.b32.xlu0 %v5259_v13, %s3329_s21 }
 0x3ef   :  { %v6405_v31 = vsel %vm127_vm0, %v1792_v37, %v1793_v22  ;;  %v8577_v37 = vrot.slane %v8383_v23, 4  ;;  %v3258_v23 = vld [vmem:[%s7807_s0 + $0x238] sm:$0xf] }
 0x3f3   :  { %v6369_v61 = vpop.permute.xlu0 %1900  ;;  %v6407_v38 = vpop.permute.xlu2 %1940 }
 0x3f4   :  { %8571 = vst [vmem:[#allocation140_spill] sm:$0xff] %v6369_v61 }
 0x3f5   :  { %2166 = vrot.lane.b32.xlu2 %v6346_v30, %s3329_s21  ;;  %8576 = vst [vmem:[#allocation34_spill] sm:$0xff] %v6407_v38 }
 0x3f6   :  { %2164 = vrot.lane.b32.xlu0 %v5330_v17, %s3329_s21 }
 0x3fb   :  { %v6397_v6 = vpop.permute.xlu0 %1938 }
 0x3fc   :  { %1860 = vrot.lane.b32.xlu1 %v6294_v54, %s3326_s7  ;;  %v6388_v54 = vld [vmem:[%s7807_s0 + $0x370] sm:$0xf]  ;;  %8574 = vst [vmem:[#allocation72_spill] sm:$0xff] %v6397_v6  ;;  %v7954_v6 = vrot.slane %v6261_v33, 2 }
 0x3fd   :  { %2172 = vrot.lane.b32.xlu2 %v6360_v42, %s3329_s21  ;;  %v1795_v46 = vrot.slane %v6388_v54, 2 }
 0x3fe   :  { %2170 = vrot.lane.b32.xlu0 %v5409_v12, %s3329_s21 }
 0x3ff   :  { %v6400_v51 = vsel %vm127_vm0, %v1793_v22, %v1795_v46  ;;  %v1716_v46 = vrot.slane %v6182_v8, 4  ;;  %v6431_v8 = vpop.permute.xlu2 %1946 }
 0x400   :  { %8575 = vst [vmem:[#allocation33_spill] sm:$0xff] %v6400_v51 }
 0x401   :  { %v1718_v22 = vsel %vm208_vm1, %v1716_v46, %v8577_v37  ;;  %8579 = vst [vmem:[#allocation39_spill] sm:$0xff] %v6431_v8  ;;  %v1724_v46 = vrot.slane %v3258_v23, 4  ;;  %v8580_v37 = vrot.slane %v8380_v63, 4 }
 0x403   :  { %v6421_v38 = vpop.permute.xlu0 %1944 }
 0x404   :  { %1874 = vrot.lane.b32.xlu1 %v6320_v48, %s3326_s7  ;;  %8578 = vst [vmem:[#allocation111_spill] sm:$0xff] %v6421_v38  ;;  %v1725_v38 = vsel %vm208_vm1, %v8580_v37, %v1724_v46  ;;  %v8584_v46 = vrot.slane %v8432_v1, 4  ;;  %v1810_v1 = vrot.slane %v3166_v16, 4  ;;  %v8587_v48 = vrot.slane %v4914_v14, 4 }
 0x405   :  { %2178 = vrot.lane.b32.xlu2 %v6376_v9, %s3329_s21  ;;  %v8589_v16 = vrot.slane %v5216_v2, 4  ;;  %v6505_v2 = vld [vmem:[%s7807_s0 + $0x3b8] sm:$0xf] }
 0x406   :  { %2176 = vrot.lane.b32.xlu0 %v5485_v26, %s3329_s21 }
 0x407   :  { %v6454_v63 = vpop.permute.xlu2 %1952 }
 0x408   :  { %8583 = vst [vmem:[#allocation211_spill] sm:$0xff] %v6454_v63 }
 0x40c   :  { %1880 = vrot.lane.b32.xlu1 %v6332_v62, %s3326_s7 }
 0x40d   :  { %2184 = vrot.lane.b32.xlu2 %v6400_v51, %s3329_s21  ;;  %v6428_v51 = vsel %vm127_vm0, %v7954_v6, %v1800_v45  ;;  %v6443_v45 = vpop.permute.xlu0 %1950  ;;  %v6451_v6 = vld [vmem:[%s7807_s0 + $0x258] sm:$0xff] }
 0x40e   :  { %2182 = vrot.lane.b32.xlu0 %v6405_v31, %s3329_s21  ;;  %8581 = vst [vmem:[#allocation65_spill] sm:$0xff] %v6443_v45  ;;  %v1731_v23 = vrot.slane %v6451_v6, 4  ;;  %v1808_v45 = vrot.slane %v6261_v33, 4 }
 0x40f   :  { %8582 = vst [vmem:[#allocation141_spill] sm:$0xff] %v6451_v6  ;;  %v6479_v61 = vpop.permute.xlu2 %1958 }
 0x410   :  { %v6459_v37 = vsel %vm208_vm1, %v1731_v23, %v8584_v46  ;;  %v3261_v23 = vld [vmem:[%s7807_s0 + $0x2c8] sm:$0xf]  ;;  %8588 = vst [vmem:[#allocation156_spill] sm:$0xff] %v6479_v61  ;;  %v6482_v7 = vsel %vm208_vm1, %v1808_v45, %v1810_v1  ;;  %v6563_v61 = vld [vmem:[%s7807_s0 + $0x2a0] sm:$0xff] }
 0x411   :  { %8585 = vst [vmem:[#allocation69_spill] sm:$0xff] %v6459_v37  ;;  %v1754_v46 = vrot.slane %v3261_v23, 4 }
 0x414   :  { %1886 = vrot.lane.b32.xlu1 %v6346_v30, %s3326_s7 }
 0x415   :  { %2222 = vrot.lane.b32.xlu2 %v1718_v22, %s3330_s26  ;;  %v6471_v63 = vpop.permute.xlu0 %1956 }
 0x416   :  { %2188 = vrot.lane.b32.xlu0 %v6428_v51, %s3329_s21  ;;  %8586 = vst [vmem:[#allocation79_spill] sm:$0xff] %v6471_v63  ;;  %v6488_v63 = vsel %vm208_vm1, %v8589_v16, %v1754_v46 }
 0x41c   :  { %1892 = vrot.lane.b32.xlu1 %v6360_v42, %s3326_s7 }
 0x41d   :  { %2228 = vrot.lane.b32.xlu2 %v1725_v38, %s3330_s26  ;;  %v6494_v14 = vpop.permute.xlu0 %1962 }
 0x41e   :  { %2226 = vrot.lane.b32.xlu0 %v5699_v20, %s3330_s26  ;;  %v3260_v20 = vld [vmem:[%s7807_s0 + $0x1f0] sm:$0xf]  ;;  %8590 = vst [vmem:[#allocation82_spill] sm:$0xff] %v6494_v14  ;;  %v1746_v14 = vrot.slane %v6563_v61, 4 }
 0x41f   :  { %v1709_v8 = vrot.slane %v3260_v20, 4 }
 0x421   :  { %v1710_v20 = vsel %vm208_vm1, %v8587_v48, %v1709_v8  ;;  %v6500_v48 = vld [vmem:[%s7807_s0 + $0x3b0] sm:$0xff]  ;;  %v6507_v8 = vpop.permute.xlu2 %1964 }
 0x422   :  { %8591 = vst [vmem:[#allocation110_spill] sm:$0xff] %v6507_v8  ;;  %v1834_v1 = vrot.slane %v6500_v48, 4 }
 0x424   :  { %1898 = vrot.lane.b32.xlu1 %v6376_v9, %s3326_s7 }
 0x425   :  { %2234 = vrot.lane.b32.xlu2 %v6459_v37, %s3330_s26  ;;  %v6516_v46 = vpop.permute.xlu0 %1968 }
 0x426   :  { %2232 = vrot.lane.b32.xlu0 %v5766_v50, %s3330_s26  ;;  %8592 = vst [vmem:[#allocation9_spill] sm:$0xff] %v6516_v46 }
 0x42c   :  { %1936 = vrot.lane.b32.xlu1 %v1710_v20, %s3327_s11  ;;  %v6520_v20 = vpop.permute.xlu2 %1970 }
 0x42d   :  { %2284 = vrot.lane.b32.xlu2 %v6482_v7, %s3330_s26  ;;  %8593 = vst [vmem:[#allocation80_spill] sm:$0xff] %v6520_v20  ;;  %v6538_v46 = vpop.permute.xlu0 %1974  ;;  %v3263_v20 = vld [vmem:[%s7807_s0 + $0x2e8] sm:$0xff] }
 0x42e   :  { %2252 = vrot.lane.b32.xlu0 %v6488_v63, %s3330_s26  ;;  %8595 = vst [vmem:[#allocation129_spill] sm:$0xff] %v6538_v46 }
 0x434   :  { %1942 = vrot.lane.b32.xlu1 %v1718_v22, %s3327_s11  ;;  %v1836_v22 = vrot.slane %v6505_v2, 4 }
 0x435   :  { %2444 = vrot.lane.b32.xlu2 %v5330_v17, %s3332_s13  ;;  %v1807_v17 = vrot.slane %v6266_v36, 4 }
 0x436   :  { %2380 = vrot.lane.b32.xlu0 %v6500_v48, %s3331_s27  ;;  %v1837_v23 = vsel %vm208_vm1, %v1834_v1, %v1836_v22  ;;  %v6533_v22 = vld [vmem:[%s7807_s0 + $0x3a8] sm:$0xff] }
 0x437   :  { %v6528_v16 = vsel %vm208_vm1, %v1807_v17, %v1808_v45  ;;  %v7960_v45 = vrot.slane %v6500_v48, 2  ;;  %v1823_v17 = vrot.slane %v6533_v22, 2 }
 0x438   :  { %8594 = vst [vmem:[#allocation112_spill] sm:$0xff] %v6528_v16 }
 0x439   :  { %v1825_v46 = vsel %vm127_vm0, %v1823_v17, %v7960_v45 }
 0x43c   :  { %1948 = vrot.lane.b32.xlu1 %v1725_v38, %s3327_s11  ;;  %v3262_v38 = vld [vmem:[%s7807_s0 + $0x280] sm:$0xf] }
 0x43d   :  { %2572 = vrot.lane.b32.xlu2 %v1837_v23, %s3333_s18  ;;  %v1739_v23 = vrot.slane %v3262_v38, 4 }
 0x43e   :  { %2540 = vrot.lane.b32.xlu0 %v6084_v21, %s3333_s18  ;;  %v8597_v21 = vrot.slane %v8429_v35, 4  ;;  %v6569_v35 = vpop.permute.xlu0 %1980 }
 0x43f   :  { %8599 = vst [vmem:[#allocation132_spill] sm:$0xff] %v6569_v35  ;;  %v8605_v35 = vrot.slane %v5273_v57, 4  ;;  %v1802_v57 = vrot.slane %v6250_v25, 4 }
 0x440   :  { %v6553_v38 = vsel %vm208_vm1, %v8597_v21, %v1739_v23  ;;  %v1833_v21 = vrot.slane %v6533_v22, 4  ;;  %v8600_v23 = vrot.slane %v8466_v55, 4  ;;  %v6590_v55 = vld [vmem:[%s7807_s0 + $0x398] sm:$0xff] }
 0x441   :  { %8598 = vst [vmem:[#allocation83_spill] sm:$0xff] %v6553_v38 }
 0x442   :  { %v6575_v17 = vsel %vm208_vm1, %v1746_v14, %v8600_v23  ;;  %v1761_v23 = vrot.slane %v3263_v20, 4 }
 0x443   :  { %8601 = vst [vmem:[#allocation161_spill] sm:$0xff] %v6575_v17 }
 0x444   :  { %1954 = vrot.lane.b32.xlu1 %v6459_v37, %s3327_s11  ;;  %v6548_v37 = vpop.permute.xlu2 %1976 }
 0x445   :  { %2346 = vrot.lane.b32.xlu2 %v3263_v20, %s3331_s27  ;;  %8596 = vst [vmem:[#allocation53_spill] sm:$0xff] %v6548_v37  ;;  %v1835_v37 = vsel %vm208_vm1, %v1833_v21, %v1834_v1  ;;  %v6599_v1 = vld [vmem:[%s7807_s0 + $0x3a0] sm:$0xf]  ;;  %v7962_v21 = vrot.slane %v6590_v55, 2 }
 0x446   :  { %2282 = vrot.lane.b32.xlu0 %v6528_v16, %s3330_s26  ;;  %v1821_v20 = vrot.slane %v6599_v1, 2  ;;  %v3266_v16 = vld [vmem:[%s7807_s0 + $0x310] sm:$0xf] }
 0x447   :  { %v1769_v8 = vrot.slane %v3266_v16, 4 }
 0x44c   :  { %1960 = vrot.lane.b32.xlu1 %v6553_v38, %s3327_s11  ;;  %v6577_v45 = vpop.permute.xlu2 %1982 }
 0x44d   :  { %2474 = vrot.lane.b32.xlu2 %v1825_v46, %s3332_s13  ;;  %8602 = vst [vmem:[#allocation188_spill] sm:$0xff] %v6577_v45  ;;  %v6585_v46 = vpop.permute.xlu0 %1986  ;;  %v6615_v45 = vsel %vm208_vm1, %v1761_v23, %v8605_v35  ;;  %v7963_v23 = vrot.slane %v6383_v28, 4 }
 0x44e   :  { %2442 = vrot.lane.b32.xlu0 %v5339_v15, %s3332_s13  ;;  %8603 = vst [vmem:[#allocation163_spill] sm:$0xff] %v6585_v46 }
 0x44f   :  { %v6644_v16 = vsel %vm208_vm1, %v1802_v57, %v7963_v23  ;;  %v8612_v57 = vrot.slane %v5423_v49, 4  ;;  %v6674_v23 = vld [vmem:[%s7807_s0 + $0x390] sm:$0xff]  ;;  %v7966_v49 = vrot.slane %v6590_v55, 4 }
 0x454   :  { %1966 = vrot.lane.b32.xlu1 %v6575_v17, %s3327_s11  ;;  %v6594_v14 = vpop.permute.xlu2 %1988 }
 0x455   :  { %2248 = vrot.lane.b32.xlu2 %v5963_v19, %s3330_s26  ;;  %8604 = vst [vmem:[#allocation14_spill] sm:$0xff] %v6594_v14  ;;  %v6617_v46 = vpop.permute.xlu0 %1992  ;;  %v1822_v14 = vsel %vm127_vm0, %v7962_v21, %v1821_v20  ;;  %v8608_v20 = vrot.slane %v5358_v4, 4 }
 0x456   :  { %2570 = vrot.lane.b32.xlu0 %v1835_v37, %s3333_s18  ;;  %v6606_v37 = vld [vmem:[%s7807_s0 + $0x2d8] sm:$0xff]  ;;  %8606 = vst [vmem:[#allocation192_spill] sm:$0xff] %v6617_v46  ;;  %v6627_v59 = vpop.xlane.xlu1 %1514 }
 0x457   :  { %8607 = vst [vmem:[#allocation193_spill] sm:$0xff] %v6627_v59  ;;  %v6639_v21 = vsel %vm208_vm1, %v8608_v20, %v1769_v8  ;;  %v6651_v59 = vld [vmem:[%s7807_s0 + $0x330] sm:$0xff] }
 0x45c   :  { %1972 = vrot.lane.b32.xlu1 %v6488_v63, %s3327_s11  ;;  %v6632_v35 = vpop.permute.xlu2 %1994 }
 0x45d   :  { %2376 = vrot.lane.b32.xlu2 %v6590_v55, %s3331_s27  ;;  %v6654_v46 = vpop.permute.xlu0 %2030 }
 0x45e   :  { %2344 = vrot.lane.b32.xlu0 %v6606_v37, %s3331_s27  ;;  %8609 = vst [vmem:[#allocation16_spill] sm:$0xff] %v6654_v46  ;;  %v3268_v46 = vld [vmem:[%s7807_s0 + $0x358] sm:$0xf] }
 0x464   :  { %1978 = vrot.lane.b32.xlu1 %v6615_v45, %s3327_s11  ;;  %v6662_v8 = vpop.permute.xlu2 %2032 }
 0x465   :  { %2536 = vrot.lane.b32.xlu2 %v6010_v40, %s3333_s18  ;;  %8611 = vst [vmem:[#allocation187_spill] sm:$0xff] %v6662_v8  ;;  %v8615_v8 = vrot.slane %v5501_v58, 4 }
 0x466   :  { %2472 = vrot.lane.b32.xlu0 %v1822_v14, %s3332_s13  ;;  %v1776_v14 = vrot.slane %v6651_v59, 4 }
 0x468   :  { %v6667_v20 = vsel %vm208_vm1, %v1776_v14, %v8612_v57  ;;  %v1828_v14 = vrot.slane %v6674_v23, 4  ;;  %v6687_v57 = vpop.permute.xlu0 %2036 }
 0x469   :  { %8614 = vst [vmem:[#allocation99_spill] sm:$0xff] %v6687_v57  ;;  %v6730_v57 = vld [vmem:[%s7807_s0 + $0x248] sm:$0xff] }
 0x46a   :  { %8623 = vst [vmem:[#allocation164_spill] sm:$0xff] %v6730_v57 }
 0x46c   :  { %1984 = vrot.lane.b32.xlu1 %v6639_v21, %s3327_s11 }
 0x46d   :  { %2278 = vrot.lane.b32.xlu2 %v6644_v16, %s3330_s26 }
 0x46e   :  { %v6656_v4 = vpop.permute.xlu1 %1860  ;;  %2246 = vrot.lane.b32.xlu0 %v6575_v17, %s3330_s26 }
 0x46f   :  { %8610 = vst [vmem:[#allocation18_spill] sm:$0xff] %v6656_v4  ;;  %v1784_v4 = vrot.slane %v3268_v46, 4  ;;  %v6694_v46 = vpop.permute.xlu2 %2038 }
 0x470   :  { %8616 = vst [vmem:[#allocation102_spill] sm:$0xff] %v6694_v46  ;;  %v6706_v58 = vpop.permute.xlu0 %2042 }
 0x471   :  { %v6692_v25 = vsel %vm208_vm1, %v8615_v8, %v1784_v4  ;;  %8618 = vst [vmem:[#allocation201_spill] sm:$0xff] %v6706_v58  ;;  %v6711_v4 = vld [vmem:[%s7807_s0 + $0x228] sm:$0xff] }
 0x472   :  { %8619 = vst [vmem:[#allocation31_spill] sm:$0xff] %v6711_v4 }
 0x474   :  { %1990 = vrot.lane.b32.xlu1 %v6667_v20, %s3327_s11 }
 0x475   :  { %2438 = vrot.lane.b32.xlu2 %v5259_v13, %s3332_s13  ;;  %v1830_v13 = vsel %vm208_vm1, %v1828_v14, %v7966_v49 }
 0x476   :  { %v6679_v17 = vpop.permute.xlu1 %1874  ;;  %2374 = vrot.lane.b32.xlu0 %v6674_v23, %s3331_s27 }
 0x477   :  { %8613 = vst [vmem:[#allocation194_spill] sm:$0xff] %v6679_v17  ;;  %v6715_v8 = vpop.permute.xlu2 %2044 }
 0x478   :  { %8620 = vst [vmem:[#allocation138_spill] sm:$0xff] %v6715_v8  ;;  %v6725_v49 = vpop.permute.xlu0 %2048 }
 0x479   :  { %8622 = vst [vmem:[#allocation162_spill] sm:$0xff] %v6725_v49 }
 0x47c   :  { %1996 = vrot.lane.b32.xlu1 %v6692_v25, %s3327_s11 }
 0x47d   :  { %2566 = vrot.lane.b32.xlu2 %v1830_v13, %s3333_s18  ;;  %v3270_v13 = vld [vmem:[%s7807_s0 + $0x2c0] sm:$0xff] }
 0x47e   :  { %v6701_v17 = vpop.permute.xlu1 %1880  ;;  %2534 = vrot.lane.b32.xlu0 %v6021_v44, %s3333_s18 }
 0x47f   :  { %8617 = vst [vmem:[#allocation125_spill] sm:$0xff] %v6701_v17  ;;  %v6738_v17 = vpop.permute.xlu2 %2050 }
 0x480   :  { %8624 = vst [vmem:[#allocation6_spill] sm:$0xff] %v6738_v17  ;;  %v6749_v58 = vpop.permute.xlu0 %2054 }
 0x484   :  { %2034 = vrot.lane.b32.xlu1 %v6711_v4, %s3328_s12  ;;  %v6762_v4 = vld [vmem:[%s7807_s0 + $0x290] sm:$0xff] }
 0x485   :  { %2340 = vrot.lane.b32.xlu2 %v3270_v13, %s3331_s27  ;;  %v6745_v13 = vld [vmem:[%s7807_s0 + $0x270] sm:$0xff] }
 0x486   :  { %v6717_v14 = vpop.permute.xlu1 %1886  ;;  %2276 = vrot.lane.b32.xlu0 %v6692_v25, %s3330_s26 }
 0x487   :  { %8621 = vst [vmem:[#allocation208_spill] sm:$0xff] %v6717_v14 }
 0x488   :  { %v6773_v14 = vpop.permute.xlu0 %2060 }
 0x48c   :  { %2040 = vrot.lane.b32.xlu1 %v6730_v57, %s3328_s12  ;;  %v8627_v57 = vrot.slane %v6261_v33, 2 }
 0x48d   :  { %2468 = vrot.lane.b32.xlu2 %v6428_v51, %s3332_s13  ;;  %v6757_v51 = vpop.permute.xlu2 %2056 }
 0x48e   :  { %v6734_v46 = vpop.permute.xlu1 %1892  ;;  %2436 = vrot.lane.b32.xlu0 %v5268_v3, %s3332_s13 }
 0x494   :  { %2046 = vrot.lane.b32.xlu1 %v6745_v13, %s3328_s12 }
 0x495   :  { %2242 = vrot.lane.b32.xlu2 %v5893_v39, %s3330_s26  ;;  %v6775_v49 = vpop.permute.xlu2 %2062 }
 0x496   :  { %v6751_v44 = vpop.permute.xlu1 %1898  ;;  %2564 = vrot.lane.b32.xlu0 %v6482_v7, %s3333_s18  ;;  %v1797_v7 = vrot.slane %v6266_v36, 2  ;;  %8626 = vst [vmem:[#allocation174_spill] sm:$0xff] %v6775_v49 }
 0x498   :  { %v6782_v17 = vsel %vm127_vm0, %v1797_v7, %v8627_v57 }
 0x49c   :  { %2052 = vrot.lane.b32.xlu1 %v6762_v4, %s3328_s12 }
 0x49d   :  { %2370 = vrot.lane.b32.xlu2 %v6266_v36, %s3331_s27  ;;  %v6790_v36 = vpop.permute.xlu0 %2066  ;;  %v6794_v49 = vpop.permute.xlu2 %2068 }
 0x49e   :  { %v6766_v8 = vpop.permute.xlu1 %1936  ;;  %2338 = vrot.lane.b32.xlu0 %v5898_v27, %s3331_s27  ;;  %8629 = vst [vmem:[#allocation137_spill] sm:$0xff] %v6790_v36  ;;  %v1805_v36 = vrot.slane %v6388_v54, 4 }
 0x49f   :  { %8625 = vst [vmem:[#allocation171_spill] sm:$0xff] %v6766_v8 }
 0x4a0   :  { %8630 = vst [vmem:[#allocation42_spill] sm:$0xff] %v6794_v49  ;;  %v8635_v49 = vrot.slane %v6383_v28, 4 }
 0x4a4   :  { %2058 = vrot.lane.b32.xlu1 %v5898_v27, %s3328_s12 }
 0x4a5   :  { %2530 = vrot.lane.b32.xlu2 %v5948_v52, %s3333_s18  ;;  %v6802_v57 = vpop.permute.xlu0 %2072 }
 0x4a6   :  { %v6784_v8 = vpop.permute.xlu1 %1942  ;;  %2466 = vrot.lane.b32.xlu0 %v6782_v17, %s3332_s13  ;;  %8632 = vst [vmem:[#allocation139_spill] sm:$0xff] %v6802_v57  ;;  %v6823_v57 = vld [vmem:[%s7807_s0 + $0x320] sm:$0xff] }
 0x4a7   :  { %8628 = vst [vmem:[#allocation109_spill] sm:$0xff] %v6784_v8  ;;  %v6818_v8 = vsel %vm208_vm1, %v8635_v49, %v1805_v36 }
 0x4ac   :  { %2064 = vrot.lane.b32.xlu1 %v6606_v37, %s3328_s12  ;;  %v6810_v37 = vpop.permute.xlu2 %2074 }
 0x4ad   :  { %2272 = vrot.lane.b32.xlu2 %v6169_v41, %s3330_s26  ;;  %8634 = vst [vmem:[#allocation202_spill] sm:$0xff] %v6810_v37 }
 0x4ae   :  { %v6796_v27 = vpop.permute.xlu1 %1948  ;;  %2240 = vrot.lane.b32.xlu0 %v6553_v38, %s3330_s26 }
 0x4af   :  { %8631 = vst [vmem:[#allocation40_spill] sm:$0xff] %v6796_v27 }
 0x4b4   :  { %2070 = vrot.lane.b32.xlu1 %v6026_v34, %s3328_s12  ;;  %v6835_v54 = vpop.permute.xlu2 %2080 }
 0x4b5   :  { %2432 = vrot.lane.b32.xlu2 %v8563_v10, %s3332_s13  ;;  %v6827_v10 = vpop.permute.xlu0 %2078  ;;  %8637 = vst [vmem:[#allocation153_spill] sm:$0xff] %v6835_v54 }
 0x4b6   :  { %v6806_v7 = vpop.permute.xlu1 %1954  ;;  %2368 = vrot.lane.b32.xlu0 %v6383_v28, %s3331_s27  ;;  %8636 = vst [vmem:[#allocation209_spill] sm:$0xff] %v6827_v10 }
 0x4b7   :  { %8633 = vst [vmem:[#allocation150_spill] sm:$0xff] %v6806_v7 }
 0x4bc   :  { %2076 = vrot.lane.b32.xlu1 %v6823_v57, %s3328_s12  ;;  %v6847_v27 = vpop.permute.xlu2 %2086 }
 0x4bd   :  { %2560 = vrot.lane.b32.xlu2 %v6818_v8, %s3333_s18  ;;  %v6845_v36 = vpop.permute.xlu0 %2084 }
 0x4be   :  { %v6829_v37 = vpop.permute.xlu1 %1960  ;;  %2528 = vrot.lane.b32.xlu0 %v5963_v19, %s3333_s18  ;;  %8639 = vst [vmem:[#allocation207_spill] sm:$0xff] %v6845_v36 }
 0x4c4   :  { %2082 = vrot.lane.b32.xlu1 %v6142_v53, %s3328_s12  ;;  %v6861_v54 = vpop.permute.xlu2 %2092 }
 0x4c5   :  { %2334 = vrot.lane.b32.xlu2 %v6563_v61, %s3331_s27  ;;  %v6857_v10 = vpop.permute.xlu0 %2090  ;;  %v8642_v61 = vld [vmem:[#allocation191_spill] sm:$0xff] }
 0x4c6   :  { %v6839_v49 = vpop.permute.xlu1 %1966  ;;  %2270 = vrot.lane.b32.xlu0 %v6667_v20, %s3330_s26 }
 0x4c7   :  { %8638 = vst [vmem:[#allocation200_spill] sm:$0xff] %v6839_v49  ;;  %v8641_v49 = vld [vmem:[#allocation94_spill] sm:$0xff] }
 0x4cc   :  { %2088 = vrot.lane.b32.xlu1 %v6383_v28, %s3328_s12 }
 0x4cd   :  { %2462 = vrot.lane.b32.xlu2 %v6405_v31, %s3332_s13  ;;  %v6869_v28 = vpop.permute.xlu0 %2128  ;;  %v8645_v31 = vld [vmem:[#allocation204_spill] sm:$0xff] }
 0x4ce   :  { %v6851_v19 = vpop.permute.xlu1 %1972  ;;  %2430 = vrot.lane.b32.xlu0 %v8641_v49, %s3332_s13  ;;  %8644 = vst [vmem:[#allocation13_spill] sm:$0xff] %v6869_v28 }
 0x4cf   :  { %8640 = vst [vmem:[#allocation76_spill] sm:$0xff] %v6851_v19 }
 0x4d4   :  { %2126 = vrot.lane.b32.xlu1 %v8642_v61, %s3329_s21  ;;  %v6877_v61 = vpop.permute.xlu2 %2130 }
 0x4d5   :  { %2268 = vrot.lane.b32.xlu2 %v6131_v18, %s3330_s26  ;;  %8647 = vst [vmem:[#allocation108_spill] sm:$0xff] %v6877_v61  ;;  %v6888_v28 = vpop.permute.xlu0 %2134  ;;  %v8651_v61 = vld [vmem:[#allocation212_spill] sm:$0xff] }
 0x4d6   :  { %v6863_v7 = vpop.permute.xlu1 %1978  ;;  %2558 = vrot.lane.b32.xlu0 %v6644_v16, %s3333_s18  ;;  %v8648_v16 = vld [vmem:[#allocation61_spill] sm:$0xff]  ;;  %8649 = vst [vmem:[#allocation35_spill] sm:$0xff] %v6888_v28  ;;  %v6907_v28 = vld [vmem:[%s7807_s0 + $0x288] sm:$0xff] }
 0x4d7   :  { %8643 = vst [vmem:[#allocation11_spill] sm:$0xff] %v6863_v7  ;;  %v6882_v7 = vld [vmem:[%s7807_s0 + $0x350] sm:$0xff] }
 0x4dc   :  { %2132 = vrot.lane.b32.xlu1 %v8645_v31, %s3329_s21 }
 0x4dd   :  { %2428 = vrot.lane.b32.xlu2 %v8555_v0, %s3332_s13  ;;  %v6896_v0 = vpop.permute.xlu2 %2136 }
 0x4de   :  { %v6873_v19 = vpop.permute.xlu1 %1984  ;;  %2364 = vrot.lane.b32.xlu0 %v6882_v7, %s3331_s27  ;;  %8650 = vst [vmem:[#allocation182_spill] sm:$0xff] %v6896_v0 }
 0x4df   :  { %8646 = vst [vmem:[#allocation199_spill] sm:$0xff] %v6873_v19 }
 0x4e4   :  { %2138 = vrot.lane.b32.xlu1 %v8648_v16, %s3329_s21 }
 0x4e5   :  { %2556 = vrot.lane.b32.xlu2 %v6692_v25, %s3333_s18  ;;  %v6911_v25 = vpop.permute.xlu0 %2140  ;;  %v6913_v19 = vpop.permute.xlu2 %2142 }
 0x4e6   :  { %v6890_v31 = vpop.permute.xlu1 %1990  ;;  %2524 = vrot.lane.b32.xlu0 %v5882_v5, %s3333_s18  ;;  %8652 = vst [vmem:[#allocation24_spill] sm:$0xff] %v6911_v25 }
 0x4e7   :  { %8653 = vst [vmem:[#allocation68_spill] sm:$0xff] %v6913_v19 }
 0x4ec   :  { %2144 = vrot.lane.b32.xlu1 %v8651_v61, %s3329_s21 }
 0x4ed   :  { %2362 = vrot.lane.b32.xlu2 %v6142_v53, %s3331_s27  ;;  %v6923_v38 = vpop.permute.xlu0 %2146  ;;  %v6927_v36 = vpop.permute.xlu2 %2148 }
 0x4ee   :  { %v6900_v18 = vpop.permute.xlu1 %1996  ;;  %2330 = vrot.lane.b32.xlu0 %v6907_v28, %s3331_s27  ;;  %8655 = vst [vmem:[#allocation159_spill] sm:$0xff] %v6923_v38  ;;  %v8699_v38 = vld [vmem:[#allocation140_spill] sm:$0xff] }
 0x4ef   :  { %8656 = vst [vmem:[#allocation77_spill] sm:$0xff] %v6927_v36 }
 0x4f4   :  { %2150 = vrot.lane.b32.xlu1 %v8641_v49, %s3329_s21  ;;  %v6934_v49 = vld [vmem:[%s7807_s0 + $0x278] sm:$0xff] }
 0x4f5   :  { %2522 = vrot.lane.b32.xlu2 %v5893_v39, %s3333_s18  ;;  %v6940_v39 = vpop.permute.xlu0 %2152 }
 0x4f6   :  { %v6917_v0 = vpop.permute.xlu1 %2034  ;;  %2458 = vrot.lane.b32.xlu0 %v6376_v9, %s3332_s13  ;;  %v6948_v9 = vpop.permute.xlu2 %2154 }
 0x4f7   :  { %8654 = vst [vmem:[#allocation184_spill] sm:$0xff] %v6917_v0 }
 0x4fc   :  { %2156 = vrot.lane.b32.xlu1 %v5268_v3, %s3329_s21 }
 0x4fd   :  { %2328 = vrot.lane.b32.xlu2 %v6934_v49, %s3331_s27  ;;  %v6954_v0 = vpop.permute.xlu0 %2158 }
 0x4fe   :  { %v6929_v25 = vpop.permute.xlu1 %2040  ;;  %2264 = vrot.lane.b32.xlu0 %v6639_v21, %s3330_s26  ;;  %8659 = vst [vmem:[#allocation15_spill] sm:$0xff] %v6954_v0 }
 0x4ff   :  { %8657 = vst [vmem:[#allocation7_spill] sm:$0xff] %v6929_v25 }
 0x504   :  { %2162 = vrot.lane.b32.xlu1 %v5339_v15, %s3329_s21  ;;  %v6962_v15 = vpop.permute.xlu2 %2160 }
 0x505   :  { %2456 = vrot.lane.b32.xlu2 %v5485_v26, %s3332_s13  ;;  %8660 = vst [vmem:[#allocation135_spill] sm:$0xff] %v6962_v15  ;;  %v8664_v15 = vld [vmem:[#allocation10_spill] sm:$0xff] }
 0x506   :  { %v6944_v3 = vpop.permute.xlu1 %2046  ;;  %2424 = vrot.lane.b32.xlu0 %v8651_v61, %s3332_s13  ;;  %v6972_v61 = vpop.permute.xlu0 %2164 }
 0x507   :  { %8658 = vst [vmem:[#allocation96_spill] sm:$0xff] %v6944_v3 }
 0x508   :  { %8661 = vst [vmem:[#allocation195_spill] sm:$0xff] %v6972_v61 }
 0x50c   :  { %2168 = vrot.lane.b32.xlu1 %v5418_v43, %s3329_s21  ;;  %v6974_v0 = vpop.permute.xlu2 %2166  ;;  %v8673_v43 = vld [vmem:[#allocation95_spill] sm:$0xff] }
 0x50d   :  { %2262 = vrot.lane.b32.xlu2 %v6071_v11, %s3330_s26  ;;  %8662 = vst [vmem:[#allocation160_spill] sm:$0xff] %v6974_v0  ;;  %v8669_v0 = vld [vmem:[#allocation55_spill] sm:$0xff] }
 0x50e   :  { %v6956_v25 = vpop.permute.xlu1 %2052  ;;  %2552 = vrot.lane.b32.xlu0 %v6169_v41, %s3333_s18  ;;  %v6984_v11 = vpop.permute.xlu0 %2170 }
 0x50f   :  { %8665 = vst [vmem:[#allocation123_spill] sm:$0xff] %v6984_v11 }
 0x514   :  { %2174 = vrot.lane.b32.xlu1 %v5492_v24, %s3329_s21 }
 0x515   :  { %2422 = vrot.lane.b32.xlu2 %v8552_v56, %s3332_s13  ;;  %v6988_v56 = vpop.permute.xlu2 %2172 }
 0x516   :  { %v6966_v26 = vpop.permute.xlu1 %2058  ;;  %2358 = vrot.lane.b32.xlu0 %v6651_v59, %s3331_s27  ;;  %8666 = vst [vmem:[#allocation59_spill] sm:$0xff] %v6988_v56 }
 0x51c   :  { %2180 = vrot.lane.b32.xlu1 %v5561_v32, %s3329_s21 }
 0x51d   :  { %2550 = vrot.lane.b32.xlu2 %v6667_v20, %s3333_s18  ;;  %v7001_v20 = vpop.permute.xlu0 %2176  ;;  %v7009_v11 = vpop.permute.xlu2 %2178 }
 0x51e   :  { %v6978_v41 = vpop.permute.xlu1 %2064  ;;  %2518 = vrot.lane.b32.xlu0 %v8664_v15, %s3333_s18  ;;  %8668 = vst [vmem:[#allocation206_spill] sm:$0xff] %v7001_v20  ;;  %v7040_v20 = vld [vmem:[%s7807_s0 + $0x2f0] sm:$0xff] }
 0x51f   :  { %8663 = vst [vmem:[#allocation210_spill] sm:$0xff] %v6978_v41  ;;  %v6997_v41 = vld [vmem:[%s7807_s0 + $0x260] sm:$0xff] }
 0x520   :  { %8672 = vst [vmem:[#allocation180_spill] sm:$0xff] %v7009_v11 }
 0x521   :  { %8676 = vst [vmem:[#allocation148_spill] sm:$0xff] %v7040_v20 }
 0x524   :  { %2186 = vrot.lane.b32.xlu1 %v6782_v17, %s3329_s21 }
 0x525   :  { %2356 = vrot.lane.b32.xlu2 %v6823_v57, %s3331_s27  ;;  %v7015_v56 = vpop.permute.xlu0 %2182 }
 0x526   :  { %v6990_v61 = vpop.permute.xlu1 %2070  ;;  %2324 = vrot.lane.b32.xlu0 %v6997_v41, %s3331_s27 }
 0x527   :  { %8667 = vst [vmem:[#allocation168_spill] sm:$0xff] %v6990_v61  ;;  %v8671_v61 = vld [vmem:[#allocation146_spill] sm:$0xff] }
 0x52c   :  { %2224 = vrot.lane.b32.xlu1 %v8669_v0, %s3330_s26  ;;  %v7023_v0 = vpop.permute.xlu2 %2184 }
 0x52d   :  { %2516 = vrot.lane.b32.xlu2 %v8671_v61, %s3333_s18 }
 0x52e   :  { %v7005_v17 = vpop.permute.xlu1 %2076  ;;  %2452 = vrot.lane.b32.xlu0 %v6360_v42, %s3332_s13  ;;  %v7033_v42 = vpop.permute.xlu0 %2188 }
 0x52f   :  { %8670 = vst [vmem:[#allocation106_spill] sm:$0xff] %v7005_v17 }
 0x534   :  { %2230 = vrot.lane.b32.xlu1 %v8673_v43, %s3330_s26  ;;  %v7035_v3 = vpop.permute.xlu2 %2222 }
 0x535   :  { %2322 = vrot.lane.b32.xlu2 %v6451_v6, %s3331_s27  ;;  %8675 = vst [vmem:[#allocation196_spill] sm:$0xff] %v7035_v3 }
 0x536   :  { %v7017_v19 = vpop.permute.xlu1 %2082  ;;  %2258 = vrot.lane.b32.xlu0 %v6615_v45, %s3330_s26  ;;  %v7054_v3 = vpop.permute.xlu0 %2226 }
 0x537   :  { %8674 = vst [vmem:[#allocation136_spill] sm:$0xff] %v7017_v19 }
 0x538   :  { %8679 = vst [vmem:[#allocation177_spill] sm:$0xff] %v7054_v3 }
 0x53c   :  { %2236 = vrot.lane.b32.xlu1 %v8671_v61, %s3330_s26  ;;  %v1826_v61 = vrot.slane %v6505_v2, 2  ;;  %v7057_v11 = vpop.permute.xlu2 %2228 }
 0x53d   :  { %2450 = vrot.lane.b32.xlu2 %v5409_v12, %s3332_s13  ;;  %v8678_v12 = vrot.slane %v6500_v48, 2  ;;  %8680 = vst [vmem:[#allocation107_spill] sm:$0xff] %v7057_v11 }
 0x53e   :  { %v7027_v17 = vpop.permute.xlu1 %2088  ;;  %2418 = vrot.lane.b32.xlu0 %v8648_v16, %s3332_s13  ;;  %v7070_v48 = vpop.permute.xlu0 %2232 }
 0x53f   :  { %v1827_v16 = vsel %vm127_vm0, %v8678_v12, %v1826_v61  ;;  %8683 = vst [vmem:[#allocation64_spill] sm:$0xff] %v7070_v48 }
 0x544   :  { %2348 = vrot.lane.b32.xlu1 %v7040_v20, %s3331_s27  ;;  %v7078_v61 = vpop.permute.xlu2 %2234 }
 0x545   :  { %2256 = vrot.lane.b32.xlu2 %v6010_v40, %s3330_s26  ;;  %v7066_v40 = vld [vmem:[%s7807_s0 + $0x308] sm:$0xff]  ;;  %8685 = vst [vmem:[#allocation214_spill] sm:$0xff] %v7078_v61 }
 0x546   :  { %v7045_v24 = vpop.permute.xlu1 %2126  ;;  %2546 = vrot.lane.b32.xlu0 %v6137_v29, %s3333_s18  ;;  %8682 = vst [vmem:[#allocation122_spill] sm:$0xff] %v7066_v40 }
 0x547   :  { %8677 = vst [vmem:[#allocation73_spill] sm:$0xff] %v7045_v24 }
 0x54c   :  { %2476 = vrot.lane.b32.xlu1 %v1827_v16, %s3332_s13 }
 0x54d   :  { %2416 = vrot.lane.b32.xlu2 %v8547_v47, %s3332_s13  ;;  %v2253_v47 = vpop.permute.xlu0 %2252 }
 0x54e   :  { %v7059_v20 = vpop.permute.xlu1 %2132  ;;  %2352 = vrot.lane.b32.xlu0 %v7066_v40, %s3331_s27  ;;  %v8696_v40 = vld [vmem:[#allocation32_spill] sm:$0xff] }
 0x54f   :  { %8681 = vst [vmem:[#allocation181_spill] sm:$0xff] %v7059_v20 }
 0x554   :  { %2250 = vrot.lane.b32.xlu1 %v5948_v52, %s3330_s26  ;;  %v2285_v52 = vpop.permute.xlu2 %2284 }
 0x555   :  { %2544 = vrot.lane.b32.xlu2 %v6639_v21, %s3333_s18 }
 0x556   :  { %v7074_v2 = vpop.permute.xlu1 %2138  ;;  %2512 = vrot.lane.b32.xlu0 %v5766_v50, %s3333_s18  ;;  %v2381_v50 = vpop.permute.xlu0 %2380 }
 0x557   :  { %8684 = vst [vmem:[#allocation157_spill] sm:$0xff] %v7074_v2 }
 0x55c   :  { %2378 = vrot.lane.b32.xlu1 %v6533_v22, %s3331_s27  ;;  %v2445_v22 = vpop.permute.xlu2 %2444 }
 0x55d   :  { %2350 = vrot.lane.b32.xlu2 %v6026_v34, %s3331_s27 }
 0x55e   :  { %v7084_v12 = vpop.permute.xlu1 %2144  ;;  %2318 = vrot.lane.b32.xlu0 %v6189_v60, %s3331_s27  ;;  %v2541_v16 = vpop.permute.xlu0 %2540 }
 0x55f   :  { %8686 = vst [vmem:[#allocation215_spill] sm:$0xff] %v7084_v12 }
 0x564   :  { %2538 = vrot.lane.b32.xlu1 %v6615_v45, %s3333_s18  ;;  %v2573_v60 = vpop.permute.xlu2 %2572  ;;  %v1831_v45 = vrot.slane %v6599_v1, 4  ;;  %v1818_v1 = vrot.slane %v6674_v23, 2 }
 0x565   :  { %2510 = vrot.lane.b32.xlu2 %v8673_v43, %s3333_s18  ;;  %v8688_v43 = vrot.slane %v6590_v55, 4 }
 0x566   :  { %v7092_v21 = vpop.permute.xlu1 %2150  ;;  %2446 = vrot.lane.b32.xlu0 %v6346_v30, %s3332_s13  ;;  %v7108_v30 = vpop.permute.xlu0 %2282 }
 0x567   :  { %v1832_v3 = vsel %vm208_vm1, %v8688_v43, %v1831_v45 }
 0x56c   :  { %2280 = vrot.lane.b32.xlu1 %v6818_v8, %s3330_s26  ;;  %v7113_v8 = vpop.permute.xlu2 %2346 }
 0x56e   :  { %v2157_v34 = vpop.permute.xlu1 %2156 }
 0x574   :  { %2440 = vrot.lane.b32.xlu1 %v6332_v62, %s3332_s13  ;;  %v7118_v62 = vld [vmem:[%s7807_s0 + $0x2d0] sm:$0xff]  ;;  %v7127_v43 = vpop.permute.xlu2 %2474 }
 0x575   :  { %8690 = vst [vmem:[#allocation216_spill] sm:$0xff] %v7118_v62 }
 0x576   :  { %v7103_v24 = vpop.permute.xlu1 %2162 }
 0x577   :  { %8687 = vst [vmem:[#allocation74_spill] sm:$0xff] %v7103_v24  ;;  %v7123_v24 = vpop.permute.xlu0 %2442 }
 0x57c   :  { %2568 = vrot.lane.b32.xlu1 %v1832_v3, %s3333_s18  ;;  %v8692_v3 = vrot.slane %v6590_v55, 2  ;;  %v7135_v61 = vpop.permute.xlu2 %2248 }
 0x57e   :  { %v7111_v11 = vpop.permute.xlu1 %2168  ;;  %v1820_v20 = vsel %vm127_vm0, %v1818_v1, %v8692_v3 }
 0x57f   :  { %8689 = vst [vmem:[#allocation178_spill] sm:$0xff] %v7111_v11  ;;  %v2571_v11 = vpop.permute.xlu0 %2570 }
 0x584   :  { %2342 = vrot.lane.b32.xlu1 %v7118_v62, %s3331_s27  ;;  %v7143_v2 = vpop.permute.xlu2 %2376 }
 0x586   :  { %v7125_v45 = vpop.permute.xlu1 %2174 }
 0x587   :  { %8691 = vst [vmem:[#allocation93_spill] sm:$0xff] %v7125_v45  ;;  %v7139_v62 = vpop.permute.xlu0 %2344 }
 0x58c   :  { %2470 = vrot.lane.b32.xlu1 %v1820_v20, %s3332_s13  ;;  %v7153_v3 = vpop.permute.xlu2 %2536 }
 0x58e   :  { %v7133_v48 = vpop.permute.xlu1 %2180 }
 0x58f   :  { %v7147_v1 = vpop.permute.xlu0 %2472 }
 0x594   :  { %2244 = vrot.lane.b32.xlu1 %v5882_v5, %s3330_s26  ;;  %v8695_v5 = vld [vmem:[#allocation44_spill] sm:$0xff] }
 0x595   :  { %v2621_v45 = vsel %vm1109_vm2, %v6762_v4, %v8695_v5 }
 0x596   :  { %v2187_v23 = vpop.permute.xlu1 %2186 }
 0x59c   :  { %2372 = vrot.lane.b32.xlu1 %v6261_v33, %s3331_s27  ;;  %v7160_v33 = vpop.permute.xlu0 %2246 }
 0x59e   :  { %v7145_v55 = vpop.permute.xlu1 %2224 }
 0x59f   :  { %8693 = vst [vmem:[#allocation20_spill] sm:$0xff] %v7145_v55  ;;  %v8698_v55 = vld [vmem:[#allocation110_spill] sm:$0xff] }
 0x5a0   :  { %v2653_v19 = vsel %vm1142_vm3, %v2621_v45, %v8698_v55 }
 0x5a1   :  { %v2685_v6 = vsel %vm1175_vm4, %v2653_v19, %v6773_v14 }
 0x5a2   :  { %v2717_v36 = vsel %vm1208_vm5, %v2685_v6, %v2157_v34  ;;  %v2636_v34 = vsel %vm1109_vm2, %v6142_v53, %v6751_v44  ;;  %v8703_v53 = vld [vmem:[#allocation82_spill] sm:$0xff] }
 0x5a3   :  { %v2749_v55 = vsel %vm1241_vm6, %v2717_v36, %v2253_v47  ;;  %v8701_v36 = vld [vmem:[#allocation112_spill] sm:$0xff] }
 0x5a4   :  { %2532 = vrot.lane.b32.xlu1 %v6488_v63, %s3333_s18  ;;  %v2637_v63 = vsel %vm1109_vm2, %v6882_v7, %v8699_v38  ;;  %v7182_v7 = vpop.permute.xlu0 %2374 }
 0x5a5   :  { %v2669_v5 = vsel %vm1142_vm3, %v2637_v63, %v6900_v18  ;;  %v8702_v63 = vld [vmem:[#allocation30_spill] sm:$0xff] }
 0x5a6   :  { %v7151_v20 = vpop.permute.xlu1 %2230  ;;  %v2701_v45 = vsel %vm1175_vm4, %v2669_v5, %v6861_v54  ;;  %v2620_v5 = vsel %vm1109_vm2, %v6907_v28, %v8702_v63 }
 0x5a7   :  { %8694 = vst [vmem:[#allocation133_spill] sm:$0xff] %v7151_v20  ;;  %v7169_v20 = vpop.permute.xlu2 %2278  ;;  %v2733_v14 = vsel %vm1208_vm5, %v2701_v45, %v7033_v42  ;;  %v2652_v45 = vsel %vm1142_vm3, %v2620_v5, %v8703_v53  ;;  %v8708_v5 = vld [vmem:[#allocation192_spill] sm:$0xff] }
 0x5a8   :  { %v2765_v54 = vsel %vm1241_vm6, %v2733_v14, %v2285_v52  ;;  %v7206_v52 = vld [vmem:[%s7807_s0 + $0x2a8] sm:$0xff]  ;;  %v2684_v14 = vsel %vm1175_vm4, %v2652_v45, %v6966_v26  ;;  %v8709_v45 = vld [vmem:[#allocation161_spill] sm:$0xff] }
 0x5ac   :  { %2274 = vrot.lane.b32.xlu1 %v8696_v40, %s3330_s26  ;;  %v8700_v40 = vld [vmem:[#allocation85_spill] sm:$0xff] }
 0x5ae   :  { %v7162_v12 = vpop.permute.xlu1 %2236 }
 0x5af   :  { %8697 = vst [vmem:[#allocation189_spill] sm:$0xff] %v7162_v12  ;;  %v7189_v19 = vpop.permute.xlu2 %2438 }
 0x5b4   :  { %2434 = vrot.lane.b32.xlu1 %v8700_v40, %s3332_s13  ;;  %v2797_v40 = vsel %vm1274_vm7, %v2765_v54, %v2381_v50 }
 0x5b6   :  { %v2349_v12 = vpop.permute.xlu1 %2348 }
 0x5b7   :  { %v2781_v38 = vsel %vm1274_vm7, %v2749_v55, %v2349_v12  ;;  %v7210_v50 = vpop.permute.xlu2 %2566 }
 0x5b8   :  { %v2813_v18 = vsel %vm1307_vm8, %v2781_v38, %v2445_v22  ;;  %v7198_v22 = vpop.permute.xlu0 %2534 }
 0x5b9   :  { %v2845_v6 = vsel %vm1340_vm10, %v2813_v18, %v2541_v16  ;;  %v8704_v18 = vld [vmem:[#allocation33_spill] sm:$0xff] }
 0x5ba   :  { %3173 = vmatpush.xpose.msk.msra.mxu2 %vm1373_vm9, %v2845_v6 }
 0x5bc   :  { %2562 = vrot.lane.b32.xlu1 %v8701_v36, %s3333_s18 }
 0x5be   :  { %v2477_v47 = vpop.permute.xlu1 %2476 }
 0x5bf   :  { %v2829_v12 = vsel %vm1307_vm8, %v2797_v40, %v2477_v47  ;;  %v7230_v6 = vpop.permute.xlu2 %2340 }
 0x5c0   :  { %v2861_v42 = vsel %vm1340_vm10, %v2829_v12, %v2573_v60  ;;  %v2668_v60 = vsel %vm1142_vm3, %v2636_v34, %v6632_v35  ;;  %v7222_v38 = vpop.permute.xlu0 %2276 }
 0x5c1   :  { %3190 = vmatpush.xpose.msk.msra.mxu3 %vm1373_vm9, %v2861_v42  ;;  %v2700_v44 = vsel %vm1175_vm4, %v2668_v60, %v6857_v10  ;;  %v2716_v10 = vsel %vm1208_vm5, %v2684_v14, %v6948_v9  ;;  %v8707_v60 = vld [vmem:[#allocation105_spill] sm:$0xff] }
 0x5c2   :  { %v2732_v55 = vsel %vm1208_vm5, %v2700_v44, %v2187_v23 }
 0x5c3   :  { %v2764_v35 = vsel %vm1241_vm6, %v2732_v55, %v7108_v30 }
 0x5c4   :  { %2336 = vrot.lane.b32.xlu1 %v7206_v52, %s3331_s27 }
 0x5c6   :  { %v2251_v16 = vpop.permute.xlu1 %2250 }
 0x5c7   :  { %v2748_v23 = vsel %vm1241_vm6, %v2716_v10, %v2251_v16  ;;  %v7264_v16 = vld [vmem:[%s7807_s0 + $0x338] sm:$0xff] }
 0x5c8   :  { %v2780_v30 = vsel %vm1274_vm7, %v2748_v23, %v7113_v8  ;;  %v7244_v40 = vpop.permute.xlu0 %2436  ;;  %v2635_v63 = vsel %vm1109_vm2, %v7264_v16, %v8707_v60 }
 0x5c9   :  { %v2812_v47 = vsel %vm1307_vm8, %v2780_v30, %v7123_v24  ;;  %v2667_v44 = vsel %vm1142_vm3, %v2635_v63, %v8708_v5  ;;  %v8715_v63 = vld [vmem:[#allocation18_spill] sm:$0xff]  ;;  %v8716_v5 = vld [vmem:[#allocation207_spill] sm:$0xff] }
 0x5cc   :  { %2464 = vrot.lane.b32.xlu1 %v8704_v18, %s3332_s13 }
 0x5ce   :  { %v2379_v28 = vpop.permute.xlu1 %2378 }
 0x5cf   :  { %v2796_v54 = vsel %vm1274_vm7, %v2764_v35, %v2379_v28 }
 0x5d0   :  { %v2828_v36 = vsel %vm1307_vm8, %v2796_v54, %v7127_v43  ;;  %v7250_v43 = vpop.permute.xlu2 %2468  ;;  %v8710_v54 = vld [vmem:[#allocation88_spill] sm:$0xff] }
 0x5d1   :  { %v2860_v26 = vsel %vm1340_vm10, %v2828_v36, %v2571_v11  ;;  %v8705_v11 = vld [vmem:[#allocation118_spill] sm:$0xff]  ;;  %v8711_v36 = vld [vmem:[#allocation156_spill] sm:$0xff] }
 0x5d2   :  { %3191 = vmatpush.xpose.msk.msra.mxu3 %vm1373_vm9, %v2860_v26  ;;  %v2619_v42 = vsel %vm1109_vm2, %v6934_v49, %v8705_v11  ;;  %v7269_v49 = vpop.permute.xlu0 %2564 }
 0x5d3   :  { %v2651_v8 = vsel %vm1142_vm3, %v2619_v42, %v6829_v37 }
 0x5d4   :  { %2238 = vrot.lane.b32.xlu1 %v8664_v15, %s3330_s26  ;;  %v8706_v15 = vld [vmem:[#allocation29_spill] sm:$0xff]  ;;  %v2683_v24 = vsel %vm1175_vm4, %v2651_v8, %v6757_v51  ;;  %v2699_v51 = vsel %vm1175_vm4, %v2667_v44, %v7027_v17 }
 0x5d5   :  { %v2715_v37 = vsel %vm1208_vm5, %v2683_v24, %v6940_v39  ;;  %v2731_v39 = vsel %vm1208_vm5, %v2699_v51, %v7023_v0  ;;  %v8714_v24 = vld [vmem:[#allocation14_spill] sm:$0xff]  ;;  %v8717_v51 = vld [vmem:[#allocation79_spill] sm:$0xff] }
 0x5d6   :  { %v2539_v9 = vpop.permute.xlu1 %2538  ;;  %v2747_v55 = vsel %vm1241_vm6, %v2715_v37, %v7135_v61  ;;  %v2617_v37 = vsel %vm1109_vm2, %v6997_v41, %v8715_v63 }
 0x5d7   :  { %v2844_v12 = vsel %vm1340_vm10, %v2812_v47, %v2539_v9  ;;  %v2779_v14 = vsel %vm1274_vm7, %v2747_v55, %v7139_v62  ;;  %v2618_v62 = vsel %vm1109_vm2, %v6745_v13, %v8710_v54 }
 0x5d8   :  { %3174 = vmatpush.xpose.msk.msra.mxu2 %vm1373_vm9, %v2844_v12  ;;  %v7275_v53 = vpop.permute.xlu2 %2242  ;;  %v2650_v26 = vsel %vm1142_vm3, %v2618_v62, %v8711_v36  ;;  %v8721_v36 = vld [vmem:[#allocation145_spill] sm:$0xff] }
 0x5da   :  { %v7292_v10 = vpop.permute.xlu0 %2338 }
 0x5dc   :  { %2366 = vrot.lane.b32.xlu1 %v8706_v15, %s3331_s27 }
 0x5de   :  { %v2281_v34 = vpop.permute.xlu1 %2280 }
 0x5df   :  { %v2763_v28 = vsel %vm1241_vm6, %v2731_v39, %v2281_v34  ;;  %v8719_v39 = vld [vmem:[#allocation77_spill] sm:$0xff] }
 0x5e0   :  { %v2795_v61 = vsel %vm1274_vm7, %v2763_v28, %v7143_v2  ;;  %v7301_v0 = vpop.permute.xlu2 %2370  ;;  %v8712_v2 = vld [vmem:[#allocation86_spill] sm:$0xff] }
 0x5e1   :  { %v2634_v9 = vsel %vm1109_vm2, %v6651_v59, %v8712_v2 }
 0x5e2   :  { %v2666_v47 = vsel %vm1142_vm3, %v2634_v9, %v6890_v31  ;;  %v7318_v12 = vpop.permute.xlu0 %2466 }
 0x5e3   :  { %v2698_v11 = vsel %vm1175_vm4, %v2666_v47, %v6847_v27 }
 0x5e4   :  { %2526 = vrot.lane.b32.xlu1 %v8709_v45, %s3333_s18  ;;  %v2730_v31 = vsel %vm1208_vm5, %v2698_v11, %v7015_v56  ;;  %v2649_v45 = vsel %vm1142_vm3, %v2617_v37, %v8717_v51  ;;  %v8732_v37 = vld [vmem:[#allocation41_spill] sm:$0xff]  ;;  %v8733_v51 = vld [vmem:[#allocation211_spill] sm:$0xff] }
 0x5e5   :  { %v2762_v27 = vsel %vm1241_vm6, %v2730_v31, %v7169_v20  ;;  %v2633_v20 = vsel %vm1109_vm2, %v6823_v57, %v6734_v46  ;;  %v2681_v55 = vsel %vm1175_vm4, %v2649_v45, %v6956_v25 }
 0x5e6   :  { %v2441_v18 = vpop.permute.xlu1 %2440  ;;  %v2665_v60 = vsel %vm1142_vm3, %v2633_v20, %v8714_v24 }
 0x5e7   :  { %v2811_v35 = vsel %vm1307_vm8, %v2779_v14, %v2441_v18  ;;  %v2697_v44 = vsel %vm1175_vm4, %v2665_v60, %v8716_v5  ;;  %v8718_v14 = vld [vmem:[#allocation32_spill] sm:$0xff] }
 0x5e8   :  { %v2843_v17 = vsel %vm1340_vm10, %v2811_v35, %v7153_v3  ;;  %v2827_v3 = vsel %vm1307_vm8, %v2795_v61, %v7147_v1  ;;  %v7326_v8 = vpop.permute.xlu2 %2530  ;;  %v2729_v57 = vsel %vm1208_vm5, %v2697_v44, %v7133_v48  ;;  %v2713_v35 = vsel %vm1208_vm5, %v2681_v55, %v8719_v39  ;;  %v8731_v60 = vld [vmem:[#allocation164_spill] sm:$0xff] }
 0x5e9   :  { %3175 = vmatpush.xpose.msk.msra.mxu2 %vm1373_vm9, %v2843_v17  ;;  %v2761_v41 = vsel %vm1241_vm6, %v2729_v57, %v7222_v38  ;;  %v8736_v39 = vld [vmem:[#allocation120_spill] sm:$0xff] }
 0x5ea   :  { %v7342_v15 = vpop.permute.xlu0 %2240 }
 0x5ec   :  { %2332 = vrot.lane.b32.xlu1 %v6762_v4, %s3331_s27  ;;  %v2682_v4 = vsel %vm1175_vm4, %v2650_v26, %v6749_v58  ;;  %v8722_v26 = vld [vmem:[#allocation141_spill] sm:$0xff] }
 0x5ed   :  { %v2714_v1 = vsel %vm1208_vm5, %v2682_v4, %v7092_v21  ;;  %v8724_v4 = vld [vmem:[#allocation26_spill] sm:$0xff] }
 0x5ee   :  { %v2569_v23 = vpop.permute.xlu1 %2568  ;;  %v2746_v59 = vsel %vm1241_vm6, %v2714_v1, %v7160_v33  ;;  %v2794_v33 = vsel %vm1274_vm7, %v2762_v27, %v7182_v7  ;;  %v8725_v1 = vld [vmem:[#allocation6_spill] sm:$0xff] }
 0x5ef   :  { %v2859_v30 = vsel %vm1340_vm10, %v2827_v3, %v2569_v23 }
 0x5f0   :  { %3192 = vmatpush.xpose.msk.msra.mxu3 %vm1373_vm9, %v2859_v30  ;;  %v8723_v30 = vld [vmem:[#allocation150_spill] sm:$0xff] }
 0x5f4   :  { %2460 = vrot.lane.b32.xlu1 %v5561_v32, %s3332_s13 }
 0x5f6   :  { %v2343_v42 = vpop.permute.xlu1 %2342 }
 0x5f7   :  { %v2778_v58 = vsel %vm1274_vm7, %v2746_v59, %v2343_v42  ;;  %v8726_v59 = vld [vmem:[#allocation163_spill] sm:$0xff] }
 0x5f8   :  { %v2810_v21 = vsel %vm1307_vm8, %v2778_v58, %v7189_v19  ;;  %v8727_v58 = vld [vmem:[#allocation159_spill] sm:$0xff] }
 0x5f9   :  { %v2842_v32 = vsel %vm1340_vm10, %v2810_v21, %v7198_v22  ;;  %v7347_v22 = vpop.permute.xlu2 %2272  ;;  %v8728_v21 = vld [vmem:[#allocation136_spill] sm:$0xff] }
 0x5fa   :  { %3176 = vmatpush.xpose.msk.msra.mxu2 %vm1373_vm9, %v2842_v32 }
 0x5fc   :  { %2266 = vrot.lane.b32.xlu1 %v6137_v29, %s3330_s26  ;;  %v8713_v29 = vld [vmem:[#allocation218_spill] sm:$0xff] }
 0x5fe   :  { %v2471_v56 = vpop.permute.xlu1 %2470 }
 0x5ff   :  { %v2826_v34 = vsel %vm1307_vm8, %v2794_v33, %v2471_v56 }
 0x600   :  { %v2858_v19 = vsel %vm1340_vm10, %v2826_v34, %v7210_v50  ;;  %v7360_v50 = vpop.permute.xlu0 %2368 }
 0x601   :  { %3193 = vmatpush.xpose.msk.msra.mxu3 %vm1373_vm9, %v2858_v19  ;;  %v2433_v46 = vpop.permute.xlu2 %2432  ;;  %v8729_v19 = vld [vmem:[#allocation180_spill] sm:$0xff] }
 0x604   :  { %2426 = vrot.lane.b32.xlu1 %v8713_v29, %s3332_s13 }
 0x606   :  { %v2245_v7 = vpop.permute.xlu1 %2244 }
 0x607   :  { %v2745_v17 = vsel %vm1241_vm6, %v2713_v35, %v2245_v7  ;;  %v8738_v35 = vld [vmem:[#allocation122_spill] sm:$0xff] }
 0x608   :  { %v2529_v61 = vpop.permute.xlu0 %2528  ;;  %v2777_v38 = vsel %vm1274_vm7, %v2745_v17, %v7230_v6  ;;  %v2616_v6 = vsel %vm1109_vm2, %v8722_v26, %v8721_v36  ;;  %v8739_v17 = vld [vmem:[#allocation199_spill] sm:$0xff] }
 0x609   :  { %v2561_v54 = vpop.permute.xlu2 %2560  ;;  %v2809_v23 = vsel %vm1307_vm8, %v2777_v38, %v7244_v40  ;;  %v7405_v40 = vld [vmem:[%s7807_s0 + $0x318] sm:$0xff] }
 0x60a   :  { %v2632_v47 = vsel %vm1109_vm2, %v7405_v40, %v8724_v4 }
 0x60b   :  { %v2664_v42 = vsel %vm1142_vm3, %v2632_v47, %v8726_v59 }
 0x60c   :  { %2554 = vrot.lane.b32.xlu1 %v8718_v14, %s3333_s18  ;;  %v2696_v32 = vsel %vm1175_vm4, %v2664_v42, %v8728_v21 }
 0x60d   :  { %v2728_v20 = vsel %vm1208_vm5, %v2696_v32, %v8729_v19  ;;  %v8746_v32 = vld [vmem:[#allocation78_spill] sm:$0xff]  ;;  %v8748_v19 = vld [vmem:[#allocation65_spill] sm:$0xff] }
 0x60e   :  { %v2373_v18 = vpop.permute.xlu1 %2372 }
 0x60f   :  { %v2793_v28 = vsel %vm1274_vm7, %v2761_v41, %v2373_v18  ;;  %v8735_v41 = vld [vmem:[#allocation215_spill] sm:$0xff] }
 0x610   :  { %v2825_v48 = vsel %vm1307_vm8, %v2793_v28, %v7250_v43  ;;  %v7391_v43 = vpop.permute.xlu0 %2270 }
 0x611   :  { %v2857_v25 = vsel %vm1340_vm10, %v2825_v48, %v7269_v49  ;;  %v8720_v49 = vld [vmem:[#allocation83_spill] sm:$0xff]  ;;  %v7400_v9 = vpop.permute.xlu2 %2334 }
 0x612   :  { %3194 = vmatpush.xpose.msk.msra.mxu3 %vm1373_vm9, %v2857_v25 }
 0x614   :  { %2360 = vrot.lane.b32.xlu1 %v7264_v16, %s3331_s27  ;;  %v2648_v16 = vsel %vm1142_vm3, %v2616_v6, %v8723_v30  ;;  %v8741_v6 = vld [vmem:[#allocation206_spill] sm:$0xff] }
 0x615   :  { %v2680_v11 = vsel %vm1175_vm4, %v2648_v16, %v8725_v1  ;;  %v8742_v16 = vld [vmem:[#allocation142_spill] sm:$0xff]  ;;  %v3285_v1 = vld [vmem:[%s7807_s0 + $0x300] sm:$0xff] }
 0x616   :  { %v2533_v62 = vpop.permute.xlu1 %2532  ;;  %v2712_v31 = vsel %vm1208_vm5, %v2680_v11, %v8727_v58  ;;  %v8743_v11 = vld [vmem:[#allocation208_spill] sm:$0xff] }
 0x617   :  { %v2841_v3 = vsel %vm1340_vm10, %v2809_v23, %v2533_v62  ;;  %v2744_v27 = vsel %vm1241_vm6, %v2712_v31, %v7275_v53  ;;  %v2630_v59 = vsel %vm1109_vm2, %v3285_v1, %v8743_v11  ;;  %v8762_v1 = vld [vmem:[#allocation59_spill] sm:$0xff] }
 0x618   :  { %3177 = vmatpush.xpose.msk.msra.mxu2 %vm1373_vm9, %v2841_v3  ;;  %v2776_v33 = vsel %vm1274_vm7, %v2744_v27, %v7292_v10  ;;  %v7424_v56 = vpop.permute.xlu0 %2430  ;;  %v8730_v10 = vld [vmem:[#allocation117_spill] sm:$0xff] }
 0x619   :  { %v2615_v63 = vsel %vm1109_vm2, %v8731_v60, %v8730_v10  ;;  %v8740_v3 = vld [vmem:[#allocation153_spill] sm:$0xff] }
 0x61c   :  { %2520 = vrot.lane.b32.xlu1 %v8720_v49, %s3333_s18 }
 0x61e   :  { %v2275_v2 = vpop.permute.xlu1 %2274 }
 0x61f   :  { %v2760_v7 = vsel %vm1241_vm6, %v2728_v20, %v2275_v2 }
 0x620   :  { %v2792_v53 = vsel %vm1274_vm7, %v2760_v7, %v7301_v0  ;;  %v2559_v57 = vpop.permute.xlu0 %2558  ;;  %v8734_v0 = vld [vmem:[#allocation162_spill] sm:$0xff] }
 0x621   :  { %v2824_v44 = vsel %vm1307_vm8, %v2792_v53, %v7318_v12  ;;  %v8737_v12 = vld [vmem:[#allocation28_spill] sm:$0xff] }
 0x622   :  { %v2631_v28 = vsel %vm1109_vm2, %v8738_v35, %v8737_v12 }
 0x623   :  { %v2663_v48 = vsel %vm1142_vm3, %v2631_v28, %v8739_v17  ;;  %v8755_v17 = vld [vmem:[#allocation138_spill] sm:$0xff] }
 0x624   :  { %2326 = vrot.lane.b32.xlu1 %v6745_v13, %s3331_s27  ;;  %v2463_v13 = vpop.permute.xlu2 %2462  ;;  %v2695_v49 = vsel %vm1175_vm4, %v2663_v48, %v8740_v3 }
 0x625   :  { %v2727_v30 = vsel %vm1208_vm5, %v2695_v49, %v8741_v6  ;;  %v8759_v49 = vld [vmem:[#allocation189_spill] sm:$0xff] }
 0x626   :  { %v2435_v34 = vpop.permute.xlu1 %2434 }
 0x627   :  { %v2808_v29 = vsel %vm1307_vm8, %v2776_v33, %v2435_v34  ;;  %v8747_v33 = vld [vmem:[#allocation209_spill] sm:$0xff] }
 0x628   :  { %v2840_v24 = vsel %vm1340_vm10, %v2808_v29, %v7326_v8  ;;  %v2647_v8 = vsel %vm1142_vm3, %v2615_v63, %v8733_v51  ;;  %v7466_v26 = vpop.permute.xlu0 %2364  ;;  %v8749_v29 = vld [vmem:[#allocation93_spill] sm:$0xff] }
 0x629   :  { %3178 = vmatpush.xpose.msk.msra.mxu2 %vm1373_vm9, %v2840_v24  ;;  %v2679_v55 = vsel %vm1175_vm4, %v2647_v8, %v8734_v0  ;;  %v8750_v24 = vld [vmem:[#allocation96_spill] sm:$0xff] }
 0x62a   :  { %v2711_v18 = vsel %vm1208_vm5, %v2679_v55, %v8735_v41  ;;  %v3287_v41 = vld [vmem:[%s7807_s0 + $0x230] sm:$0xff] }
 0x62b   :  { %v2743_v25 = vsel %vm1241_vm6, %v2711_v18, %v7342_v15  ;;  %v2759_v15 = vsel %vm1241_vm6, %v2727_v30, %v7347_v22  ;;  %v8744_v22 = vld [vmem:[#allocation147_spill] sm:$0xff]  ;;  %v8753_v18 = vld [vmem:[#allocation50_spill] sm:$0xff] }
 0x62c   :  { %2454 = vrot.lane.b32.xlu1 %v8732_v37, %s3332_s13  ;;  %v7448_v14 = vpop.permute.xlu2 %2268 }
 0x62e   :  { %v2563_v5 = vpop.permute.xlu1 %2562 }
 0x62f   :  { %v2856_v45 = vsel %vm1340_vm10, %v2824_v44, %v2563_v5  ;;  %v8751_v5 = vld [vmem:[#allocation68_spill] sm:$0xff] }
 0x630   :  { %3195 = vmatpush.xpose.msk.msra.mxu3 %vm1373_vm9, %v2856_v45  ;;  %v2525_v42 = vpop.permute.xlu0 %2524 }
 0x634   :  { %2260 = vrot.lane.b32.xlu1 %v8736_v39, %s3330_s26  ;;  %v2429_v2 = vpop.permute.xlu2 %2428  ;;  %v2613_v39 = vsel %vm1109_vm2, %v3287_v41, %v8753_v18 }
 0x636   :  { %v2337_v38 = vpop.permute.xlu1 %2336 }
 0x637   :  { %v2775_v62 = vsel %vm1274_vm7, %v2743_v25, %v2337_v38  ;;  %v8756_v38 = vld [vmem:[#allocation115_spill] sm:$0xff] }
 0x638   :  { %v2807_v23 = vsel %vm1307_vm8, %v2775_v62, %v2433_v46  ;;  %v2791_v46 = vsel %vm1274_vm7, %v2759_v15, %v7360_v50  ;;  %v8745_v50 = vld [vmem:[#allocation188_spill] sm:$0xff]  ;;  %v2331_v10 = vpop.permute.xlu0 %2330 }
 0x639   :  { %v2839_v36 = vsel %vm1340_vm10, %v2807_v23, %v2529_v61  ;;  %v2662_v31 = vsel %vm1142_vm3, %v2630_v59, %v8745_v50  ;;  %v8757_v62 = vld [vmem:[#allocation148_spill] sm:$0xff] }
 0x63a   :  { %3179 = vmatpush.xpose.msk.msra.mxu2 %vm1373_vm9, %v2839_v36  ;;  %v2694_v34 = vsel %vm1175_vm4, %v2662_v31, %v8747_v33  ;;  %v2629_v23 = vsel %vm1109_vm2, %v8757_v62, %v8756_v38  ;;  %v8763_v59 = vld [vmem:[#allocation124_spill] sm:$0xff]  ;;  %v8777_v62 = vld [vmem:[#allocation81_spill] sm:$0xff] }
 0x63b   :  { %v2726_v7 = vsel %vm1208_vm5, %v2694_v34, %v8749_v29  ;;  %v8766_v34 = vld [vmem:[#allocation56_spill] sm:$0xff]  ;;  %v3288_v29 = vld [vmem:[%s7807_s0 + $0x2e8] sm:$0xff] }
 0x63c   :  { %2420 = vrot.lane.b32.xlu1 %v8742_v16, %s3332_s13  ;;  %v2557_v21 = vpop.permute.xlu2 %2556  ;;  %v2758_v63 = vsel %vm1241_vm6, %v2726_v7, %v7391_v43  ;;  %v8752_v43 = vld [vmem:[#allocation69_spill] sm:$0xff]  ;;  %v8760_v16 = vld [vmem:[#allocation132_spill] sm:$0xff] }
 0x63d   :  { %v2661_v15 = vsel %vm1142_vm3, %v2629_v23, %v8760_v16  ;;  %v8780_v16 = vld [vmem:[#allocation139_spill] sm:$0xff] }
 0x63e   :  { %v2465_v4 = vpop.permute.xlu1 %2464 }
 0x63f   :  { %v2823_v61 = vsel %vm1307_vm8, %v2791_v46, %v2465_v4  ;;  %v8761_v4 = vld [vmem:[#allocation106_spill] sm:$0xff] }
 0x640   :  { %v2855_v47 = vsel %vm1340_vm10, %v2823_v61, %v2561_v54  ;;  %v3286_v54 = vld [vmem:[%s7807_s0 + $0x240] sm:$0xff] }
 0x641   :  { %3196 = vmatpush.xpose.msk.msra.mxu3 %vm1373_vm9, %v2855_v47  ;;  %v2614_v27 = vsel %vm1109_vm2, %v3286_v54, %v8746_v32  ;;  %v8764_v54 = vld [vmem:[#allocation144_spill] sm:$0xff]  ;;  %v8765_v32 = vld [vmem:[#allocation31_spill] sm:$0xff] }
 0x642   :  { %v2646_v20 = vsel %vm1142_vm3, %v2614_v27, %v8748_v19  ;;  %v2612_v27 = vsel %vm1109_vm2, %v8765_v32, %v8764_v54 }
 0x643   :  { %v2678_v53 = vsel %vm1175_vm4, %v2646_v20, %v8750_v24  ;;  %v8769_v24 = vld [vmem:[#allocation201_spill] sm:$0xff] }
 0x644   :  { %2548 = vrot.lane.b32.xlu1 %v8744_v22, %s3333_s18  ;;  %v2710_v44 = vsel %vm1208_vm5, %v2678_v53, %v8751_v5  ;;  %v2363_v0 = vpop.permute.xlu2 %2362  ;;  %v8771_v5 = vld [vmem:[#allocation157_spill] sm:$0xff] }
 0x646   :  { %v2239_v58 = vpop.permute.xlu1 %2238 }
 0x647   :  { %v2742_v8 = vsel %vm1241_vm6, %v2710_v44, %v2239_v58 }
 0x64c   :  { %2354 = vrot.lane.b32.xlu1 %v7405_v40, %s3331_s27  ;;  %v2774_v40 = vsel %vm1274_vm7, %v2742_v8, %v7400_v9  ;;  %v2459_v9 = vpop.permute.xlu0 %2458  ;;  %v2523_v25 = vpop.permute.xlu2 %2522 }
 0x64e   :  { %v2367_v37 = vpop.permute.xlu1 %2366 }
 0x64f   :  { %v2790_v51 = vsel %vm1274_vm7, %v2758_v63, %v2367_v37  ;;  %v8770_v63 = vld [vmem:[#allocation11_spill] sm:$0xff] }
 0x650   :  { %v2822_v45 = vsel %vm1307_vm8, %v2790_v51, %v2463_v13  ;;  %v2806_v13 = vsel %vm1307_vm8, %v2774_v40, %v7424_v56  ;;  %v8758_v56 = vld [vmem:[#allocation24_spill] sm:$0xff]  ;;  %v8772_v51 = vld [vmem:[#allocation202_spill] sm:$0xff] }
 0x651   :  { %v2854_v55 = vsel %vm1340_vm10, %v2822_v45, %v2559_v57  ;;  %v8754_v57 = vld [vmem:[#allocation40_spill] sm:$0xff]  ;;  %v8773_v45 = vld [vmem:[#allocation203_spill] sm:$0xff] }
 0x652   :  { %3197 = vmatpush.xpose.msk.msra.mxu3 %vm1373_vm9, %v2854_v55  ;;  %v2645_v35 = vsel %vm1142_vm3, %v2613_v39, %v8754_v57  ;;  %v8774_v55 = vld [vmem:[#allocation214_spill] sm:$0xff]  ;;  %v8775_v39 = vld [vmem:[#allocation123_spill] sm:$0xff] }
 0x653   :  { %v2677_v48 = vsel %vm1175_vm4, %v2645_v35, %v8755_v17 }
 0x654   :  { %2514 = vrot.lane.b32.xlu1 %v8752_v43, %s3333_s18  ;;  %v2709_v3 = vsel %vm1208_vm5, %v2677_v48, %v8758_v56  ;;  %v2265_v47 = vpop.permute.xlu0 %2264  ;;  %v2329_v58 = vpop.permute.xlu2 %2328  ;;  %v8776_v48 = vld [vmem:[#allocation125_spill] sm:$0xff] }
 0x655   :  { %v2741_v36 = vsel %vm1241_vm6, %v2709_v3, %v8759_v49  ;;  %v8778_v3 = vld [vmem:[#allocation53_spill] sm:$0xff] }
 0x656   :  { %v2527_v12 = vpop.permute.xlu1 %2526 }
 0x657   :  { %v2838_v28 = vsel %vm1340_vm10, %v2806_v13, %v2527_v12 }
 0x658   :  { %3180 = vmatpush.xpose.msk.msra.mxu2 %vm1373_vm9, %v2838_v28 }
 0x65c   :  { %2320 = vrot.lane.b32.xlu1 %v8731_v60, %s3331_s27  ;;  %v2693_v60 = vsel %vm1175_vm4, %v2661_v15, %v8761_v4  ;;  %v2425_v33 = vpop.permute.xlu0 %2424 }
 0x65d   :  { %v2725_v11 = vsel %vm1208_vm5, %v2693_v60, %v8762_v1  ;;  %v8782_v60 = vld [vmem:[#allocation111_spill] sm:$0xff] }
 0x65e   :  { %v2333_v6 = vpop.permute.xlu1 %2332  ;;  %v2757_v22 = vsel %vm1241_vm6, %v2725_v11, %v7448_v14  ;;  %v8767_v14 = vld [vmem:[#allocation39_spill] sm:$0xff] }
 0x65f   :  { %v2773_v30 = vsel %vm1274_vm7, %v2741_v36, %v2333_v6  ;;  %v2644_v19 = vsel %vm1142_vm3, %v2612_v27, %v8767_v14  ;;  %v8779_v6 = vld [vmem:[#allocation8_spill] sm:$0xff]  ;;  %v8783_v1 = vld [vmem:[#allocation7_spill] sm:$0xff] }
 0x660   :  { %v2805_v46 = vsel %vm1307_vm8, %v2773_v30, %v2429_v2  ;;  %v2789_v2 = vsel %vm1274_vm7, %v2757_v22, %v7466_v26  ;;  %v2457_v26 = vpop.permute.xlu2 %2456  ;;  %v2676_v53 = vsel %vm1175_vm4, %v2644_v19, %v8769_v24  ;;  %v8785_v27 = vld [vmem:[#allocation64_spill] sm:$0xff] }
 0x661   :  { %v2837_v61 = vsel %vm1340_vm10, %v2805_v46, %v2525_v42  ;;  %v2708_v44 = vsel %vm1208_vm5, %v2676_v53, %v8771_v5  ;;  %v8789_v5 = vld [vmem:[#allocation75_spill] sm:$0xff] }
 0x662   :  { %3181 = vmatpush.xpose.msk.msra.mxu2 %vm1373_vm9, %v2837_v61  ;;  %v2740_v40 = vsel %vm1241_vm6, %v2708_v44, %v8774_v55  ;;  %v8790_v44 = vld [vmem:[#allocation216_spill] sm:$0xff] }
 0x663   :  { %v2772_v43 = vsel %vm1274_vm7, %v2740_v40, %v2331_v10  ;;  %v3289_v10 = vld [vmem:[%s7807_s0 + $0x2d8] sm:$0xff] }
 0x664   :  { %2448 = vrot.lane.b32.xlu1 %v8763_v59, %s3332_s13  ;;  %v2553_v41 = vpop.permute.xlu0 %2552  ;;  %v2627_v38 = vsel %vm1109_vm2, %v3289_v10, %v8776_v48 }
 0x666   :  { %v2461_v50 = vpop.permute.xlu1 %2460 }
 0x667   :  { %v2821_v31 = vsel %vm1307_vm8, %v2789_v2, %v2461_v50 }
 0x668   :  { %v2853_v42 = vsel %vm1340_vm10, %v2821_v31, %v2557_v21  ;;  %v8768_v21 = vld [vmem:[#allocation27_spill] sm:$0xff]  ;;  %v2263_v28 = vpop.permute.xlu2 %2262  ;;  %v8784_v31 = vld [vmem:[#allocation182_spill] sm:$0xff] }
 0x669   :  { %3198 = vmatpush.xpose.msk.msra.mxu3 %vm1373_vm9, %v2853_v42  ;;  %v2628_v7 = vsel %vm1109_vm2, %v3288_v29, %v8768_v21 }
 0x66a   :  { %v2660_v37 = vsel %vm1142_vm3, %v2628_v7, %v8770_v63  ;;  %v8787_v7 = vld [vmem:[#allocation109_spill] sm:$0xff]  ;;  %v8788_v63 = vld [vmem:[#allocation102_spill] sm:$0xff] }
 0x66b   :  { %v2692_v8 = vsel %vm1175_vm4, %v2660_v37, %v8772_v51  ;;  %v2626_v51 = vsel %vm1109_vm2, %v8790_v44, %v8789_v5  ;;  %v3295_v44 = vld [vmem:[%s7807_s0 + $0x1f8] sm:$0xff] }
 0x66c   :  { %2254 = vrot.lane.b32.xlu1 %v8766_v34, %s3330_s26  ;;  %v2724_v12 = vsel %vm1208_vm5, %v2692_v8, %v8775_v39  ;;  %v2359_v36 = vpop.permute.xlu0 %2358  ;;  %v8791_v8 = vld [vmem:[#allocation35_spill] sm:$0xff] }
 0x66e   :  { %v2267_v20 = vpop.permute.xlu1 %2266 }
 0x66f   :  { %v2756_v57 = vsel %vm1241_vm6, %v2724_v12, %v2267_v20  ;;  %v8786_v20 = vld [vmem:[#allocation92_spill] sm:$0xff] }
 0x670   :  { %v2788_v17 = vsel %vm1274_vm7, %v2756_v57, %v2363_v0  ;;  %v3290_v0 = vld [vmem:[%s7807_s0 + $0x218] sm:$0xff]  ;;  %v2423_v46 = vpop.permute.xlu2 %2422 }
 0x671   :  { %v2820_v56 = vsel %vm1307_vm8, %v2788_v17, %v2459_v9  ;;  %v2611_v30 = vsel %vm1109_vm2, %v3290_v0, %v8779_v6  ;;  %v8781_v9 = vld [vmem:[#allocation178_spill] sm:$0xff]  ;;  %v8795_v17 = vld [vmem:[#allocation160_spill] sm:$0xff]  ;;  %v8796_v0 = vld [vmem:[#allocation49_spill] sm:$0xff] }
 0x672   :  { %v2643_v61 = vsel %vm1142_vm3, %v2611_v30, %v8782_v60  ;;  %v8797_v30 = vld [vmem:[#allocation34_spill] sm:$0xff] }
 0x673   :  { %v2675_v11 = vsel %vm1175_vm4, %v2643_v61, %v8783_v1  ;;  %v8800_v61 = vld [vmem:[#allocation76_spill] sm:$0xff] }
 0x674   :  { %2414 = vrot.lane.b32.xlu1 %v8773_v45, %s3332_s13  ;;  %v2707_v42 = vsel %vm1208_vm5, %v2675_v11, %v8784_v31  ;;  %v2519_v32 = vpop.permute.xlu0 %2518  ;;  %v8801_v11 = vld [vmem:[#allocation181_spill] sm:$0xff]  ;;  %v8803_v31 = vld [vmem:[#allocation107_spill] sm:$0xff]  ;;  %s3067_s13 = sshll.u32 %s7811_s4, 4  ;;  %s3068_s13 = int_to_ptr.hbm [resolvable:$true] %s3067_s13 }
 0x675   :  { %v2739_v34 = vsel %vm1241_vm6, %v2707_v42, %v8785_v27  ;;  %v8804_v27 = vld [vmem:[#allocation195_spill] sm:$0xff] }
 0x676   :  { %v2427_v18 = vpop.permute.xlu1 %2426  ;;  %v2771_v14 = vsel %vm1274_vm7, %v2739_v34, %v2329_v58 }
 0x677   :  { %v2804_v13 = vsel %vm1307_vm8, %v2772_v43, %v2427_v18  ;;  %v2803_v29 = vsel %vm1307_vm8, %v2771_v14, %v2425_v33  ;;  %v8792_v33 = vld [vmem:[#allocation133_spill] sm:$0xff] }
 0x678   :  { %v2836_v35 = vsel %vm1340_vm10, %v2804_v13, %v2523_v25  ;;  %v2659_v25 = vsel %vm1142_vm3, %v2627_v38, %v8778_v3  ;;  %v2551_v19 = vpop.permute.xlu2 %2550  ;;  %v8793_v18 = vld [vmem:[#allocation129_spill] sm:$0xff]  ;;  %v8794_v13 = vld [vmem:[#allocation168_spill] sm:$0xff] }
 0x679   :  { %3182 = vmatpush.xpose.msk.msra.mxu2 %vm1373_vm9, %v2836_v35  ;;  %v2691_v15 = vsel %vm1175_vm4, %v2659_v25, %v8780_v16  ;;  %v2658_v39 = vsel %vm1142_vm3, %v2626_v51, %v8793_v18  ;;  %v3293_v16 = vld [vmem:[%s7807_s0 + $0x2c0] sm:$0xff]  ;;  %v8807_v51 = vld [vmem:[#allocation36_spill] sm:$0xff] }
 0x67a   :  { %v2723_v4 = vsel %vm1208_vm5, %v2691_v15, %v8781_v9  ;;  %v2690_v57 = vsel %vm1175_vm4, %v2658_v39, %v8794_v13  ;;  %v8798_v15 = vld [vmem:[#allocation45_spill] sm:$0xff]  ;;  %v8811_v39 = vld [vmem:[#allocation184_spill] sm:$0xff] }
 0x67b   :  { %v2755_v59 = vsel %vm1241_vm6, %v2723_v4, %v2265_v47  ;;  %v3291_v47 = vld [vmem:[%s7807_s0 + $0x210] sm:$0xff]  ;;  %v2722_v10 = vsel %vm1208_vm5, %v2690_v57, %v8795_v17 }
 0x67c   :  { %2542 = vrot.lane.b32.xlu1 %v8777_v62, %s3333_s18  ;;  %v2325_v37 = vpop.permute.xlu0 %2324  ;;  %v2754_v48 = vsel %vm1241_vm6, %v2722_v10, %v2263_v28  ;;  %v8799_v4 = vld [vmem:[#allocation99_spill] sm:$0xff] }
 0x67d   :  { %v2786_v38 = vsel %vm1274_vm7, %v2754_v48, %v2359_v36  ;;  %v8812_v48 = vld [vmem:[#allocation108_spill] sm:$0xff] }
 0x67e   :  { %v2555_v23 = vpop.permute.xlu1 %2554 }
 0x67f   :  { %v2852_v49 = vsel %vm1340_vm10, %v2820_v56, %v2555_v23 }
 0x680   :  { %3199 = vmatpush.xpose.msk.msra.mxu3 %vm1373_vm9, %v2852_v49  ;;  %v2357_v43 = vpop.permute.xlu2 %2356  ;;  %v3292_v49 = vld [vmem:[%s7807_s0 + $0x200] sm:$0xff] }
 0x681   :  { %v2609_v6 = vsel %vm1109_vm2, %v3292_v49, %v8796_v0  ;;  %v8814_v49 = vld [vmem:[#allocation121_spill] sm:$0xff] }
 0x682   :  { %v2641_v28 = vsel %vm1142_vm3, %v2609_v6, %v8797_v30 }
 0x683   :  { %v2673_v60 = vsel %vm1175_vm4, %v2641_v28, %v8799_v4 }
 0x684   :  { %v2453_v62 = vpop.permute.xlu0 %2452 }
 0x686   :  { %v2361_v22 = vpop.permute.xlu1 %2360 }
 0x687   :  { %v2787_v2 = vsel %vm1274_vm7, %v2755_v59, %v2361_v22  ;;  %v2705_v59 = vsel %vm1208_vm5, %v2673_v60, %v8801_v11  ;;  %v8817_v60 = vld [vmem:[#allocation5_spill] sm:$0xff] }
 0x688   :  { %v2819_v50 = vsel %vm1307_vm8, %v2787_v2, %v2457_v26  ;;  %v2610_v26 = vsel %vm1109_vm2, %v3291_v47, %v8786_v20  ;;  %v2517_v25 = vpop.permute.xlu2 %2516  ;;  %v8802_v2 = vld [vmem:[#allocation42_spill] sm:$0xff]  ;;  %v2737_v42 = vsel %vm1241_vm6, %v2705_v59, %v8803_v31  ;;  %v8819_v59 = vld [vmem:[#allocation20_spill] sm:$0xff]  ;;  %v8820_v31 = vld [vmem:[#allocation9_spill] sm:$0xff] }
 0x689   :  { %v2851_v54 = vsel %vm1340_vm10, %v2819_v50, %v2553_v41  ;;  %v2642_v24 = vsel %vm1142_vm3, %v2610_v26, %v8787_v7  ;;  %v8805_v7 = vld [vmem:[#allocation194_spill] sm:$0xff] }
 0x68a   :  { %3200 = vmatpush.xpose.msk.msra.mxu3 %vm1373_vm9, %v2851_v54  ;;  %v2674_v58 = vsel %vm1175_vm4, %v2642_v24, %v8788_v63  ;;  %v2769_v54 = vsel %vm1274_vm7, %v2737_v42, %v2325_v37  ;;  %v8806_v37 = vld [vmem:[#allocation80_spill] sm:$0xff] }
 0x68b   :  { %v2706_v45 = vsel %vm1208_vm5, %v2674_v58, %v8791_v8  ;;  %v2608_v8 = vsel %vm1109_vm2, %v3295_v44, %v8807_v51  ;;  %v3298_v51 = vld [vmem:[%s7807_s0 + $0x2a0] sm:$0xff] }
 0x68c   :  { %v2738_v55 = vsel %vm1241_vm6, %v2706_v45, %v8792_v33  ;;  %v2259_v9 = vpop.permute.xlu0 %2258  ;;  %v8808_v45 = vld [vmem:[#allocation137_spill] sm:$0xff] }
 0x68e   :  { %v2521_v21 = vpop.permute.xlu1 %2520 }
 0x68f   :  { %v2835_v53 = vsel %vm1340_vm10, %v2803_v29, %v2521_v21  ;;  %v3294_v21 = vld [vmem:[%s7807_s0 + $0x2b8] sm:$0xff] }
 0x690   :  { %3183 = vmatpush.xpose.msk.msra.mxu2 %vm1373_vm9, %v2835_v53  ;;  %v2323_v22 = vpop.permute.xlu2 %2322  ;;  %v2624_v24 = vsel %vm1109_vm2, %v3294_v21, %v8805_v7 }
 0x691   :  { %v2656_v5 = vsel %vm1142_vm3, %v2624_v24, %v8806_v37  ;;  %v3297_v24 = vld [vmem:[%s7807_s0 + $0x1e0] sm:$0xff]  ;;  %v8824_v37 = vld [vmem:[#allocation38_spill] sm:$0xff] }
 0x692   :  { %v2688_v33 = vsel %vm1175_vm4, %v2656_v5, %v8808_v45 }
 0x694   :  { %v2419_v20 = vpop.permute.xlu0 %2418 }
 0x696   :  { %v2327_v40 = vpop.permute.xlu1 %2326 }
 0x697   :  { %v2770_v41 = vsel %vm1274_vm7, %v2738_v55, %v2327_v40  ;;  %v8809_v40 = vld [vmem:[#allocation72_spill] sm:$0xff] }
 0x698   :  { %v2802_v12 = vsel %vm1307_vm8, %v2770_v41, %v2423_v46  ;;  %v2625_v46 = vsel %vm1109_vm2, %v3293_v16, %v8798_v15  ;;  %v2451_v29 = vpop.permute.xlu2 %2450  ;;  %v8810_v41 = vld [vmem:[#allocation74_spill] sm:$0xff] }
 0x699   :  { %v2834_v35 = vsel %vm1340_vm10, %v2802_v12, %v2519_v32  ;;  %v2657_v1 = vsel %vm1142_vm3, %v2625_v46, %v8800_v61  ;;  %v2720_v18 = vsel %vm1208_vm5, %v2688_v33, %v8810_v41  ;;  %v2623_v61 = vsel %vm1109_vm2, %v7206_v52, %v8817_v60  ;;  %v8826_v33 = vld [vmem:[#allocation16_spill] sm:$0xff]  ;;  %v8828_v41 = vld [vmem:[#allocation73_spill] sm:$0xff] }
 0x69a   :  { %3184 = vmatpush.xpose.msk.msra.mxu2 %vm1373_vm9, %v2834_v35  ;;  %v2689_v50 = vsel %vm1175_vm4, %v2657_v1, %v8802_v2  ;;  %v2752_v13 = vsel %vm1241_vm6, %v2720_v18, %v2259_v9  ;;  %v8816_v9 = vld [vmem:[#allocation187_spill] sm:$0xff]  ;;  %v8818_v1 = vld [vmem:[#allocation13_spill] sm:$0xff]  ;;  %v2655_v42 = vsel %vm1142_vm3, %v2623_v61, %v8820_v31 }
 0x69b   :  { %v2721_v34 = vsel %vm1208_vm5, %v2689_v50, %v8804_v27  ;;  %v8821_v27 = vld [vmem:[#allocation210_spill] sm:$0xff] }
 0x69c   :  { %v2547_v55 = vpop.permute.xlu0 %2546 }
 0x69e   :  { %v2455_v23 = vpop.permute.xlu1 %2454 }
 0x69f   :  { %v2818_v56 = vsel %vm1307_vm8, %v2786_v38, %v2455_v23  ;;  %v8813_v23 = vld [vmem:[#allocation177_spill] sm:$0xff] }
 0x6a0   :  { %v2850_v3 = vsel %vm1340_vm10, %v2818_v56, %v2551_v19  ;;  %v2257_v35 = vpop.permute.xlu2 %2256 }
 0x6a1   :  { %3201 = vmatpush.xpose.msk.msra.mxu3 %vm1373_vm9, %v2850_v3 }
 0x6a4   :  { %v2353_v30 = vpop.permute.xlu0 %2352 }
 0x6a6   :  { %v2261_v36 = vpop.permute.xlu1 %2260 }
 0x6a7   :  { %v2753_v19 = vsel %vm1241_vm6, %v2721_v34, %v2261_v36  ;;  %v8815_v36 = vld [vmem:[#allocation171_spill] sm:$0xff]  ;;  %v2687_v34 = vsel %vm1175_vm4, %v2655_v42, %v8821_v27 }
 0x6a8   :  { %v2785_v26 = vsel %vm1274_vm7, %v2753_v19, %v2357_v43  ;;  %v2640_v43 = vsel %vm1142_vm3, %v2608_v8, %v8809_v40  ;;  %v2417_v46 = vpop.permute.xlu2 %2416  ;;  %v8822_v19 = vld [vmem:[#allocation135_spill] sm:$0xff]  ;;  %v8825_v8 = vld [vmem:[#allocation89_spill] sm:$0xff]  ;;  %v8827_v40 = vld [vmem:[#allocation200_spill] sm:$0xff] }
 0x6a9   :  { %v2817_v63 = vsel %vm1307_vm8, %v2785_v26, %v2453_v62  ;;  %v2672_v12 = vsel %vm1175_vm4, %v2640_v43, %v8811_v39  ;;  %v2622_v45 = vsel %vm1109_vm2, %v3298_v51, %v8825_v8 }
 0x6aa   :  { %v2704_v38 = vsel %vm1208_vm5, %v2672_v12, %v8812_v48  ;;  %v2654_v43 = vsel %vm1142_vm3, %v2622_v45, %v8827_v40  ;;  %v8829_v12 = vld [vmem:[#allocation174_spill] sm:$0xff] }
 0x6ab   :  { %v2736_v56 = vsel %vm1241_vm6, %v2704_v38, %v8813_v23  ;;  %v8831_v38 = vld [vmem:[#allocation15_spill] sm:$0xff] }
 0x6ac   :  { %v2768_v3 = vsel %vm1274_vm7, %v2736_v56, %v2323_v22 }
 0x6ad   :  { %v2800_v6 = vsel %vm1307_vm8, %v2768_v3, %v2419_v20 }
 0x6ae   :  { %v2421_v32 = vpop.permute.xlu1 %2420 }
 0x6af   :  { %v2801_v14 = vsel %vm1307_vm8, %v2769_v54, %v2421_v32  ;;  %v2513_v54 = vpop.permute.xlu0 %2512 }
 0x6b0   :  { %v2833_v47 = vsel %vm1340_vm10, %v2801_v14, %v2517_v25  ;;  %v3296_v25 = vld [vmem:[%s7807_s0 + $0x1e8] sm:$0xff]  ;;  %v2545_v14 = vpop.permute.xlu2 %2544 }
 0x6b1   :  { %3185 = vmatpush.xpose.msk.msra.mxu2 %vm1373_vm9, %v2833_v47  ;;  %v2607_v0 = vsel %vm1109_vm2, %v3296_v25, %v8814_v49  ;;  %v2719_v47 = vsel %vm1208_vm5, %v2687_v34, %v8822_v19  ;;  %v3334_v34 = vmov 0  }
 0x6b2   :  { %v2639_v16 = vsel %vm1142_vm3, %v2607_v0, %v8815_v36  ;;  %v2751_v20 = vsel %vm1241_vm6, %v2719_v47, %v2257_v35  ;;  %v3299_v0 = vld [vmem:[%s7808_s1] sm:$0xff]  ;;  %3219 = vset.pattern.permute.xlu0 %v3334_v34  ;;  %3218 = vset.pattern.permute.xlu2 %v3334_v34 }
 0x6b3   :  { %v2671_v4 = vsel %vm1175_vm4, %v2639_v16, %v8816_v9  ;;  %v2783_v26 = vsel %vm1274_vm7, %v2751_v20, %v2353_v30  ;;  %v8832_v9 = vld [vmem:[#allocation193_spill] sm:$0xff] }
 0x6b4   :  { %v2703_v11 = vsel %vm1208_vm5, %v2671_v4, %v8818_v1 }
 0x6b5   :  { %v2735_v22 = vsel %vm1241_vm6, %v2703_v11, %v8819_v59  ;;  %v8833_v11 = vld [vmem:[#allocation114_spill] sm:$0xff] }
 0x6b6   :  { %v2549_v53 = vpop.permute.xlu1 %2548 }
 0x6b7   :  { %v2849_v58 = vsel %vm1340_vm10, %v2817_v63, %v2549_v53  ;;  %v8823_v53 = vld [vmem:[#allocation91_spill] sm:$0xff]  ;;  %v2319_v39 = vpop.permute.xlu0 %2318 }
 0x6b8   :  { %3202 = vmatpush.xpose.msk.msra.mxu3 %vm1373_vm9, %v2849_v58  ;;  %v2606_v63 = vsel %vm1109_vm2, %v3297_v24, %v8823_v53  ;;  %v2351_v58 = vpop.permute.xlu2 %2350 }
 0x6b9   :  { %v2638_v5 = vsel %vm1142_vm3, %v2606_v63, %v8824_v37 }
 0x6be   :  { %v2355_v57 = vpop.permute.xlu1 %2354 }
 0x6bf   :  { %v2784_v17 = vsel %vm1274_vm7, %v2752_v13, %v2355_v57  ;;  %v2686_v13 = vsel %vm1175_vm4, %v2654_v43, %v8829_v12  ;;  %v8830_v57 = vld [vmem:[#allocation196_spill] sm:$0xff]  ;;  %v2447_v49 = vpop.permute.xlu0 %2446 }
 0x6c0   :  { %v2816_v10 = vsel %vm1307_vm8, %v2784_v17, %v2451_v29  ;;  %v2511_v17 = vpop.permute.xlu2 %2510 }
 0x6c1   :  { %v2848_v62 = vsel %vm1340_vm10, %v2816_v10, %v2547_v55  ;;  %v2670_v55 = vsel %vm1175_vm4, %v2638_v5, %v8826_v33 }
 0x6c2   :  { %3203 = vmatpush.xpose.msk.msra.mxu3 %vm1373_vm9, %v2848_v62  ;;  %v2702_v18 = vsel %vm1208_vm5, %v2670_v55, %v8828_v41  ;;  %v2718_v62 = vsel %vm1208_vm5, %v2686_v13, %v8831_v38 }
 0x6c3   :  { %v2734_v35 = vsel %vm1241_vm6, %v2702_v18, %v8830_v57 }
 0x6c4   :  { %v2766_v10 = vsel %vm1274_vm7, %v2734_v35, %v2319_v39 }
 0x6c6   :  { %v2515_v28 = vpop.permute.xlu1 %2514 }
 0x6c7   :  { %v2832_v15 = vsel %vm1340_vm10, %v2800_v6, %v2515_v28 }
 0x6c8   :  { %3186 = vmatpush.xpose.msk.msra.mxu2 %vm1373_vm9, %v2832_v15 }
 0x6ce   :  { %v2321_v2 = vpop.permute.xlu1 %2320 }
 0x6cf   :  { %v2767_v50 = vsel %vm1274_vm7, %v2735_v22, %v2321_v2  ;;  %v8834_v22 = vld [vmem:[#allocation143_spill] sm:$0xff] }
 0x6d0   :  { %v2799_v32 = vsel %vm1307_vm8, %v2767_v50, %v2417_v46 }
 0x6d1   :  { %v2831_v52 = vsel %vm1340_vm10, %v2799_v32, %v2513_v54 }
 0x6d2   :  { %3187 = vmatpush.xpose.msk.msra.mxu2 %vm1373_vm9, %v2831_v52  ;;  %v3033_v52 = vld [vmem:[%s7810_s3] sm:$0xff]  ;;  %s3335_s3 = smov [#allocation2]  }
 0x6d3   :  { %s3065_s9 = sshll.u32 %s3335_s3, 4  ;;  %s3066_s9 = int_to_ptr.vmem [resolvable:$true] %s3065_s9 }
 0x6d6   :  { %v2449_v29 = vpop.permute.xlu1 %2448 }
 0x6d7   :  { %v2815_v21 = vsel %vm1307_vm8, %v2783_v26, %v2449_v29 }
 0x6d8   :  { %v2847_v7 = vsel %vm1340_vm10, %v2815_v21, %v2545_v14 }
 0x6d9   :  { %3204 = vmatpush.xpose.msk.msra.mxu3 %vm1373_vm9, %v2847_v7 }
 0x6de   :  { %v2255_v44 = vpop.permute.xlu1 %2254 }
 0x6df   :  { %v2750_v56 = vsel %vm1241_vm6, %v2718_v62, %v2255_v44 }
 0x6e0   :  { %v2782_v25 = vsel %vm1274_vm7, %v2750_v56, %v2351_v58  ;;  %v3020_v58 = vld [vmem:[%s7809_s2] sm:$0xff] }
 0x6e1   :  { %v2814_v6 = vsel %vm1307_vm8, %v2782_v25, %v2447_v49 }
 0x6e6   :  { %v2415_v48 = vpop.permute.xlu1 %2414 }
 0x6e7   :  { %v2798_v23 = vsel %vm1307_vm8, %v2766_v10, %v2415_v48 }
 0x6e8   :  { %v2830_v3 = vsel %vm1340_vm10, %v2798_v23, %v2511_v17 }
 0x6e9   :  { %3188 = vmatpush.xpose.msk.msra.mxu2 %vm1373_vm9, %v2830_v3 }
 0x6ec   :  { %3189 = vmatmul.msk.f32.vlgmr.msra.gmra.mxu2 %vm1373_vm9, %v3299_v0 }
 0x6ee   :  { %v2543_v30 = vpop.permute.xlu1 %2542 }
 0x6ef   :  { %v2846_v28 = vsel %vm1340_vm10, %v2814_v6, %v2543_v30 }
 0x6f0   :  { %3205 = vmatpush.xpose.msk.msra.mxu3 %vm1373_vm9, %v2846_v28 }
 0x6f3   :  { %3206 = vmatmul.msk.f32.vlgmr.msra.gmra.mxu3 %vm1373_vm9, %v3299_v0 }
 0x76f   :  { %v2975_v36 = vpop.f32.mrf.mxu2 }
 0x776   :  { %v2995_v16 = vpop.f32.mrf.mxu3 }
 0x777   :  { %v2998_v15 = vadd.f32 %v2995_v16, %v2975_v36 }
 0x779   :  { %2999 = vadd.xlane.f32.xlu0 %v2998_v15 }
 0x78d   :  { %3043 = vperm.xlu0 %3219, %v3033_v52  }
 0x7ec   :  { %v3000_v46 = vpop.xlane.xlu0 %2999 }
 0x7ed   :  { %v3001_v4 = vadd.f32 %v3000_v46, %v8832_v9 }
 0x7ef   :  { %v3002_v60 = vmul.f32 0.001953125, %v3001_v4 }
 0x7f1   :  { %v3005_v61 = vsub.f32 %v2975_v36, %v3002_v60  ;;  %v3006_v1 = vsub.f32 %v2995_v16, %v3002_v60  ;;  %v3003_v59 = vsub.f32 %v8833_v11, %v3002_v60  ;;  %v3004_v2 = vsub.f32 %v8834_v22, %v3002_v60 }
 0x7f3   :  { %v3013_v50 = vmul.f32 %v3005_v61, %v3005_v61  ;;  %v3014_v31 = vmul.f32 %v3006_v1, %v3006_v1  ;;  %v3007_v42 = vmul.f32 %v3003_v59, %v3003_v59  ;;  %v3008_v54 = vmul.f32 %v3004_v2, %v3004_v2 }
 0x7f5   :  { %v3015_v32 = vadd.f32 %v3014_v31, %v3013_v50  ;;  %v3009_v27 = vadd.f32 %v3008_v54, %v3007_v42 }
 0x7f7   :  { %3016 = vadd.xlane.f32.xlu1 %v3015_v32  ;;  %3010 = vadd.xlane.f32.xlu2 %v3009_v27 }
 0x7ff   :  { %v3044_v51 = vpop.permute.xlu0 %3043 }
 0x86a   :  { %v3017_v14 = vpop.xlane.xlu1 %3016  ;;  %v3011_v19 = vpop.xlane.xlu2 %3010 }
 0x86b   :  { %v3018_v47 = vadd.f32 %v3017_v14, %v3011_v19 }
 0x86d   :  { %v3019_v20 = vmul.f32 0.001953125, %v3018_v47 }
 0x86f   :  { %v3021_v26 = vadd.f32 1e-05, %v3019_v20 }
 0x871   :  { %3220 = vrsqrt.f32 %v3021_v26  ;;  %vm3028_vm12 = vweird.f32 %v3021_v26 }
 0x877   :  { %v3221_v29 = vpop.eup %3220 }
 0x878   :  { %v3023_v21 = vmul.f32 %v3221_v29, %v3021_v26  ;;  %vm3029_vm11 = vweird.f32 %v3221_v29 }
 0x879   :  { %vm3030_vm13 = vmor %vm3028_vm12, %vm3029_vm11 }
 0x87a   :  { %v3024_v7 = vmul.f32 %v3221_v29, %v3023_v21 }
 0x87c   :  { %v3025_v24 = vmul.f32 0.5, %v3024_v7 }
 0x87e   :  { %v3026_v53 = vsub.f32 1.5, %v3025_v24 }
 0x880   :  { %v3027_v63 = vmul.f32 %v3221_v29, %v3026_v53 }
 0x882   :  { %v3031_v37 = vsel %vm3030_vm13, %v3221_v29, %v3027_v63 }
 0x883   :  { %v3032_v5 = vmul.f32 %v3031_v37, %v3020_v58 }
 0x885   :  { %3036 = vperm.xlu2 %3218, %v3032_v5  }
 0x8df   :  { %v3037_v44 = vpop.permute.xlu2 %3036 }
 0x8e0   :  { %v3039_v8 = vmul.f32 %v3037_v44, %v3003_v59  ;;  %v3040_v45 = vmul.f32 %v3037_v44, %v3004_v2  ;;  %v3052_v33 = vmul.f32 %v3037_v44, %v3005_v61  ;;  %v3053_v55 = vmul.f32 %v3037_v44, %v3006_v1 }
 0x8e2   :  { %v3046_v40 = vadd.f32 %v3044_v51, %v3039_v8  ;;  %v3047_v43 = vadd.f32 %v3044_v51, %v3040_v45  ;;  %v3054_v41 = vadd.f32 %v3052_v33, %v3044_v51  ;;  %v3055_v18 = vadd.f32 %v3053_v55, %v3044_v51 }
 0x8e4   :  { %v3048_v39 = vmax.f32 %v3046_v40, 0.0  ;;  %v3049_v12 = vmax.f32 %v3047_v43, 0.0  ;;  %v3056_v13 = vmax.f32 %v3054_v41, 0.0  ;;  %v3057_v57 = vmax.f32 %v3055_v18, 0.0 }
 0x8e6   :  { %3050 = vst [vmem:[#allocation2] sm:$0xff] %v3048_v39 }
 0x8e7   :  { %3051 = vst [vmem:[#allocation2 + $0x8] sm:$0xff] %v3049_v12 }
 0x8e8   :  { %3059 = vst [vmem:[#allocation2 + $0x10] sm:$0xff] %v3056_v13 }
 0x8e9   :  { %3060 = vst [vmem:[#allocation2 + $0x18] sm:$0xff] %v3057_v57 }
 0x8ea   :  { %3073 = dma.vmem_to_hbm [thread:$0]  %s3066_s9, 512, %s3068_s13, [#allocation3], %s3336_s10, %s3336_s10, %s3329_s21  }
 0x8eb   :  { %3324 = dma.done.wait [#allocation3], 512  }
 0x8ec   :  { %3325 = vsyncadd [#allocation3], 4294966784 }
 0x8ed   :  { %3078 = vsyncpa [#allocation3], 1 }

</bundles_post_ra>
